<compile_context>
chip_gen: v7x
topology: tpu7x:2x2x1
jax: 0.10.0
libtpu: 0.0.40
codegen_flags: <defaults>
</compile_context>

<pallas_src>
import functools
import math

import jax
import jax.numpy as jnp
from jax.experimental import pallas as pl
from jax.experimental.pallas import tpu as pltpu

# Make the pure-JAX reference use full f32 matmuls so the parity check is
# meaningful (TPU default matmul precision is reduced).
jax.config.update("jax_default_matmul_precision", "highest")

# ---------------- config (small, consistent with the ViT module) -------------
CONFIG = dict(
    hidden_size=32,
    num_attention_heads=4,
    intermediate_size=64,
    num_hidden_layers=2,
    qkv_bias=True,
    hidden_dropout_prob=0.0,            # dropout is a no-op at inference
    attention_probs_dropout_prob=0.0,
)
LN_EPS = 1e-5  # torch.nn.LayerNorm default

# TODO(synk): output_attentions=True path (returning per-layer attention probs)
# is not implemented; only the default output_attentions=False forward is.


# ---------------------------- Pallas kernel ----------------------------------
def _encoder_kernel(x_ref, wqkv_ref, wo_ref, w1_ref, w2_ref, small_ref,
                    out_ref, *, B: int, S: int, num_heads: int,
                    num_layers: int):
    """Whole Encoder (all layers, whole batch) in one kernel invocation.

    x_ref:     (B*S, H)      input slab.
    wqkv_ref:  (L, H, 3H)    fused q/k/v weights (Q part pre-scaled by 1/sqrt(dh)).
    wo_ref:    (L, H, H)     output projection weights.
    w1_ref:    (L, H, I)     MLP dense_1 weights.
    w2_ref:    (L, I, H)     MLP dense_2 weights.
    small_ref: (L, 8, 128)   packed small params per layer:
               rows 0..3 = ln1_w, ln1_b, ln2_w, ln2_b (first H lanes)
               row  4    = qkv bias (first 3H lanes, Q part pre-scaled)
               row  5    = output-proj bias (first H lanes)
               row  6    = MLP b1 (first I lanes)
               row  7    = MLP b2 (first H lanes)
    out_ref:   (B*S, H)      output slab.
    """
    x = x_ref[...].astype(jnp.float32)            # (B*S, H)
    BS, H = x.shape
    nh = num_heads
    dh = H // nh
    I = w1_ref.shape[-1]
    c_gelu = math.sqrt(2.0 / math.pi)

    def layernorm(v, w, b):
        mu = jnp.mean(v, axis=-1, keepdims=True)
        var = jnp.mean((v - mu) ** 2, axis=-1, keepdims=True)
        return (v - mu) * jax.lax.rsqrt(var + LN_EPS) * w + b

    # Static (fully unrolled) layer loop: every weight is already resident in
    # VMEM, so there is no per-layer DMA or grid-step overhead.
    for l in range(num_layers):
        wqkv = wqkv_ref[l]                        # (H, 3H)
        wo = wo_ref[l]                            # (H, H)
        w1 = w1_ref[l]                            # (H, I)
        w2 = w2_ref[l]                            # (I, H)

        small = small_ref[l]                      # (8, 128)
        ln1w = small[0:1, :H]
        ln1b = small[1:2, :H]
        ln2w = small[2:3, :H]
        ln2b = small[3:4, :H]
        bqkv = small[4:5, :3 * H]
        bo = small[5:6, :H]
        b1 = small[6:7, :I]
        b2 = small[7:8, :H]

        # ---------------- Multi-head self-attention (pre-LN) -----------------
        h1 = layernorm(x, ln1w, ln1b)             # (B*S, H)
        qkv = jnp.dot(h1, wqkv, preferred_element_type=jnp.float32) + bqkv

        # Split heads; merge (batch, head) into one batch dim so the attention
        # matmuls are plain 3-D batched einsums (well-supported lowering).
        q = qkv[:, 0:H].reshape(B, S, nh, dh)
        k = qkv[:, H:2 * H].reshape(B, S, nh, dh)
        v = qkv[:, 2 * H:3 * H].reshape(B, S, nh, dh)
        qh = jnp.swapaxes(q, 1, 2).reshape(B * nh, S, dh)
        kh = jnp.swapaxes(k, 1, 2).reshape(B * nh, S, dh)
        vh = jnp.swapaxes(v, 1, 2).reshape(B * nh, S, dh)

        # 1/sqrt(dh) already folded into the Q weights at pack time.
        scores = jnp.einsum('bqd,bkd->bqk', qh, kh,
                            preferred_element_type=jnp.float32)   # (B*nh, S, S)
        m = jnp.max(scores, axis=-1, keepdims=True)
        e = jnp.exp(scores - m)
        probs = e / jnp.sum(e, axis=-1, keepdims=True)            # exact softmax
        ctx = jnp.einsum('bqk,bkd->bqd', probs, vh,
                         preferred_element_type=jnp.float32)      # (B*nh, S, dh)
        ctx = jnp.swapaxes(ctx.reshape(B, nh, S, dh), 1, 2).reshape(BS, H)

        x = x + jnp.dot(ctx, wo, preferred_element_type=jnp.float32) + bo

        # ---------------------------- MLP (pre-LN) ----------------------------
        h2 = layernorm(x, ln2w, ln2b)
        z = jnp.dot(h2, w1, preferred_element_type=jnp.float32) + b1
        z = 0.5 * z * (1.0 + jnp.tanh(c_gelu * (z + 0.044715 * z * z * z)))
        x = x + jnp.dot(z, w2, preferred_element_type=jnp.float32) + b2

    out_ref[...] = x.astype(out_ref.dtype)


# ------------------------------ wrapper ---------------------------------------
def pack_params(params, H, I, num_heads):
    """Stack per-layer params along a leading layer axis and pack small ones.

    Also folds the attention 1/sqrt(dh) score scale into the Q weights/bias.
    """
    assert 3 * H <= 128, "packed slab row 4 assumes 3*H <= 128 (qkv bias)"
    assert I <= 128, "packed slab row 6 assumes intermediate_size <= 128"
    dh = H // num_heads
    inv_sqrt_dh = 1.0 / math.sqrt(dh)

    wqkv_all, wo_all, w1_all, w2_all, small_all = [], [], [], [], []
    for p in params:
        (ln1w, ln1b, wq, bq, wk, bk, wv, bv, wo, bo,
         ln2w, ln2b, w1, b1, w2, b2) = p
        wq_s = wq * inv_sqrt_dh
        bq_s = bq * inv_sqrt_dh
        wqkv_all.append(jnp.concatenate([wq_s, wk, wv], axis=1))   # (H, 3H)
        wo_all.append(wo)
        w1_all.append(w1)
        w2_all.append(w2)
        small = jnp.zeros((8, 128), jnp.float32)
        small = small.at[0, :H].set(ln1w.reshape(-1))
        small = small.at[1, :H].set(ln1b.reshape(-1))
        small = small.at[2, :H].set(ln2w.reshape(-1))
        small = small.at[3, :H].set(ln2b.reshape(-1))
        small = small.at[4, :3 * H].set(
            jnp.concatenate([bq_s, bk, bv], axis=1).reshape(-1))
        small = small.at[5, :H].set(bo.reshape(-1))
        small = small.at[6, :I].set(b1.reshape(-1))
        small = small.at[7, :H].set(b2.reshape(-1))
        small_all.append(small)
    return (jnp.stack(wqkv_all), jnp.stack(wo_all), jnp.stack(w1_all),
            jnp.stack(w2_all), jnp.stack(small_all))


def encoder_forward(x, params, num_heads):
    """Fused Encoder forward (output_attentions=False path). x: (B, S, H)."""
    B, S, H = x.shape
    L = len(params)
    I = params[0][12].shape[1]
    wqkv_all, wo_all, w1_all, w2_all, small_all = pack_params(
        params, H, I, num_heads)

    x2d = x.reshape(B * S, H)
    kernel = functools.partial(_encoder_kernel, B=B, S=S,
                               num_heads=num_heads, num_layers=L)

    # No grid: everything (activation + all layers' weights, ~72 KiB f32) is a
    # single whole-array VMEM block and the kernel runs exactly once.
    # TODO(synk): at real ViT sizes (H=768, I=3072, L=12) the all-layers
    # resident design exceeds VMEM; re-tile weights with a k-accumulator grid.
    vmem = pl.BlockSpec(memory_space=pltpu.MemorySpace.VMEM)
    out2d = pl.pallas_call(
        kernel,
        out_shape=jax.ShapeDtypeStruct((B * S, H), x.dtype),
        in_specs=[vmem, vmem, vmem, vmem, vmem, vmem],
        out_specs=vmem,
    )(x2d, wqkv_all, wo_all, w1_all, w2_all, small_all)
    return out2d.reshape(B, S, H)


# --------------------- deterministic parameter init ---------------------------
def init_params(key, config):
    H = config['hidden_size']
    I = config['intermediate_size']
    L = config['num_hidden_layers']
    params = []
    for layer in range(L):
        keys = jax.random.split(jax.random.fold_in(key, layer), 8)
        scale = 0.02
        ln1_w = jnp.ones((1, H), jnp.float32)
        ln1_b = jnp.zeros((1, H), jnp.float32)
        wq = scale * jax.random.normal(keys[0], (H, H), jnp.float32)
        bq = scale * jax.random.normal(keys[1], (1, H), jnp.float32)
        wk = scale * jax.random.normal(keys[2], (H, H), jnp.float32)
        bk = scale * jax.random.normal(keys[3], (1, H), jnp.float32)
        wv = scale * jax.random.normal(keys[4], (H, H), jnp.float32)
        bv = scale * jax.random.normal(keys[5], (1, H), jnp.float32)
        wo = scale * jax.random.normal(keys[6], (H, H), jnp.float32)
        bo = jnp.zeros((1, H), jnp.float32)
        ln2_w = jnp.ones((1, H), jnp.float32)
        ln2_b = jnp.zeros((1, H), jnp.float32)
        w1 = scale * jax.random.normal(keys[7], (H, I), jnp.float32)
        b1 = jnp.zeros((1, I), jnp.float32)
        w2 = scale * jax.random.normal(jax.random.fold_in(keys[7], 1),
                                       (I, H), jnp.float32)
        b2 = jnp.zeros((1, H), jnp.float32)
        params.append((ln1_w, ln1_b, wq, bq, wk, bk, wv, bv, wo, bo,
                       ln2_w, ln2_b, w1, b1, w2, b2))
    return params


# ------------------------- pure-JAX reference ---------------------------------
def _ref_block(x, p, num_heads):
    (ln1w, ln1b, wq, bq, wk, bk, wv, bv, wo, bo,
     ln2w, ln2b, w1, b1, w2, b2) = p
    B, S, H = x.shape
    dh = H // num_heads

    def ln(v, w, b):
        mu = v.mean(-1, keepdims=True)
        var = ((v - mu) ** 2).mean(-1, keepdims=True)
        return (v - mu) / jnp.sqrt(var + LN_EPS) * w + b

    h = ln(x, ln1w, ln1b)
    q = h @ wq + bq
    k = h @ wk + bk
    v = h @ wv + bv
    qh = q.reshape(B, S, num_heads, dh).transpose(0, 2, 1, 3)
    kh = k.reshape(B, S, num_heads, dh).transpose(0, 2, 1, 3)
    vh = v.reshape(B, S, num_heads, dh).transpose(0, 2, 1, 3)
    s = jnp.einsum('bhqd,bhkd->bhqk', qh, kh) / math.sqrt(dh)
    pbs = jax.nn.softmax(s, axis=-1)
    ctx = jnp.einsum('bhqk,bhkd->bhqd', pbs, vh).transpose(0, 2, 1, 3).reshape(B, S, H)
    x = x + (ctx @ wo + bo)
    h2 = ln(x, ln2w, ln2b)
    z = h2 @ w1 + b1
    z = 0.5 * z * (1.0 + jnp.tanh(math.sqrt(2.0 / math.pi) * (z + 0.044715 * z ** 3)))
    x = x + (z @ w2 + b2)
    return x


# --------------------------------- main ---------------------------------------
if __name__ == "__main__":
    B, S = 2, 8
    H = CONFIG['hidden_size']
    NH = CONFIG['num_attention_heads']

    key = jax.random.PRNGKey(0)
    kx, kp = jax.random.split(key)
    x = jax.random.normal(kx, (B, S, H), jnp.float32)
    params = init_params(kp, CONFIG)

    out = encoder_forward(x, params, NH)
    out = jax.block_until_ready(out)

    # parity check vs pure-JAX reference (f32 everywhere, exact softmax division)
    ref = x
    for p in params:
        ref = _ref_block(ref, p, NH)
    assert out.shape == (B, S, H)
    assert jnp.allclose(out, ref, atol=5e-3, rtol=5e-3), "mismatch vs reference"

    print("KERNEL_OK")
</pallas_src>

<mosaic_0001>
module attributes {stable_mosaic.version = 11 : i64} {
  func.func @_encoder_kernel(%arg0: memref<16x32xf32, #tpu.memory_space<vmem>>, %arg1: memref<2x32x96xf32, #tpu.memory_space<vmem>>, %arg2: memref<2x32x32xf32, #tpu.memory_space<vmem>>, %arg3: memref<2x32x64xf32, #tpu.memory_space<vmem>>, %arg4: memref<2x64x32xf32, #tpu.memory_space<vmem>>, %arg5: memref<2x8x128xf32, #tpu.memory_space<vmem>>, %arg6: memref<16x32xf32, #tpu.memory_space<vmem>>) attributes {dimension_semantics = [], scalar_prefetch = 0 : i64, scratch_operands = 0 : i64, tpu.core_type = #tpu.core_type<tc>} {
    %c0 = arith.constant 0 : index
    %c0_0 = arith.constant 0 : index
    %0 = vector.load %arg0[%c0, %c0_0] : memref<16x32xf32, #tpu.memory_space<vmem>>, vector<16x32xf32>
    %c0_1 = arith.constant 0 : index
    %c0_2 = arith.constant 0 : index
    %c0_3 = arith.constant 0 : index
    %1 = vector.load %arg1[%c0_1, %c0_2, %c0_3] : memref<2x32x96xf32, #tpu.memory_space<vmem>>, vector<1x32x96xf32>
    %2 = vector.shape_cast %1 : vector<1x32x96xf32> to vector<32x96xf32>
    %c0_4 = arith.constant 0 : index
    %c0_5 = arith.constant 0 : index
    %c0_6 = arith.constant 0 : index
    %3 = vector.load %arg2[%c0_4, %c0_5, %c0_6] : memref<2x32x32xf32, #tpu.memory_space<vmem>>, vector<1x32x32xf32>
    %4 = vector.shape_cast %3 : vector<1x32x32xf32> to vector<32x32xf32>
    %c0_7 = arith.constant 0 : index
    %c0_8 = arith.constant 0 : index
    %c0_9 = arith.constant 0 : index
    %5 = vector.load %arg3[%c0_7, %c0_8, %c0_9] : memref<2x32x64xf32, #tpu.memory_space<vmem>>, vector<1x32x64xf32>
    %6 = vector.shape_cast %5 : vector<1x32x64xf32> to vector<32x64xf32>
    %c0_10 = arith.constant 0 : index
    %c0_11 = arith.constant 0 : index
    %c0_12 = arith.constant 0 : index
    %7 = vector.load %arg4[%c0_10, %c0_11, %c0_12] : memref<2x64x32xf32, #tpu.memory_space<vmem>>, vector<1x64x32xf32>
    %8 = vector.shape_cast %7 : vector<1x64x32xf32> to vector<64x32xf32>
    %c0_13 = arith.constant 0 : index
    %c0_14 = arith.constant 0 : index
    %c0_15 = arith.constant 0 : index
    %9 = vector.load %arg5[%c0_13, %c0_14, %c0_15] : memref<2x8x128xf32, #tpu.memory_space<vmem>>, vector<1x8x128xf32>
    %10 = vector.shape_cast %9 : vector<1x8x128xf32> to vector<8x128xf32>
    %11 = vector.extract_strided_slice %10 {offsets = [0, 0], sizes = [1, 32], strides = [1, 1]} : vector<8x128xf32> to vector<1x32xf32>
    %12 = vector.extract_strided_slice %10 {offsets = [1, 0], sizes = [1, 32], strides = [1, 1]} : vector<8x128xf32> to vector<1x32xf32>
    %13 = vector.extract_strided_slice %10 {offsets = [2, 0], sizes = [1, 32], strides = [1, 1]} : vector<8x128xf32> to vector<1x32xf32>
    %14 = vector.extract_strided_slice %10 {offsets = [3, 0], sizes = [1, 32], strides = [1, 1]} : vector<8x128xf32> to vector<1x32xf32>
    %15 = vector.extract_strided_slice %10 {offsets = [4, 0], sizes = [1, 96], strides = [1, 1]} : vector<8x128xf32> to vector<1x96xf32>
    %16 = vector.extract_strided_slice %10 {offsets = [5, 0], sizes = [1, 32], strides = [1, 1]} : vector<8x128xf32> to vector<1x32xf32>
    %17 = vector.extract_strided_slice %10 {offsets = [6, 0], sizes = [1, 64], strides = [1, 1]} : vector<8x128xf32> to vector<1x64xf32>
    %18 = vector.extract_strided_slice %10 {offsets = [7, 0], sizes = [1, 32], strides = [1, 1]} : vector<8x128xf32> to vector<1x32xf32>
    %cst = arith.constant dense<0.000000e+00> : vector<16xf32>
    %19 = vector.multi_reduction <add>, %0, %cst [1] : vector<16x32xf32> to vector<16xf32>
    %20 = vector.shape_cast %19 : vector<16xf32> to vector<16x1xf32>
    %cst_16 = arith.constant 3.200000e+01 : f32
    %21 = vector.broadcast %cst_16 : f32 to vector<16x1xf32>
    %22 = arith.divf %20, %21 : vector<16x1xf32>
    %23 = vector.broadcast %22 : vector<16x1xf32> to vector<16x32xf32>
    %24 = arith.subf %0, %23 : vector<16x32xf32>
    %25 = arith.mulf %24, %24 : vector<16x32xf32>
    %cst_17 = arith.constant dense<0.000000e+00> : vector<16xf32>
    %26 = vector.multi_reduction <add>, %25, %cst_17 [1] : vector<16x32xf32> to vector<16xf32>
    %27 = vector.shape_cast %26 : vector<16xf32> to vector<16x1xf32>
    %cst_18 = arith.constant 3.200000e+01 : f32
    %28 = vector.broadcast %cst_18 : f32 to vector<16x1xf32>
    %29 = arith.divf %27, %28 : vector<16x1xf32>
    %30 = vector.broadcast %22 : vector<16x1xf32> to vector<16x32xf32>
    %31 = arith.subf %0, %30 : vector<16x32xf32>
    %cst_19 = arith.constant 9.99999974E-6 : f32
    %32 = vector.broadcast %cst_19 : f32 to vector<16x1xf32>
    %33 = arith.addf %29, %32 : vector<16x1xf32>
    %34 = math.rsqrt %33 : vector<16x1xf32>
    %35 = vector.broadcast %34 : vector<16x1xf32> to vector<16x32xf32>
    %36 = arith.mulf %31, %35 : vector<16x32xf32>
    %37 = vector.broadcast %11 : vector<1x32xf32> to vector<16x32xf32>
    %38 = arith.mulf %36, %37 : vector<16x32xf32>
    %39 = vector.broadcast %12 : vector<1x32xf32> to vector<16x32xf32>
    %40 = arith.addf %38, %39 : vector<16x32xf32>
    %cst_20 = arith.constant dense<0.000000e+00> : vector<16x96xf32>
    %41 = tpu.matmul %40, %2, %cst_20 {dimension_numbers = #tpu.dot_dimension_numbers<[1], [0], [0], [1], [0, 0, 1, 1], [], []>, precision = #tpu.contract_precision<fp32>} : vector<16x32xf32>, vector<32x96xf32>, vector<16x96xf32> -> vector<16x96xf32>
    %42 = vector.broadcast %15 : vector<1x96xf32> to vector<16x96xf32>
    %43 = arith.addf %41, %42 : vector<16x96xf32>
    %44 = vector.extract_strided_slice %43 {offsets = [0, 0], sizes = [16, 32], strides = [1, 1]} : vector<16x96xf32> to vector<16x32xf32>
    %45 = vector.shape_cast %44 : vector<16x32xf32> to vector<2x8x4x8xf32>
    %46 = vector.extract_strided_slice %43 {offsets = [0, 32], sizes = [16, 32], strides = [1, 1]} : vector<16x96xf32> to vector<16x32xf32>
    %47 = vector.shape_cast %46 : vector<16x32xf32> to vector<2x8x4x8xf32>
    %48 = vector.extract_strided_slice %43 {offsets = [0, 64], sizes = [16, 32], strides = [1, 1]} : vector<16x96xf32> to vector<16x32xf32>
    %49 = vector.shape_cast %48 : vector<16x32xf32> to vector<2x8x4x8xf32>
    %50 = tpu.transpose %45, [0, 2, 1, 3] : vector<2x8x4x8xf32> -> vector<2x4x8x8xf32>
    %51 = vector.shape_cast %50 : vector<2x4x8x8xf32> to vector<8x8x8xf32>
    %52 = tpu.transpose %47, [0, 2, 1, 3] : vector<2x8x4x8xf32> -> vector<2x4x8x8xf32>
    %53 = vector.shape_cast %52 : vector<2x4x8x8xf32> to vector<8x8x8xf32>
    %54 = tpu.transpose %49, [0, 2, 1, 3] : vector<2x8x4x8xf32> -> vector<2x4x8x8xf32>
    %55 = vector.shape_cast %54 : vector<2x4x8x8xf32> to vector<8x8x8xf32>
    "tpu.trace_start"() <{level = 10 : i32, message = "bqd,bkd->bqk"}> : () -> ()
    %cst_21 = arith.constant dense<0.000000e+00> : vector<8x8x8xf32>
    %56 = tpu.matmul %51, %53, %cst_21 {dimension_numbers = #tpu.dot_dimension_numbers<[2], [2], [1], [1], [0, 0, 0, 1, 1, 1], [0], [0]>, precision = #tpu.contract_precision<fp32>} : vector<8x8x8xf32>, vector<8x8x8xf32>, vector<8x8x8xf32> -> vector<8x8x8xf32>
    "tpu.trace_stop"() : () -> ()
    %cst_22 = arith.constant dense<0xFF800000> : vector<8x8xf32>
    %57 = vector.multi_reduction <maximumf>, %56, %cst_22 [2] : vector<8x8x8xf32> to vector<8x8xf32>
    %58 = vector.shape_cast %57 : vector<8x8xf32> to vector<8x8x1xf32>
    %59 = vector.broadcast %58 : vector<8x8x1xf32> to vector<8x8x8xf32>
    %60 = arith.subf %56, %59 : vector<8x8x8xf32>
    %61 = math.exp %60 : vector<8x8x8xf32>
    %cst_23 = arith.constant dense<0.000000e+00> : vector<8x8xf32>
    %62 = vector.multi_reduction <add>, %61, %cst_23 [2] : vector<8x8x8xf32> to vector<8x8xf32>
    %63 = vector.shape_cast %62 : vector<8x8xf32> to vector<8x8x1xf32>
    %64 = vector.broadcast %63 : vector<8x8x1xf32> to vector<8x8x8xf32>
    %65 = arith.divf %61, %64 : vector<8x8x8xf32>
    "tpu.trace_start"() <{level = 10 : i32, message = "bqk,bkd->bqd"}> : () -> ()
    %cst_24 = arith.constant dense<0.000000e+00> : vector<8x8x8xf32>
    %66 = tpu.matmul %65, %55, %cst_24 {dimension_numbers = #tpu.dot_dimension_numbers<[2], [1], [1], [2], [0, 0, 0, 1, 1, 2], [0], [0]>, precision = #tpu.contract_precision<fp32>} : vector<8x8x8xf32>, vector<8x8x8xf32>, vector<8x8x8xf32> -> vector<8x8x8xf32>
    "tpu.trace_stop"() : () -> ()
    %67 = vector.shape_cast %66 : vector<8x8x8xf32> to vector<2x4x8x8xf32>
    %68 = tpu.transpose %67, [0, 2, 1, 3] : vector<2x4x8x8xf32> -> vector<2x8x4x8xf32>
    %69 = vector.shape_cast %68 : vector<2x8x4x8xf32> to vector<16x32xf32>
    %cst_25 = arith.constant dense<0.000000e+00> : vector<16x32xf32>
    %70 = tpu.matmul %69, %4, %cst_25 {dimension_numbers = #tpu.dot_dimension_numbers<[1], [0], [0], [1], [0, 0, 1, 1], [], []>, precision = #tpu.contract_precision<fp32>} : vector<16x32xf32>, vector<32x32xf32>, vector<16x32xf32> -> vector<16x32xf32>
    %71 = arith.addf %0, %70 : vector<16x32xf32>
    %72 = vector.broadcast %16 : vector<1x32xf32> to vector<16x32xf32>
    %73 = arith.addf %71, %72 : vector<16x32xf32>
    %cst_26 = arith.constant dense<0.000000e+00> : vector<16xf32>
    %74 = vector.multi_reduction <add>, %73, %cst_26 [1] : vector<16x32xf32> to vector<16xf32>
    %75 = vector.shape_cast %74 : vector<16xf32> to vector<16x1xf32>
    %cst_27 = arith.constant 3.200000e+01 : f32
    %76 = vector.broadcast %cst_27 : f32 to vector<16x1xf32>
    %77 = arith.divf %75, %76 : vector<16x1xf32>
    %78 = vector.broadcast %77 : vector<16x1xf32> to vector<16x32xf32>
    %79 = arith.subf %73, %78 : vector<16x32xf32>
    %80 = arith.mulf %79, %79 : vector<16x32xf32>
    %cst_28 = arith.constant dense<0.000000e+00> : vector<16xf32>
    %81 = vector.multi_reduction <add>, %80, %cst_28 [1] : vector<16x32xf32> to vector<16xf32>
    %82 = vector.shape_cast %81 : vector<16xf32> to vector<16x1xf32>
    %cst_29 = arith.constant 3.200000e+01 : f32
    %83 = vector.broadcast %cst_29 : f32 to vector<16x1xf32>
    %84 = arith.divf %82, %83 : vector<16x1xf32>
    %85 = vector.broadcast %77 : vector<16x1xf32> to vector<16x32xf32>
    %86 = arith.subf %73, %85 : vector<16x32xf32>
    %cst_30 = arith.constant 9.99999974E-6 : f32
    %87 = vector.broadcast %cst_30 : f32 to vector<16x1xf32>
    %88 = arith.addf %84, %87 : vector<16x1xf32>
    %89 = math.rsqrt %88 : vector<16x1xf32>
    %90 = vector.broadcast %89 : vector<16x1xf32> to vector<16x32xf32>
    %91 = arith.mulf %86, %90 : vector<16x32xf32>
    %92 = vector.broadcast %13 : vector<1x32xf32> to vector<16x32xf32>
    %93 = arith.mulf %91, %92 : vector<16x32xf32>
    %94 = vector.broadcast %14 : vector<1x32xf32> to vector<16x32xf32>
    %95 = arith.addf %93, %94 : vector<16x32xf32>
    %cst_31 = arith.constant dense<0.000000e+00> : vector<16x64xf32>
    %96 = tpu.matmul %95, %6, %cst_31 {dimension_numbers = #tpu.dot_dimension_numbers<[1], [0], [0], [1], [0, 0, 1, 1], [], []>, precision = #tpu.contract_precision<fp32>} : vector<16x32xf32>, vector<32x64xf32>, vector<16x64xf32> -> vector<16x64xf32>
    %97 = vector.broadcast %17 : vector<1x64xf32> to vector<16x64xf32>
    %98 = arith.addf %96, %97 : vector<16x64xf32>
    %cst_32 = arith.constant 5.000000e-01 : f32
    %99 = vector.broadcast %cst_32 : f32 to vector<16x64xf32>
    %100 = arith.mulf %99, %98 : vector<16x64xf32>
    %cst_33 = arith.constant 4.471500e-02 : f32
    %101 = vector.broadcast %cst_33 : f32 to vector<16x64xf32>
    %102 = arith.mulf %101, %98 : vector<16x64xf32>
    %103 = arith.mulf %102, %98 : vector<16x64xf32>
    %104 = arith.mulf %103, %98 : vector<16x64xf32>
    %105 = arith.addf %98, %104 : vector<16x64xf32>
    %cst_34 = arith.constant 0.797884583 : f32
    %106 = vector.broadcast %cst_34 : f32 to vector<16x64xf32>
    %107 = arith.mulf %106, %105 : vector<16x64xf32>
    %108 = math.tanh %107 : vector<16x64xf32>
    %cst_35 = arith.constant 1.000000e+00 : f32
    %109 = vector.broadcast %cst_35 : f32 to vector<16x64xf32>
    %110 = arith.addf %109, %108 : vector<16x64xf32>
    %111 = arith.mulf %100, %110 : vector<16x64xf32>
    %cst_36 = arith.constant dense<0.000000e+00> : vector<16x32xf32>
    %112 = tpu.matmul %111, %8, %cst_36 {dimension_numbers = #tpu.dot_dimension_numbers<[1], [0], [0], [1], [0, 0, 1, 1], [], []>, precision = #tpu.contract_precision<fp32>} : vector<16x64xf32>, vector<64x32xf32>, vector<16x32xf32> -> vector<16x32xf32>
    %113 = arith.addf %73, %112 : vector<16x32xf32>
    %114 = vector.broadcast %18 : vector<1x32xf32> to vector<16x32xf32>
    %115 = arith.addf %113, %114 : vector<16x32xf32>
    %c1 = arith.constant 1 : index
    %c0_37 = arith.constant 0 : index
    %c0_38 = arith.constant 0 : index
    %116 = vector.load %arg1[%c1, %c0_37, %c0_38] : memref<2x32x96xf32, #tpu.memory_space<vmem>>, vector<1x32x96xf32>
    %117 = vector.shape_cast %116 : vector<1x32x96xf32> to vector<32x96xf32>
    %c1_39 = arith.constant 1 : index
    %c0_40 = arith.constant 0 : index
    %c0_41 = arith.constant 0 : index
    %118 = vector.load %arg2[%c1_39, %c0_40, %c0_41] : memref<2x32x32xf32, #tpu.memory_space<vmem>>, vector<1x32x32xf32>
    %119 = vector.shape_cast %118 : vector<1x32x32xf32> to vector<32x32xf32>
    %c1_42 = arith.constant 1 : index
    %c0_43 = arith.constant 0 : index
    %c0_44 = arith.constant 0 : index
    %120 = vector.load %arg3[%c1_42, %c0_43, %c0_44] : memref<2x32x64xf32, #tpu.memory_space<vmem>>, vector<1x32x64xf32>
    %121 = vector.shape_cast %120 : vector<1x32x64xf32> to vector<32x64xf32>
    %c1_45 = arith.constant 1 : index
    %c0_46 = arith.constant 0 : index
    %c0_47 = arith.constant 0 : index
    %122 = vector.load %arg4[%c1_45, %c0_46, %c0_47] : memref<2x64x32xf32, #tpu.memory_space<vmem>>, vector<1x64x32xf32>
    %123 = vector.shape_cast %122 : vector<1x64x32xf32> to vector<64x32xf32>
    %c1_48 = arith.constant 1 : index
    %c0_49 = arith.constant 0 : index
    %c0_50 = arith.constant 0 : index
    %124 = vector.load %arg5[%c1_48, %c0_49, %c0_50] : memref<2x8x128xf32, #tpu.memory_space<vmem>>, vector<1x8x128xf32>
    %125 = vector.shape_cast %124 : vector<1x8x128xf32> to vector<8x128xf32>
    %126 = vector.extract_strided_slice %125 {offsets = [0, 0], sizes = [1, 32], strides = [1, 1]} : vector<8x128xf32> to vector<1x32xf32>
    %127 = vector.extract_strided_slice %125 {offsets = [1, 0], sizes = [1, 32], strides = [1, 1]} : vector<8x128xf32> to vector<1x32xf32>
    %128 = vector.extract_strided_slice %125 {offsets = [2, 0], sizes = [1, 32], strides = [1, 1]} : vector<8x128xf32> to vector<1x32xf32>
    %129 = vector.extract_strided_slice %125 {offsets = [3, 0], sizes = [1, 32], strides = [1, 1]} : vector<8x128xf32> to vector<1x32xf32>
    %130 = vector.extract_strided_slice %125 {offsets = [4, 0], sizes = [1, 96], strides = [1, 1]} : vector<8x128xf32> to vector<1x96xf32>
    %131 = vector.extract_strided_slice %125 {offsets = [5, 0], sizes = [1, 32], strides = [1, 1]} : vector<8x128xf32> to vector<1x32xf32>
    %132 = vector.extract_strided_slice %125 {offsets = [6, 0], sizes = [1, 64], strides = [1, 1]} : vector<8x128xf32> to vector<1x64xf32>
    %133 = vector.extract_strided_slice %125 {offsets = [7, 0], sizes = [1, 32], strides = [1, 1]} : vector<8x128xf32> to vector<1x32xf32>
    %cst_51 = arith.constant dense<0.000000e+00> : vector<16xf32>
    %134 = vector.multi_reduction <add>, %115, %cst_51 [1] : vector<16x32xf32> to vector<16xf32>
    %135 = vector.shape_cast %134 : vector<16xf32> to vector<16x1xf32>
    %cst_52 = arith.constant 3.200000e+01 : f32
    %136 = vector.broadcast %cst_52 : f32 to vector<16x1xf32>
    %137 = arith.divf %135, %136 : vector<16x1xf32>
    %138 = vector.broadcast %137 : vector<16x1xf32> to vector<16x32xf32>
    %139 = arith.subf %115, %138 : vector<16x32xf32>
    %140 = arith.mulf %139, %139 : vector<16x32xf32>
    %cst_53 = arith.constant dense<0.000000e+00> : vector<16xf32>
    %141 = vector.multi_reduction <add>, %140, %cst_53 [1] : vector<16x32xf32> to vector<16xf32>
    %142 = vector.shape_cast %141 : vector<16xf32> to vector<16x1xf32>
    %cst_54 = arith.constant 3.200000e+01 : f32
    %143 = vector.broadcast %cst_54 : f32 to vector<16x1xf32>
    %144 = arith.divf %142, %143 : vector<16x1xf32>
    %145 = vector.broadcast %137 : vector<16x1xf32> to vector<16x32xf32>
    %146 = arith.subf %115, %145 : vector<16x32xf32>
    %cst_55 = arith.constant 9.99999974E-6 : f32
    %147 = vector.broadcast %cst_55 : f32 to vector<16x1xf32>
    %148 = arith.addf %144, %147 : vector<16x1xf32>
    %149 = math.rsqrt %148 : vector<16x1xf32>
    %150 = vector.broadcast %149 : vector<16x1xf32> to vector<16x32xf32>
    %151 = arith.mulf %146, %150 : vector<16x32xf32>
    %152 = vector.broadcast %126 : vector<1x32xf32> to vector<16x32xf32>
    %153 = arith.mulf %151, %152 : vector<16x32xf32>
    %154 = vector.broadcast %127 : vector<1x32xf32> to vector<16x32xf32>
    %155 = arith.addf %153, %154 : vector<16x32xf32>
    %cst_56 = arith.constant dense<0.000000e+00> : vector<16x96xf32>
    %156 = tpu.matmul %155, %117, %cst_56 {dimension_numbers = #tpu.dot_dimension_numbers<[1], [0], [0], [1], [0, 0, 1, 1], [], []>, precision = #tpu.contract_precision<fp32>} : vector<16x32xf32>, vector<32x96xf32>, vector<16x96xf32> -> vector<16x96xf32>
    %157 = vector.broadcast %130 : vector<1x96xf32> to vector<16x96xf32>
    %158 = arith.addf %156, %157 : vector<16x96xf32>
    %159 = vector.extract_strided_slice %158 {offsets = [0, 0], sizes = [16, 32], strides = [1, 1]} : vector<16x96xf32> to vector<16x32xf32>
    %160 = vector.shape_cast %159 : vector<16x32xf32> to vector<2x8x4x8xf32>
    %161 = vector.extract_strided_slice %158 {offsets = [0, 32], sizes = [16, 32], strides = [1, 1]} : vector<16x96xf32> to vector<16x32xf32>
    %162 = vector.shape_cast %161 : vector<16x32xf32> to vector<2x8x4x8xf32>
    %163 = vector.extract_strided_slice %158 {offsets = [0, 64], sizes = [16, 32], strides = [1, 1]} : vector<16x96xf32> to vector<16x32xf32>
    %164 = vector.shape_cast %163 : vector<16x32xf32> to vector<2x8x4x8xf32>
    %165 = tpu.transpose %160, [0, 2, 1, 3] : vector<2x8x4x8xf32> -> vector<2x4x8x8xf32>
    %166 = vector.shape_cast %165 : vector<2x4x8x8xf32> to vector<8x8x8xf32>
    %167 = tpu.transpose %162, [0, 2, 1, 3] : vector<2x8x4x8xf32> -> vector<2x4x8x8xf32>
    %168 = vector.shape_cast %167 : vector<2x4x8x8xf32> to vector<8x8x8xf32>
    %169 = tpu.transpose %164, [0, 2, 1, 3] : vector<2x8x4x8xf32> -> vector<2x4x8x8xf32>
    %170 = vector.shape_cast %169 : vector<2x4x8x8xf32> to vector<8x8x8xf32>
    "tpu.trace_start"() <{level = 10 : i32, message = "bqd,bkd->bqk"}> : () -> ()
    %cst_57 = arith.constant dense<0.000000e+00> : vector<8x8x8xf32>
    %171 = tpu.matmul %166, %168, %cst_57 {dimension_numbers = #tpu.dot_dimension_numbers<[2], [2], [1], [1], [0, 0, 0, 1, 1, 1], [0], [0]>, precision = #tpu.contract_precision<fp32>} : vector<8x8x8xf32>, vector<8x8x8xf32>, vector<8x8x8xf32> -> vector<8x8x8xf32>
    "tpu.trace_stop"() : () -> ()
    %cst_58 = arith.constant dense<0xFF800000> : vector<8x8xf32>
    %172 = vector.multi_reduction <maximumf>, %171, %cst_58 [2] : vector<8x8x8xf32> to vector<8x8xf32>
    %173 = vector.shape_cast %172 : vector<8x8xf32> to vector<8x8x1xf32>
    %174 = vector.broadcast %173 : vector<8x8x1xf32> to vector<8x8x8xf32>
    %175 = arith.subf %171, %174 : vector<8x8x8xf32>
    %176 = math.exp %175 : vector<8x8x8xf32>
    %cst_59 = arith.constant dense<0.000000e+00> : vector<8x8xf32>
    %177 = vector.multi_reduction <add>, %176, %cst_59 [2] : vector<8x8x8xf32> to vector<8x8xf32>
    %178 = vector.shape_cast %177 : vector<8x8xf32> to vector<8x8x1xf32>
    %179 = vector.broadcast %178 : vector<8x8x1xf32> to vector<8x8x8xf32>
    %180 = arith.divf %176, %179 : vector<8x8x8xf32>
    "tpu.trace_start"() <{level = 10 : i32, message = "bqk,bkd->bqd"}> : () -> ()
    %cst_60 = arith.constant dense<0.000000e+00> : vector<8x8x8xf32>
    %181 = tpu.matmul %180, %170, %cst_60 {dimension_numbers = #tpu.dot_dimension_numbers<[2], [1], [1], [2], [0, 0, 0, 1, 1, 2], [0], [0]>, precision = #tpu.contract_precision<fp32>} : vector<8x8x8xf32>, vector<8x8x8xf32>, vector<8x8x8xf32> -> vector<8x8x8xf32>
    "tpu.trace_stop"() : () -> ()
    %182 = vector.shape_cast %181 : vector<8x8x8xf32> to vector<2x4x8x8xf32>
    %183 = tpu.transpose %182, [0, 2, 1, 3] : vector<2x4x8x8xf32> -> vector<2x8x4x8xf32>
    %184 = vector.shape_cast %183 : vector<2x8x4x8xf32> to vector<16x32xf32>
    %cst_61 = arith.constant dense<0.000000e+00> : vector<16x32xf32>
    %185 = tpu.matmul %184, %119, %cst_61 {dimension_numbers = #tpu.dot_dimension_numbers<[1], [0], [0], [1], [0, 0, 1, 1], [], []>, precision = #tpu.contract_precision<fp32>} : vector<16x32xf32>, vector<32x32xf32>, vector<16x32xf32> -> vector<16x32xf32>
    %186 = arith.addf %115, %185 : vector<16x32xf32>
    %187 = vector.broadcast %131 : vector<1x32xf32> to vector<16x32xf32>
    %188 = arith.addf %186, %187 : vector<16x32xf32>
    %cst_62 = arith.constant dense<0.000000e+00> : vector<16xf32>
    %189 = vector.multi_reduction <add>, %188, %cst_62 [1] : vector<16x32xf32> to vector<16xf32>
    %190 = vector.shape_cast %189 : vector<16xf32> to vector<16x1xf32>
    %cst_63 = arith.constant 3.200000e+01 : f32
    %191 = vector.broadcast %cst_63 : f32 to vector<16x1xf32>
    %192 = arith.divf %190, %191 : vector<16x1xf32>
    %193 = vector.broadcast %192 : vector<16x1xf32> to vector<16x32xf32>
    %194 = arith.subf %188, %193 : vector<16x32xf32>
    %195 = arith.mulf %194, %194 : vector<16x32xf32>
    %cst_64 = arith.constant dense<0.000000e+00> : vector<16xf32>
    %196 = vector.multi_reduction <add>, %195, %cst_64 [1] : vector<16x32xf32> to vector<16xf32>
    %197 = vector.shape_cast %196 : vector<16xf32> to vector<16x1xf32>
    %cst_65 = arith.constant 3.200000e+01 : f32
    %198 = vector.broadcast %cst_65 : f32 to vector<16x1xf32>
    %199 = arith.divf %197, %198 : vector<16x1xf32>
    %200 = vector.broadcast %192 : vector<16x1xf32> to vector<16x32xf32>
    %201 = arith.subf %188, %200 : vector<16x32xf32>
    %cst_66 = arith.constant 9.99999974E-6 : f32
    %202 = vector.broadcast %cst_66 : f32 to vector<16x1xf32>
    %203 = arith.addf %199, %202 : vector<16x1xf32>
    %204 = math.rsqrt %203 : vector<16x1xf32>
    %205 = vector.broadcast %204 : vector<16x1xf32> to vector<16x32xf32>
    %206 = arith.mulf %201, %205 : vector<16x32xf32>
    %207 = vector.broadcast %128 : vector<1x32xf32> to vector<16x32xf32>
    %208 = arith.mulf %206, %207 : vector<16x32xf32>
    %209 = vector.broadcast %129 : vector<1x32xf32> to vector<16x32xf32>
    %210 = arith.addf %208, %209 : vector<16x32xf32>
    %cst_67 = arith.constant dense<0.000000e+00> : vector<16x64xf32>
    %211 = tpu.matmul %210, %121, %cst_67 {dimension_numbers = #tpu.dot_dimension_numbers<[1], [0], [0], [1], [0, 0, 1, 1], [], []>, precision = #tpu.contract_precision<fp32>} : vector<16x32xf32>, vector<32x64xf32>, vector<16x64xf32> -> vector<16x64xf32>
    %212 = vector.broadcast %132 : vector<1x64xf32> to vector<16x64xf32>
    %213 = arith.addf %211, %212 : vector<16x64xf32>
    %cst_68 = arith.constant 5.000000e-01 : f32
    %214 = vector.broadcast %cst_68 : f32 to vector<16x64xf32>
    %215 = arith.mulf %214, %213 : vector<16x64xf32>
    %cst_69 = arith.constant 4.471500e-02 : f32
    %216 = vector.broadcast %cst_69 : f32 to vector<16x64xf32>
    %217 = arith.mulf %216, %213 : vector<16x64xf32>
    %218 = arith.mulf %217, %213 : vector<16x64xf32>
    %219 = arith.mulf %218, %213 : vector<16x64xf32>
    %220 = arith.addf %213, %219 : vector<16x64xf32>
    %cst_70 = arith.constant 0.797884583 : f32
    %221 = vector.broadcast %cst_70 : f32 to vector<16x64xf32>
    %222 = arith.mulf %221, %220 : vector<16x64xf32>
    %223 = math.tanh %222 : vector<16x64xf32>
    %cst_71 = arith.constant 1.000000e+00 : f32
    %224 = vector.broadcast %cst_71 : f32 to vector<16x64xf32>
    %225 = arith.addf %224, %223 : vector<16x64xf32>
    %226 = arith.mulf %215, %225 : vector<16x64xf32>
    %cst_72 = arith.constant dense<0.000000e+00> : vector<16x32xf32>
    %227 = tpu.matmul %226, %123, %cst_72 {dimension_numbers = #tpu.dot_dimension_numbers<[1], [0], [0], [1], [0, 0, 1, 1], [], []>, precision = #tpu.contract_precision<fp32>} : vector<16x64xf32>, vector<64x32xf32>, vector<16x32xf32> -> vector<16x32xf32>
    %228 = arith.addf %188, %227 : vector<16x32xf32>
    %229 = vector.broadcast %133 : vector<1x32xf32> to vector<16x32xf32>
    %230 = arith.addf %228, %229 : vector<16x32xf32>
    %c0_73 = arith.constant 0 : index
    %c0_74 = arith.constant 0 : index
    %231 = vector.load %arg6[%c0_73, %c0_74] : memref<16x32xf32, #tpu.memory_space<vmem>>, vector<16x32xf32>
    tpu.vector_store %arg6[%c0_73, %c0_74], %230 {strides = array<i32>} : memref<16x32xf32, #tpu.memory_space<vmem>>, vector<16x32xf32>,
    return
  }
}

</mosaic_0001>

<bundles_post_ra>
// kernel: tpu_custom_call.1
= control target key start
LH: loop header
LB: loop body
LE: loop exit
PB: predicated region body
PF: predicated region fallthrough
CT: control target
= control target key end

     0   :  { %11 = vsyncpa [#allocation3], 0  ;;  %s27444_s0 = inlined_call_operand.hbm [shape: f32[16,32], index: 0, kind: input, shape index: {}]   ;;  %s27445_s1 = inlined_call_operand.vmem [shape: f32[2,32,96], index: 1, kind: input, shape index: {}]   ;;  %s27446_s2 = inlined_call_operand.vmem [shape: f32[2,32,32], index: 2, kind: input, shape index: {}]   ;;  %s27447_s3 = inlined_call_operand.vmem [shape: f32[2,32,64], index: 3, kind: input, shape index: {}]   ;;  %s27448_s4 = inlined_call_operand.vmem [shape: f32[2,64,32], index: 4, kind: input, shape index: {}]   ;;  %s27449_s5 = inlined_call_operand.vmem [shape: f32[2,8,128], index: 5, kind: input, shape index: {}]   ;;  %s27450_s6 = inlined_call_operand.hbm [shape: f32[16,32], index: 6, kind: output, shape index: {}]  }
   0x1   :  { %12 = vsyncpa [#allocation4], 0  ;;  %s25088_s21 = smov [#allocation2]   ;;  %s25040_s25 = scalar_lea.hbm %s27444_s0, 256 }
   0x2   :  { %s18_s22 = sshll.u32 %s25088_s21, 4  ;;  %p25041_p0 = scmp.ne.s32.totalorder %s27444_s0, %s25040_s25  ;;  %s19_s22 = int_to_ptr.vmem [resolvable:$true] %s18_s22 }
   0x3   :  { %p25044_p1 = scmp.lt.u32.totalorder %s25040_s25, %s27444_s0 }
   0x5   :  { %p25046_p2 = pnand %p25044_p1, %p25041_p0 }
   0x7   :  { %25049 = shalt.err (!%p25046_p2)
}
   0x8   :  { %s25050_s30 = scalar_lea.vmem %s19_s22, 256  ;;  %p25055_p4 = scmp.lt.s32.totalorder %s19_s22, %s19_s22 }
   0x9   :  { %p25051_p3 = scmp.ne.s32.totalorder %s19_s22, %s25050_s30  ;;  %p25056_p5 = scmp.lt.s32.totalorder %s25050_s30, %s25050_s30 }
   0xb   :  { %p25057_p6 = por %p25056_p5, %p25055_p4 }
   0xd   :  { %p25058_p7 = pnand %p25057_p6, %p25051_p3 }
   0xf   :  { %25061 = shalt.err (!%p25058_p7)
}
  0x10   :  { %s25089_s7 = smov 128   ;;  %s25090_s8 = smov 8  }
  0x11   :  { %24 = dma.hbm_to_vmem [thread:$0]  %s27444_s0, 256, %s19_s22, [#allocation3], %s25089_s7, %s25089_s7, %s25090_s8  }
  0x12   :  { %25084 = dma.done.wait [#allocation3], 256  }
  0x13   :  { %25085 = vsyncadd [#allocation3], 4294967040  ;;  %vm61_vm0 = vcmask 261120   ;;  %v38_v0 = vld [vmem:[#allocation2] sm:$0xff]  ;;  %v39_v1 = vld [vmem:[#allocation2 + $0x8] sm:$0xff]  ;;  %v89_v48 = vlaneseq  ;;  %s25091_s20 = smov 112  }
  0x14   :  { %v62_v2 = vsel %vm61_vm0, %v38_v0, 0.0  ;;  %v65_v3 = vsel %vm61_vm0, %v39_v1, 0.0  ;;  %v40_v14 = vld [vmem:[%s27445_s1] sm:$0xff]  ;;  %v41_v15 = vld [vmem:[%s27445_s1 + $0x8] sm:$0xff]  ;;  %v42_v16 = vld [vmem:[%s27445_s1 + $0x10] sm:$0xff]  ;;  %s25092_s21 = smov 120  }
  0x15   :  { %63 = vadd.xlane.f32.xlu0 %v62_v2  ;;  %v112_v17 = vand.u32 4294901760, %v40_v14  ;;  %v115_v18 = vand.u32 4294901760, %v41_v15  ;;  %v43_v19 = vld [vmem:[%s27445_s1 + $0x18] sm:$0xff]  ;;  %v118_v20 = vand.u32 4294901760, %v42_v16  ;;  %v25177_v52 = vshrl.u32 %v89_v48, 7  ;;  %v60_v55 = vld [vmem:[%s27449_s5] sm:$0xff] }
  0x16   :  { %v121_v21 = vand.u32 4294901760, %v43_v19  ;;  %s25093_s22 = smov 104   ;;  %s25094_s23 = smov 96   ;;  %v25097_v48 = vmov 0.0   ;;  %vm25098_vm1 = vmmov 0   ;;  %vm1523_vm2 = vcmask 64512  }
  0x17   :  { %v25169_v22 = vpack.c.bf16 %v115_v18, %v112_v17  ;;  %v202_v24 = vsub.f32 %v40_v14, %v112_v17  ;;  %v209_v25 = vsub.f32 %v41_v15, %v115_v18  ;;  %v216_v30 = vsub.f32 %v42_v16, %v118_v20  ;;  %22527 = vmatprep.subr.mxu1 %v25097_v48  ;;  %s25099_s24 = smov 64   ;;  %s25100_s25 = smov 16  }
  0x18   :  { %v25171_v23 = vpack.c.bf16 %v121_v21, %v118_v20  ;;  %v223_v31 = vsub.f32 %v43_v19, %v121_v21  ;;  %v91_v54 = vsub.s32 0, %v25177_v52  ;;  %v97_v56 = vsub.s32 1, %v25177_v52  ;;  %22529 = vmatprep.mubr.msk.f32.mxu1 %vm25098_vm1, %v25097_v48  ;;  %s25101_s26 = smov 24  }
  0x19   :  { %66 = vadd.xlane.f32.xlu0 %v65_v3  ;;  %24046 = vmatprep.subr.bf16.mxu0 %v25169_v22  ;;  %v203_v26 = vand.u32 4294901760, %v202_v24  ;;  %v210_v27 = vand.u32 4294901760, %v209_v25  ;;  %v217_v34 = vand.u32 4294901760, %v216_v30  ;;  %v24061_v42 = vpack.c.bf16 %v209_v25, %v202_v24 }
  0x1a   :  { %24048 = vmatpush3.bf16.msra.mxu0 %v25169_v22  ;;  %v224_v35 = vand.u32 4294901760, %v223_v31  ;;  %v24065_v43 = vpack.c.bf16 %v223_v31, %v216_v30  ;;  %v92_v57 = vrot.slane %v60_v55, %v91_v54  ;;  %v98_v60 = vrot.slane %v60_v55, %v97_v56 }
  0x1b   :  { %24050 = vmatprep.subr.bf16.mxu0 %v25171_v23  ;;  %v204_v28 = vsub.f32 %v202_v24, %v203_v26  ;;  %v211_v29 = vsub.f32 %v209_v25, %v210_v27  ;;  %v218_v37 = vsub.f32 %v216_v30, %v217_v34  ;;  %v24077_v44 = vpack.c.bf16 %v210_v27, %v203_v26 }
  0x1c   :  { %v225_v38 = vsub.f32 %v223_v31, %v224_v35  ;;  %v24081_v45 = vpack.c.bf16 %v224_v35, %v217_v34  ;;  %v25095_v21 = vmov 1983009808   ;;  %vm9118_vm3 = vcmask 130048  }
  0x1d   :  { %v205_v32 = vand.u32 4294901760, %v204_v28  ;;  %v212_v33 = vand.u32 4294901760, %v211_v29  ;;  %v219_v39 = vand.u32 4294901760, %v218_v37  ;;  %vm9121_vm4 = vcmask 195584  }
  0x1e   :  { %24052 = vmatpush3.bf16.msra.mxu0 %v25171_v23  ;;  %v226_v40 = vand.u32 4294901760, %v225_v38  ;;  %vm10260_vm5 = vcmask 523264  }
  0x1f   :  { %v24053_v36 = vpack.c.bf16 %v212_v33, %v205_v32 }
  0x20   :  { %v24057_v41 = vpack.c.bf16 %v226_v40, %v219_v39 }
  0x21   :  { %24054 = vmatprep.subr.bf16.mxu0 %v24053_v36 }
  0xa2   :  { %v64_v4 = vpop.xlane.xlu0 %63 }
  0xa3   :  { %v69_v5 = vmul.f32 0.03125, %v64_v4 }
  0xa5   :  { %v71_v6 = vsub.f32 %v38_v0, %v69_v5 }
  0xa6   :  { %v67_v7 = vpop.xlane.xlu0 %66 }
  0xa7   :  { %v70_v8 = vmul.f32 0.03125, %v67_v7  ;;  %v73_v9 = vmul.f32 %v71_v6, %v71_v6 }
  0xa9   :  { %v72_v10 = vsub.f32 %v39_v1, %v70_v8  ;;  %v75_v11 = vsel %vm61_vm0, %v73_v9, 0.0 }
  0xaa   :  { %76 = vadd.xlane.f32.xlu1 %v75_v11 }
  0xab   :  { %v74_v12 = vmul.f32 %v72_v10, %v72_v10 }
  0xad   :  { %v78_v13 = vsel %vm61_vm0, %v74_v12, 0.0 }
  0xae   :  { %79 = vadd.xlane.f32.xlu1 %v78_v13 }
 0x137   :  { %v77_v46 = vpop.xlane.xlu1 %76 }
 0x138   :  { %v81_v47 = vmul.f32 0.03125, %v77_v46 }
 0x13a   :  { %v83_v49 = vadd.f32 1e-05, %v81_v47 }
 0x13b   :  { %v80_v50 = vpop.xlane.xlu1 %79 }
 0x13c   :  { %24948 = vrsqrt.f32 %v83_v49  ;;  %v82_v51 = vmul.f32 0.03125, %v80_v50 }
 0x13e   :  { %v84_v53 = vadd.f32 1e-05, %v82_v51 }
 0x140   :  { %24950 = vrsqrt.f32 %v84_v53 }
 0x146   :  { %v24949_v58 = vpop.eup %24948 }
 0x147   :  { %v87_v59 = vmul.f32 %v24949_v58, %v71_v6 }
 0x149   :  { %v93_v61 = vmul.f32 %v92_v57, %v87_v59 }
 0x14a   :  { %v24951_v62 = vpop.eup %24950 }
 0x14b   :  { %v88_v63 = vmul.f32 %v24951_v62, %v72_v10  ;;  %v99_v0 = vadd.f32 %v98_v60, %v93_v61  ;;  %v103_v10 = vsub.s32 4, %v25177_v52 }
 0x14d   :  { %v106_v1 = vsel %vm61_vm0, %v99_v0, 0  ;;  %v94_v2 = vmul.f32 %v92_v57, %v88_v63  ;;  %v104_v16 = vrot.slane %v60_v55, %v103_v10 }
 0x14e   :  { %v180_v3 = vand.u32 4294901760, %v106_v1 }
 0x14f   :  { %v100_v4 = vadd.f32 %v98_v60, %v94_v2 }
 0x150   :  { %v181_v5 = vsub.f32 %v106_v1, %v180_v3 }
 0x151   :  { %v109_v7 = vsel %vm61_vm0, %v100_v4, 0 }
 0x152   :  { %v182_v8 = vand.u32 4294901760, %v181_v5  ;;  %v190_v9 = vand.u32 4294901760, %v109_v7 }
 0x154   :  { %v183_v11 = vsub.f32 %v181_v5, %v182_v8  ;;  %v191_v12 = vsub.f32 %v109_v7, %v190_v9 }
 0x156   :  { %v184_v6 = vand.u32 4294901760, %v183_v11  ;;  %v192_v13 = vand.u32 4294901760, %v191_v12 }
 0x158   :  { %22469 = vmatprep.mubr.f32.mxu0 %v184_v6  ;;  %v193_v14 = vsub.f32 %v191_v12, %v192_v13 }
 0x15a   :  { %v194_v15 = vand.u32 4294901760, %v193_v14 }
 0x15c   :  { %22470 = vmatmul.mubr.f32.vlgmr.msra.gmra.mrb[0].mxu0 %v194_v15 }
 0x15d   :  { %24056 = vmatpush3.bf16.msra.mxu0 %v24053_v36  ;;  %22480 = vmatprep.mubr.f32.mxu0 %v180_v3 }
 0x15e   :  { %24058 = vmatprep.subr.bf16.mxu0 %v24057_v41 }
 0x161   :  { %24060 = vmatpush3.bf16.msra.mxu0 %v24057_v41 }
 0x162   :  { %24062 = vmatprep.subr.bf16.mxu0 %v24061_v42 }
 0x164   :  { %22481 = vmatmul.mubr.f32.vlgmr.msra.gmra.mrb[0].mxu0 %v190_v9 }
 0x165   :  { %24064 = vmatpush3.bf16.msra.mxu0 %v24061_v42  ;;  %22491 = vmatprep.mubr.f32.mxu0 %v181_v5 }
 0x166   :  { %24066 = vmatprep.subr.bf16.mxu0 %v24065_v43 }
 0x169   :  { %24068 = vmatpush3.bf16.msra.mxu0 %v24065_v43 }
 0x16a   :  { %24070 = vmatprep.subr.bf16.mxu0 %v25169_v22 }
 0x16c   :  { %22492 = vmatmul.mubr.f32.vlgmr.msra.gmra.mrb[0].mxu0 %v191_v12 }
 0x16d   :  { %24072 = vmatpush3.bf16.msra.mxu0 %v25169_v22  ;;  %22502 = vmatprep.mubr.f32.mxu0 %v182_v8 }
 0x16e   :  { %24074 = vmatprep.subr.bf16.mxu0 %v25171_v23 }
 0x171   :  { %24076 = vmatpush3.bf16.msra.mxu0 %v25171_v23 }
 0x172   :  { %24078 = vmatprep.subr.bf16.mxu0 %v24077_v44 }
 0x174   :  { %22503 = vmatmul.mubr.f32.vlgmr.msra.gmra.mrb[0].mxu0 %v192_v13 }
 0x175   :  { %24080 = vmatpush3.bf16.msra.mxu0 %v24077_v44  ;;  %22513 = vmatprep.mubr.f32.mxu0 %v180_v3 }
 0x176   :  { %24082 = vmatprep.subr.bf16.mxu0 %v24081_v45 }
 0x179   :  { %24084 = vmatpush3.bf16.msra.mxu0 %v24081_v45 }
 0x17a   :  { %24086 = vmatprep.subr.bf16.mxu0 %v25169_v22 }
 0x17c   :  { %22514 = vmatmul.mubr.f32.vlgmr.msra.gmra.mrb[0].mxu0 %v190_v9 }
 0x17d   :  { %24088 = vmatpush3.bf16.msra.mxu0 %v25169_v22  ;;  %22524 = vmatprep.mubr.f32.mxu0 %v180_v3  ;;  %v662_v22 = vunpack.c.l.s4 %v25095_v21 }
 0x17e   :  { %24090 = vmatprep.subr.bf16.mxu0 %v25171_v23 }
 0x17f   :  { %v663_v25 = vunpack.c.0.s8 %v662_v22 }
 0x181   :  { %24092 = vmatpush3.bf16.msra.mxu0 %v25171_v23  ;;  %v25096_v23 = vmov 1934713408   ;;  %v25222_v29 = vsub.s32 %v663_v25, %v25177_v52 }
 0x182   :  { %v694_v24 = vunpack.c.l.s4 %v25096_v23  ;;  %22587 = vmatprep.subr.mxu0 %v25097_v48 }
 0x184   :  { %22525 = vmatmul.mubr.f32.vlgmr.msra.gmra.mrb[0].mxu0 %v190_v9  ;;  %v695_v28 = vunpack.c.0.s8 %v694_v24 }
 0x185   :  { %22589 = vmatprep.mubr.msk.f32.mxu0 %vm25098_vm1, %v25097_v48 }
 0x186   :  { %v25239_v35 = vsub.s32 %v695_v28, %v25177_v52 }
 0x257   :  { %v22526_v17 = vpop.f32.mrb[0].mxu0 }
 0x258   :  { %v25201_v18 = vadd.f32 %v22526_v17, %v104_v16  ;;  %v629_v19 = vpop.f32.mrb[1].mxu0 }
 0x259   :  { %v25203_v20 = vadd.f32 %v629_v19, %v104_v16 }
 0x25b   :  { %647 = vrot.lane.b32.xlu1 %v25203_v20, %s25091_s20  ;;  %641 = vrot.lane.b32.xlu0 %v25203_v20, %s25092_s21 }
 0x25f   :  { %653 = vrot.lane.b32.xlu1 %v25203_v20, %s25093_s22 }
 0x263   :  { %795 = vrot.lane.b32.xlu1 %v25203_v20, %s25094_s23 }
 0x2cd   :  { %v25213_v26 = vpop.permute.xlu1 %647  ;;  %v25215_v27 = vpop.permute.xlu0 %641 }
 0x2ce   :  { %803 = vrot.lane.b32.xlu1 %v25213_v26, %s25094_s23  ;;  %799 = vrot.lane.b32.xlu0 %v25215_v27, %s25094_s23  ;;  %v659_v30 = vcombine.low %v25203_v20, %v25213_v26  ;;  %v660_v31 = vcombine.high %v25203_v20, %v25213_v26 }
 0x2d0   :  { %v667_v36 = vrot.slane %v659_v30, %v25222_v29  ;;  %v674_v37 = vrot.slane %v660_v31, %v25222_v29 }
 0x2d1   :  { %v25228_v32 = vpop.permute.xlu1 %653 }
 0x2d2   :  { %v675_v33 = vcombine.low %v25215_v27, %v25228_v32  ;;  %v676_v34 = vcombine.high %v25215_v27, %v25228_v32  ;;  %643 = vrot.lane.b32.xlu1 %v25201_v18, %s25092_s21  ;;  %807 = vrot.lane.b32.xlu0 %v25228_v32, %s25094_s23 }
 0x2d4   :  { %v683_v38 = vrot.slane %v675_v33, %v25222_v29  ;;  %v690_v39 = vrot.slane %v676_v34, %v25222_v29 }
 0x2d5   :  { %v796_v3 = vpop.permute.xlu1 %795 }
 0x2d6   :  { %v691_v40 = vcombine.low %v667_v36, %v683_v38  ;;  %v692_v41 = vcombine.high %v667_v36, %v683_v38  ;;  %v707_v42 = vcombine.low %v674_v37, %v690_v39  ;;  %v708_v43 = vcombine.high %v674_v37, %v690_v39  ;;  %655 = vrot.lane.b32.xlu1 %v25201_v18, %s25093_s22 }
 0x2d7   :  { %649 = vrot.lane.b32.xlu0 %v25201_v18, %s25091_s20 }
 0x2d8   :  { %v699_v44 = vrot.slane %v691_v40, %v25239_v35  ;;  %v706_v45 = vrot.slane %v692_v41, %v25239_v35  ;;  %v715_v46 = vrot.slane %v707_v42, %v25239_v35  ;;  %v722_v47 = vrot.slane %v708_v43, %v25239_v35 }
 0x2da   :  { %v1115_v49 = vcombine.low %v699_v44, %v706_v45  ;;  %v21688_v50 = vcombine.high %v699_v44, %v706_v45  ;;  %v1131_v51 = vcombine.low %v715_v46, %v722_v47  ;;  %v21689_v53 = vcombine.high %v715_v46, %v722_v47 }
 0x2db   :  { %797 = vrot.lane.b32.xlu0 %v25201_v18, %s25094_s23 }
 0x2dc   :  { %v1122_v55 = vrot.slane %v1115_v49, %v25222_v29  ;;  %v1130_v57 = vrot.slane %v21688_v50, %v25222_v29  ;;  %v1138_v58 = vrot.slane %v1131_v51, %v25222_v29  ;;  %v1146_v59 = vrot.slane %v21689_v53, %v25222_v29 }
 0x2de   :  { %v1148_v60 = vcombine.high %v1122_v55, %v1130_v57  ;;  %v1164_v61 = vcombine.high %v1138_v58, %v1146_v59  ;;  %v1147_v1 = vcombine.low %v1122_v55, %v1130_v57  ;;  %v1163_v2 = vcombine.low %v1138_v58, %v1146_v59 }
 0x2e0   :  { %v25266_v62 = vrot.slane %v1148_v60, %v25239_v35  ;;  %v25269_v63 = vrot.slane %v1164_v61, %v25239_v35  ;;  %v25274_v4 = vrot.slane %v1147_v1, %v25239_v35  ;;  %v25277_v5 = vrot.slane %v1163_v2, %v25239_v35 }
 0x2e2   :  { %v1182_v0 = vcombine.high %v25266_v62, %v25269_v63  ;;  %v1179_v9 = vcombine.low %v25274_v4, %v25277_v5  ;;  %v1181_v11 = vcombine.low %v25266_v62, %v25269_v63 }
 0x2e4   :  { %v1525_v17 = vsel %vm1523_vm2, %v1179_v9, 0  ;;  %v2429_v19 = vsel %vm1523_vm2, %v1181_v11, 0 }
 0x2e5   :  { %v25301_v36 = vand.u32 4294901760, %v1525_v17  ;;  %v25303_v37 = vand.u32 4294901760, %v2429_v19 }
 0x2e7   :  { %v25310_v46 = vsub.f32 %v1525_v17, %v25301_v36  ;;  %v25313_v47 = vsub.f32 %v2429_v19, %v25303_v37 }
 0x2e9   :  { %v1598_v60 = vand.u32 4294901760, %v25310_v46  ;;  %v2502_v61 = vand.u32 4294901760, %v25313_v47 }
 0x340   :  { %v804_v7 = vpop.permute.xlu1 %803  ;;  %v800_v8 = vpop.permute.xlu0 %799 }
 0x341   :  { %v819_v12 = vcombine.low %v796_v3, %v804_v7  ;;  %v820_v6 = vcombine.high %v796_v3, %v804_v7 }
 0x343   :  { %v827_v21 = vrot.slane %v819_v12, %v25222_v29  ;;  %v834_v22 = vrot.slane %v820_v6, %v25222_v29 }
 0x344   :  { %v25283_v13 = vpop.permute.xlu1 %643  ;;  %v808_v14 = vpop.permute.xlu0 %807 }
 0x345   :  { %v835_v15 = vcombine.low %v800_v8, %v808_v14  ;;  %v836_v16 = vcombine.high %v800_v8, %v808_v14  ;;  %801 = vrot.lane.b32.xlu1 %v25283_v13, %s25094_s23  ;;  %v1599_v14 = vsub.f32 %v25310_v46, %v1598_v60 }
 0x347   :  { %v843_v23 = vrot.slane %v835_v15, %v25222_v29  ;;  %v850_v24 = vrot.slane %v836_v16, %v25222_v29  ;;  %v2503_v15 = vsub.f32 %v25313_v47, %v2502_v61 }
 0x348   :  { %v25293_v25 = vpop.permute.xlu1 %655 }
 0x349   :  { %v851_v28 = vcombine.low %v827_v21, %v843_v23  ;;  %v852_v30 = vcombine.high %v827_v21, %v843_v23  ;;  %v867_v31 = vcombine.low %v834_v22, %v850_v24  ;;  %v868_v33 = vcombine.high %v834_v22, %v850_v24  ;;  %v25295_v34 = vpop.permute.xlu0 %649  ;;  %809 = vrot.lane.b32.xlu1 %v25293_v25, %s25094_s23 }
 0x34a   :  { %805 = vrot.lane.b32.xlu0 %v25295_v34, %s25094_s23  ;;  %v1600_v22 = vand.u32 4294901760, %v1599_v14  ;;  %v2504_v23 = vand.u32 4294901760, %v2503_v15 }
 0x34b   :  { %v859_v38 = vrot.slane %v851_v28, %v25239_v35  ;;  %v866_v39 = vrot.slane %v852_v30, %v25239_v35  ;;  %v875_v40 = vrot.slane %v867_v31, %v25239_v35  ;;  %v882_v41 = vrot.slane %v868_v33, %v25239_v35 }
 0x34d   :  { %v1251_v42 = vcombine.low %v859_v38, %v866_v39  ;;  %v21692_v43 = vcombine.high %v859_v38, %v866_v39  ;;  %v1267_v44 = vcombine.low %v875_v40, %v882_v41  ;;  %v21693_v45 = vcombine.high %v875_v40, %v882_v41 }
 0x34e   :  { %v1180_v39 = vcombine.high %v25274_v4, %v25277_v5 }
 0x34f   :  { %v1258_v49 = vrot.slane %v1251_v42, %v25222_v29  ;;  %v1266_v50 = vrot.slane %v21692_v43, %v25222_v29  ;;  %v1274_v51 = vrot.slane %v1267_v44, %v25222_v29  ;;  %v1282_v53 = vrot.slane %v21693_v45, %v25222_v29 }
 0x350   :  { %v1977_v41 = vsel %vm1523_vm2, %v1180_v39, 0 }
 0x351   :  { %v1283_v55 = vcombine.low %v1258_v49, %v1266_v50  ;;  %v1284_v57 = vcombine.high %v1258_v49, %v1266_v50  ;;  %v1299_v58 = vcombine.low %v1274_v51, %v1282_v53  ;;  %v1300_v59 = vcombine.high %v1274_v51, %v1282_v53 }
 0x352   :  { %v25368_v43 = vand.u32 4294901760, %v1977_v41  ;;  %v727_v53 = vcombine.low %v25201_v18, %v25295_v34 }
 0x353   :  { %v1291_v1 = vrot.slane %v1283_v55, %v25239_v35  ;;  %v1307_v2 = vrot.slane %v1299_v58, %v25239_v35  ;;  %v25324_v3 = vrot.slane %v1284_v57, %v25239_v35  ;;  %v25327_v7 = vrot.slane %v1300_v59, %v25239_v35 }
 0x354   :  { %v2049_v5 = vsub.f32 %v1977_v41, %v25368_v43  ;;  %v728_v55 = vcombine.high %v25201_v18, %v25295_v34  ;;  %v2881_v57 = vsel %vm1523_vm2, %v1182_v0, 0 }
 0x355   :  { %v1315_v8 = vcombine.low %v1291_v1, %v1307_v2  ;;  %v1317_v9 = vcombine.low %v25324_v3, %v25327_v7  ;;  %v1318_v11 = vcombine.high %v25324_v3, %v25327_v7  ;;  %v1316_v40 = vcombine.high %v1291_v1, %v1307_v2 }
 0x356   :  { %v2050_v45 = vand.u32 4294901760, %v2049_v5  ;;  %v25421_v62 = vand.u32 4294901760, %v2881_v57 }
 0x357   :  { %v1528_v12 = vsel %vm1523_vm2, %v1315_v8, 0  ;;  %v2432_v6 = vsel %vm1523_vm2, %v1317_v9, 0  ;;  %v1980_v42 = vsel %vm1523_vm2, %v1316_v40, 0  ;;  %v2884_v1 = vsel %vm1523_vm2, %v1318_v11, 0 }
 0x358   :  { %v1531_v16 = vand.u32 4294901760, %v1528_v12  ;;  %v2435_v17 = vand.u32 4294901760, %v2432_v6  ;;  %v1983_v4 = vand.u32 4294901760, %v1980_v42  ;;  %v25424_v9 = vand.u32 4294901760, %v2884_v1 }
 0x35a   :  { %22528 = vmatpush3.xpose.msra.mxu1 %v1531_v16  ;;  %v1608_v19 = vsub.f32 %v1528_v12, %v1531_v16  ;;  %22588 = vmatpush3.xpose.msra.mxu0 %v2435_v17  ;;  %v2512_v21 = vsub.f32 %v2432_v6, %v2435_v17  ;;  %v2060_v44 = vsub.f32 %v1980_v42, %v1983_v4 }
 0x35b   :  { %22532 = vmatprep.subr.mxu1 %v25097_v48  ;;  %22592 = vmatprep.subr.mxu0 %v25097_v48  ;;  %v25427_v12 = vsub.f32 %v2881_v57, %v25421_v62  ;;  %v25434_v14 = vsub.f32 %v2884_v1, %v25424_v9 }
 0x35c   :  { %v1609_v24 = vand.u32 4294901760, %v1608_v19  ;;  %v2513_v28 = vand.u32 4294901760, %v2512_v21 }
 0x35d   :  { %22530 = vmatmul.mubr.f32.vlgmr.msra.gmra.mrb[0].mxu1 %v1600_v22  ;;  %22590 = vmatmul.mubr.f32.vlgmr.msra.gmra.mrb[2].mxu0 %v2504_v23  ;;  %v2954_v15 = vand.u32 4294901760, %v25427_v12  ;;  %v2965_v22 = vand.u32 4294901760, %v25434_v14 }
 0x35e   :  { %v1610_v30 = vsub.f32 %v1608_v19, %v1609_v24  ;;  %v2514_v31 = vsub.f32 %v2512_v21, %v2513_v28  ;;  %22534 = vmatprep.mubr.msk.f32.mxu1 %vm25098_vm1, %v25097_v48  ;;  %22594 = vmatprep.mubr.msk.f32.mxu0 %vm25098_vm1, %v25097_v48 }
 0x35f   :  { %v2955_v23 = vsub.f32 %v25427_v12, %v2954_v15 }
 0x360   :  { %v1611_v33 = vand.u32 4294901760, %v1610_v30  ;;  %v2515_v38 = vand.u32 4294901760, %v2514_v31 }
 0x361   :  { %v2956_v40 = vand.u32 4294901760, %v2955_v23 }
 0x362   :  { %22533 = vmatpush3.xpose.msra.mxu1 %v1611_v33  ;;  %22593 = vmatpush3.xpose.msra.mxu0 %v2515_v38  ;;  %v2966_v33 = vsub.f32 %v25434_v14, %v2965_v22 }
 0x363   :  { %22537 = vmatprep.subr.mxu1 %v25097_v48  ;;  %22597 = vmatprep.subr.mxu0 %v25097_v48 }
 0x364   :  { %v2967_v41 = vand.u32 4294901760, %v2966_v33 }
 0x365   :  { %22535 = vmatmul.mubr.f32.vlgmr.msra.gmra.mrb[0].mxu1 %v25301_v36  ;;  %22595 = vmatmul.mubr.f32.vlgmr.msra.gmra.mrb[2].mxu0 %v25303_v37 }
 0x366   :  { %22538 = vmatpush3.xpose.msra.mxu1 %v1608_v19  ;;  %22598 = vmatpush3.xpose.msra.mxu0 %v2512_v21 }
 0x367   :  { %22539 = vmatprep.mubr.msk.f32.mxu1 %vm25098_vm1, %v25097_v48  ;;  %22542 = vmatprep.subr.mxu1 %v25097_v48 }
 0x368   :  { %22599 = vmatprep.mubr.msk.f32.mxu0 %vm25098_vm1, %v25097_v48  ;;  %22602 = vmatprep.subr.mxu0 %v25097_v48 }
 0x36d   :  { %22540 = vmatmul.mubr.f32.vlgmr.msra.gmra.mrb[0].mxu1 %v25310_v46  ;;  %22600 = vmatmul.mubr.f32.vlgmr.msra.gmra.mrb[2].mxu0 %v25313_v47  ;;  %v2061_v46 = vand.u32 4294901760, %v2060_v44  ;;  %v2051_v47 = vsub.f32 %v2049_v5, %v2050_v45 }
 0x36e   :  { %22543 = vmatpush3.xpose.msra.mxu1 %v1531_v16  ;;  %22603 = vmatpush3.xpose.msra.mxu0 %v2435_v17 }
 0x36f   :  { %22544 = vmatprep.mubr.msk.f32.mxu1 %vm25098_vm1, %v25097_v48  ;;  %22547 = vmatprep.subr.mxu1 %v25097_v48  ;;  %v2062_v49 = vsub.f32 %v2060_v44, %v2061_v46  ;;  %v2052_v50 = vand.u32 4294901760, %v2051_v47 }
 0x370   :  { %22604 = vmatprep.mubr.msk.f32.mxu0 %vm25098_vm1, %v25097_v48  ;;  %22607 = vmatprep.subr.mxu0 %v25097_v48 }
 0x371   :  { %v2063_v51 = vand.u32 4294901760, %v2062_v49 }
 0x375   :  { %22545 = vmatmul.mubr.f32.vlgmr.msra.gmra.mrb[0].mxu1 %v1598_v60  ;;  %22605 = vmatmul.mubr.f32.vlgmr.msra.gmra.mrb[2].mxu0 %v2502_v61  ;;  %v735_v60 = vrot.slane %v727_v53, %v25222_v29  ;;  %v742_v61 = vrot.slane %v728_v55, %v25222_v29 }
 0x376   :  { %22548 = vmatpush3.xpose.msra.mxu1 %v1609_v24  ;;  %22608 = vmatpush3.xpose.msra.mxu0 %v2513_v28 }
 0x377   :  { %22549 = vmatprep.mubr.msk.f32.mxu1 %vm25098_vm1, %v25097_v48  ;;  %22552 = vmatprep.subr.mxu1 %v25097_v48 }
 0x378   :  { %22609 = vmatprep.mubr.msk.f32.mxu0 %vm25098_vm1, %v25097_v48  ;;  %22612 = vmatprep.subr.mxu0 %v25097_v48 }
 0x37d   :  { %22550 = vmatmul.mubr.f32.vlgmr.msra.gmra.mrb[0].mxu1 %v25301_v36  ;;  %22610 = vmatmul.mubr.f32.vlgmr.msra.gmra.mrb[2].mxu0 %v25303_v37 }
 0x37e   :  { %22553 = vmatpush3.xpose.msra.mxu1 %v1531_v16  ;;  %22613 = vmatpush3.xpose.msra.mxu0 %v2435_v17 }
 0x37f   :  { %22554 = vmatprep.mubr.msk.f32.mxu1 %vm25098_vm1, %v25097_v48  ;;  %22557 = vmatprep.subr.mxu1 %v25097_v48 }
 0x380   :  { %22614 = vmatprep.mubr.msk.f32.mxu0 %vm25098_vm1, %v25097_v48  ;;  %22647 = vmatprep.subr.mxu0 %v25097_v48 }
 0x385   :  { %22555 = vmatmul.mubr.f32.vlgmr.msra.gmra.mrb[0].mxu1 %v25301_v36  ;;  %22615 = vmatmul.mubr.f32.vlgmr.msra.gmra.mrb[2].mxu0 %v25303_v37  ;;  %v743_v36 = vcombine.low %v25283_v13, %v25293_v25  ;;  %v744_v37 = vcombine.high %v25283_v13, %v25293_v25 }
 0x386   :  { %22558 = vmatpush3.xpose.msra.mxu1 %v1983_v4  ;;  %22559 = vmatprep.mubr.msk.f32.mxu1 %vm25098_vm1, %v25097_v48 }
 0x387   :  { %22562 = vmatprep.subr.mxu1 %v25097_v48  ;;  %22649 = vmatprep.mubr.msk.f32.mxu0 %vm25098_vm1, %v25097_v48  ;;  %v751_v58 = vrot.slane %v743_v36, %v25222_v29  ;;  %v758_v59 = vrot.slane %v744_v37, %v25222_v29 }
 0x389   :  { %22560 = vmatmul.mubr.f32.vlgmr.msra.gmra.mrb[2].mxu1 %v2052_v50  ;;  %v759_v63 = vcombine.low %v735_v60, %v751_v58  ;;  %v760_v0 = vcombine.high %v735_v60, %v751_v58  ;;  %v775_v2 = vcombine.low %v742_v61, %v758_v59  ;;  %v776_v8 = vcombine.high %v742_v61, %v758_v59 }
 0x38a   :  { %22563 = vmatpush3.xpose.msra.mxu1 %v2063_v51  ;;  %22564 = vmatprep.mubr.msk.f32.mxu1 %vm25098_vm1, %v25097_v48 }
 0x38b   :  { %22567 = vmatprep.subr.mxu1 %v25097_v48  ;;  %v767_v3 = vrot.slane %v759_v63, %v25239_v35  ;;  %v774_v7 = vrot.slane %v760_v0, %v25239_v35  ;;  %v783_v11 = vrot.slane %v775_v2, %v25239_v35  ;;  %v790_v6 = vrot.slane %v776_v8, %v25239_v35 }
 0x38d   :  { %v1183_v16 = vcombine.low %v767_v3, %v774_v7  ;;  %v21690_v17 = vcombine.high %v767_v3, %v774_v7  ;;  %v1199_v19 = vcombine.low %v783_v11, %v790_v6  ;;  %v21691_v21 = vcombine.high %v783_v11, %v790_v6 }
 0x38f   :  { %v25446_v24 = vrot.slane %v1183_v16, %v25222_v29  ;;  %v25449_v28 = vrot.slane %v21690_v17, %v25222_v29  ;;  %v25452_v30 = vrot.slane %v1199_v19, %v25222_v29  ;;  %v25455_v31 = vrot.slane %v21691_v21, %v25222_v29 }
 0x391   :  { %22565 = vmatmul.mubr.f32.vlgmr.msra.gmra.mrb[2].mxu1 %v25368_v43  ;;  %v1215_v38 = vcombine.low %v25446_v24, %v25449_v28  ;;  %v1231_v39 = vcombine.low %v25452_v30, %v25455_v31 }
 0x392   :  { %22568 = vmatpush3.xpose.msra.mxu1 %v2060_v44  ;;  %22569 = vmatprep.mubr.msk.f32.mxu1 %vm25098_vm1, %v25097_v48 }
 0x393   :  { %22572 = vmatprep.subr.mxu1 %v25097_v48 }
 0x399   :  { %22570 = vmatmul.mubr.f32.vlgmr.msra.gmra.mrb[2].mxu1 %v2049_v5  ;;  %v798_v5 = vpop.permute.xlu0 %797 }
 0x39a   :  { %22573 = vmatpush3.xpose.msra.mxu1 %v1983_v4  ;;  %22574 = vmatprep.mubr.msk.f32.mxu1 %vm25098_vm1, %v25097_v48 }
 0x39b   :  { %22577 = vmatprep.subr.mxu1 %v25097_v48 }
 0x3a1   :  { %22575 = vmatmul.mubr.f32.vlgmr.msra.gmra.mrb[2].mxu1 %v2050_v45 }
 0x3a2   :  { %22578 = vmatpush3.xpose.msra.mxu1 %v2061_v46  ;;  %22579 = vmatprep.mubr.msk.f32.mxu1 %vm25098_vm1, %v25097_v48 }
 0x3a3   :  { %22582 = vmatprep.subr.mxu1 %v25097_v48 }
 0x3a9   :  { %22580 = vmatmul.mubr.f32.vlgmr.msra.gmra.mrb[2].mxu1 %v25368_v43 }
 0x3aa   :  { %22583 = vmatpush3.xpose.msra.mxu1 %v1983_v4  ;;  %22584 = vmatprep.mubr.msk.f32.mxu1 %vm25098_vm1, %v25097_v48  ;;  %v1239_v4 = vrot.slane %v1231_v39, %v25239_v35 }
 0x3ab   :  { %22617 = vmatprep.subr.mxu1 %v25097_v48 }
 0x3b1   :  { %22585 = vmatmul.mubr.f32.vlgmr.msra.gmra.mrb[2].mxu1 %v25368_v43  ;;  %v1223_v43 = vrot.slane %v1215_v38, %v25239_v35 }
 0x3b2   :  { %22618 = vmatpush3.xpose.msra.mxu1 %v25424_v9  ;;  %22619 = vmatprep.mubr.msk.f32.mxu1 %vm25098_vm1, %v25097_v48 }
 0x3b3   :  { %22622 = vmatprep.subr.mxu1 %v25097_v48  ;;  %v1247_v45 = vcombine.low %v1223_v43, %v1239_v4  ;;  %v1248_v33 = vcombine.high %v1223_v43, %v1239_v4 }
 0x3b5   :  { %22620 = vmatmul.mubr.f32.vlgmr.msra.gmra.mrb[4].mxu1 %v2956_v40  ;;  %v3333_v57 = vsel %vm1523_vm2, %v1247_v45, 0 }
 0x3b6   :  { %22623 = vmatpush3.xpose.msra.mxu1 %v2967_v41  ;;  %22624 = vmatprep.mubr.msk.f32.mxu1 %vm25098_vm1, %v25097_v48  ;;  %v25484_v1 = vand.u32 4294901760, %v3333_v57 }
 0x3b7   :  { %v802_v42 = vpop.permute.xlu1 %801  ;;  %22627 = vmatprep.subr.mxu1 %v25097_v48 }
 0x3b8   :  { %v25495_v16 = vsub.f32 %v3333_v57, %v25484_v1 }
 0x3bb   :  { %v810_v44 = vpop.permute.xlu1 %809 }
 0x3bc   :  { %v903_v46 = vcombine.low %v802_v42, %v810_v44  ;;  %v904_v47 = vcombine.high %v802_v42, %v810_v44  ;;  %v806_v49 = vpop.permute.xlu0 %805  ;;  %v3406_v42 = vand.u32 4294901760, %v25495_v16 }
 0x3bd   :  { %v887_v50 = vcombine.low %v798_v5, %v806_v49  ;;  %v888_v51 = vcombine.high %v798_v5, %v806_v49  ;;  %22625 = vmatmul.mubr.f32.vlgmr.msra.gmra.mrb[4].mxu1 %v25421_v62  ;;  %v3785_v5 = vsel %vm1523_vm2, %v1248_v33, 0 }
 0x3be   :  { %v911_v36 = vrot.slane %v903_v46, %v25222_v29  ;;  %v918_v37 = vrot.slane %v904_v47, %v25222_v29  ;;  %22628 = vmatpush3.xpose.msra.mxu1 %v25434_v14  ;;  %22629 = vmatprep.mubr.msk.f32.mxu1 %vm25098_vm1, %v25097_v48  ;;  %v3407_v4 = vsub.f32 %v25495_v16, %v3406_v42 }
 0x3bf   :  { %v895_v53 = vrot.slane %v887_v50, %v25222_v29  ;;  %v902_v55 = vrot.slane %v888_v51, %v25222_v29  ;;  %22632 = vmatprep.subr.mxu1 %v25097_v48 }
 0x3c1   :  { %v919_v58 = vcombine.low %v895_v53, %v911_v36  ;;  %v920_v59 = vcombine.high %v895_v53, %v911_v36  ;;  %v935_v60 = vcombine.low %v902_v55, %v918_v37  ;;  %v936_v61 = vcombine.high %v902_v55, %v918_v37 }
 0x3c3   :  { %v927_v63 = vrot.slane %v919_v58, %v25239_v35  ;;  %v934_v0 = vrot.slane %v920_v59, %v25239_v35  ;;  %v943_v2 = vrot.slane %v935_v60, %v25239_v35  ;;  %v950_v8 = vrot.slane %v936_v61, %v25239_v35 }
 0x3c4   :  { %v1216_v59 = vcombine.high %v25446_v24, %v25449_v28  ;;  %v1232_v60 = vcombine.high %v25452_v30, %v25455_v31 }
 0x3c5   :  { %v1319_v3 = vcombine.low %v927_v63, %v934_v0  ;;  %v21694_v7 = vcombine.high %v927_v63, %v934_v0  ;;  %v1335_v11 = vcombine.low %v943_v2, %v950_v8  ;;  %v21695_v6 = vcombine.high %v943_v2, %v950_v8  ;;  %22630 = vmatmul.mubr.f32.vlgmr.msra.gmra.mrb[4].mxu1 %v25427_v12 }
 0x3c6   :  { %22633 = vmatpush3.xpose.msra.mxu1 %v25424_v9  ;;  %22634 = vmatprep.mubr.msk.f32.mxu1 %vm25098_vm1, %v25097_v48  ;;  %v25530_v12 = vand.u32 4294901760, %v3785_v5  ;;  %v1230_v24 = vrot.slane %v1216_v59, %v25239_v35  ;;  %v1246_v28 = vrot.slane %v1232_v60, %v25239_v35 }
 0x3c7   :  { %v25498_v17 = vrot.slane %v1319_v3, %v25222_v29  ;;  %v25501_v19 = vrot.slane %v21694_v7, %v25222_v29  ;;  %v25504_v21 = vrot.slane %v1335_v11, %v25222_v29  ;;  %v25507_v23 = vrot.slane %v21695_v6, %v25222_v29  ;;  %22637 = vmatprep.subr.mxu1 %v25097_v48 }
 0x3c8   :  { %v25540_v49 = vsub.f32 %v3785_v5, %v25530_v12  ;;  %v1249_v0 = vcombine.low %v1230_v24, %v1246_v28 }
 0x3c9   :  { %v1351_v38 = vcombine.low %v25498_v17, %v25501_v19  ;;  %v1367_v39 = vcombine.low %v25504_v21, %v25507_v23  ;;  %v1368_v63 = vcombine.high %v25504_v21, %v25507_v23 }
 0x3ca   :  { %v3858_v37 = vand.u32 4294901760, %v25540_v49  ;;  %v4237_v8 = vsel %vm1523_vm2, %v1249_v0, 0 }
 0x3cb   :  { %v1359_v40 = vrot.slane %v1351_v38, %v25239_v35  ;;  %v1375_v41 = vrot.slane %v1367_v39, %v25239_v35  ;;  %v1382_v31 = vrot.slane %v1368_v63, %v25239_v35  ;;  %v25598_v7 = vand.u32 4294901760, %v4237_v8 }
 0x3cc   :  { %v3859_v57 = vsub.f32 %v25540_v49, %v3858_v37 }
 0x3cd   :  { %22635 = vmatmul.mubr.f32.vlgmr.msra.gmra.mrb[4].mxu1 %v2954_v15  ;;  %v1383_v44 = vcombine.low %v1359_v40, %v1375_v41  ;;  %v1384_v45 = vcombine.high %v1359_v40, %v1375_v41  ;;  %v4309_v6 = vsub.f32 %v4237_v8, %v25598_v7 }
 0x3ce   :  { %22638 = vmatpush3.xpose.msra.mxu1 %v2965_v22  ;;  %22639 = vmatprep.mubr.msk.f32.mxu1 %vm25098_vm1, %v25097_v48  ;;  %v3408_v22 = vand.u32 4294901760, %v3407_v4  ;;  %v3860_v58 = vand.u32 4294901760, %v3859_v57 }
 0x3cf   :  { %v3336_v43 = vsel %vm1523_vm2, %v1383_v44, 0  ;;  %22642 = vmatprep.subr.mxu1 %v25097_v48  ;;  %v3788_v46 = vsel %vm1523_vm2, %v1384_v45, 0  ;;  %v4310_v21 = vand.u32 4294901760, %v4309_v6 }
 0x3d0   :  { %v25532_v15 = vand.u32 4294901760, %v3336_v43  ;;  %v25534_v47 = vand.u32 4294901760, %v3788_v46 }
 0x3d1   :  { %v4311_v39 = vsub.f32 %v4309_v6, %v4310_v21 }
 0x3d2   :  { %22648 = vmatpush3.xpose.msra.mxu0 %v25532_v15  ;;  %v3416_v14 = vsub.f32 %v3336_v43, %v25532_v15  ;;  %v25543_v51 = vsub.f32 %v3788_v46, %v25534_v47 }
 0x3d3   :  { %22652 = vmatprep.subr.mxu0 %v25097_v48  ;;  %v4312_v5 = vand.u32 4294901760, %v4311_v39 }
 0x3d4   :  { %v3417_v50 = vand.u32 4294901760, %v3416_v14  ;;  %v3869_v55 = vand.u32 4294901760, %v25543_v51 }
 0x3d5   :  { %22650 = vmatmul.mubr.f32.vlgmr.msra.gmra.mrb[4].mxu0 %v3408_v22  ;;  %22640 = vmatmul.mubr.f32.vlgmr.msra.gmra.mrb[4].mxu1 %v25421_v62 }
 0x3d6   :  { %22643 = vmatpush3.xpose.msra.mxu1 %v25424_v9  ;;  %v3418_v36 = vsub.f32 %v3416_v14, %v3417_v50  ;;  %22654 = vmatprep.mubr.msk.f32.mxu0 %vm25098_vm1, %v25097_v48  ;;  %v3870_v9 = vsub.f32 %v25543_v51, %v3869_v55 }
 0x3d7   :  { %22644 = vmatprep.mubr.msk.f32.mxu1 %vm25098_vm1, %v25097_v48  ;;  %22677 = vmatprep.subr.mxu1 %v25097_v48 }
 0x3d8   :  { %v3419_v53 = vand.u32 4294901760, %v3418_v36  ;;  %v3871_v61 = vand.u32 4294901760, %v3870_v9 }
 0x3da   :  { %22653 = vmatpush3.xpose.msra.mxu0 %v3419_v53 }
 0x3db   :  { %22657 = vmatprep.subr.mxu0 %v25097_v48 }
 0x3dd   :  { %22655 = vmatmul.mubr.f32.vlgmr.msra.gmra.mrb[4].mxu0 %v25484_v1  ;;  %22645 = vmatmul.mubr.f32.vlgmr.msra.gmra.mrb[4].mxu1 %v25421_v62  ;;  %v1352_v62 = vcombine.high %v25498_v17, %v25501_v19  ;;  %v1250_v17 = vcombine.high %v1230_v24, %v1246_v28 }
 0x3de   :  { %22658 = vmatpush3.xpose.msra.mxu0 %v3416_v14  ;;  %22678 = vmatpush3.xpose.msra.mxu1 %v25534_v47 }
 0x3df   :  { %22679 = vmatprep.mubr.msk.f32.mxu1 %vm25098_vm1, %v25097_v48  ;;  %22682 = vmatprep.subr.mxu1 %v25097_v48  ;;  %v1366_v30 = vrot.slane %v1352_v62, %v25239_v35  ;;  %v4689_v33 = vsel %vm1523_vm2, %v1250_v17, 0 }
 0x3e0   :  { %22659 = vmatprep.mubr.msk.f32.mxu0 %vm25098_vm1, %v25097_v48  ;;  %22662 = vmatprep.subr.mxu0 %v25097_v48  ;;  %v25619_v40 = vand.u32 4294901760, %v4689_v33 }
 0x3e1   :  { %22680 = vmatmul.mubr.f32.vlgmr.msra.gmra.mrb[6].mxu1 %v3860_v58  ;;  %v1385_v2 = vcombine.low %v1366_v30, %v1382_v31  ;;  %v1386_v19 = vcombine.high %v1366_v30, %v1382_v31 }
 0x3e2   :  { %22683 = vmatpush3.xpose.msra.mxu1 %v3871_v61  ;;  %22684 = vmatprep.mubr.msk.f32.mxu1 %vm25098_vm1, %v25097_v48  ;;  %v4761_v44 = vsub.f32 %v4689_v33, %v25619_v40 }
 0x3e3   :  { %22687 = vmatprep.subr.mxu1 %v25097_v48  ;;  %v4240_v3 = vsel %vm1523_vm2, %v1385_v2, 0  ;;  %v4692_v38 = vsel %vm1523_vm2, %v1386_v19, 0 }
 0x3e4   :  { %v25600_v11 = vand.u32 4294901760, %v4240_v3 }
 0x3e5   :  { %22660 = vmatmul.mubr.f32.vlgmr.msra.gmra.mrb[4].mxu0 %v25495_v16 }
 0x3e6   :  { %22663 = vmatpush3.xpose.msra.mxu0 %v25532_v15  ;;  %22664 = vmatprep.mubr.msk.f32.mxu0 %vm25098_vm1, %v25097_v48  ;;  %v4320_v16 = vsub.f32 %v4240_v3, %v25600_v11 }
 0x3e7   :  { %22667 = vmatprep.subr.mxu0 %v25097_v48 }
 0x3e8   :  { %v4321_v23 = vand.u32 4294901760, %v4320_v16 }
 0x3e9   :  { %22685 = vmatmul.mubr.f32.vlgmr.msra.gmra.mrb[6].mxu1 %v25530_v12 }
 0x3ea   :  { %22688 = vmatpush3.xpose.msra.mxu1 %v25543_v51  ;;  %22689 = vmatprep.mubr.msk.f32.mxu1 %vm25098_vm1, %v25097_v48  ;;  %v4322_v41 = vsub.f32 %v4320_v16, %v4321_v23 }
 0x3eb   :  { %22692 = vmatprep.subr.mxu1 %v25097_v48 }
 0x3ec   :  { %v4323_v45 = vand.u32 4294901760, %v4322_v41 }
 0x3ed   :  { %22665 = vmatmul.mubr.f32.vlgmr.msra.gmra.mrb[4].mxu0 %v3406_v42  ;;  %v4695_v42 = vand.u32 4294901760, %v4692_v38 }
 0x3ee   :  { %22668 = vmatpush3.xpose.msra.mxu0 %v3417_v50  ;;  %22669 = vmatprep.mubr.msk.f32.mxu0 %vm25098_vm1, %v25097_v48 }
 0x3ef   :  { %22672 = vmatprep.subr.mxu0 %v25097_v48  ;;  %v4772_v43 = vsub.f32 %v4692_v38, %v4695_v42 }
 0x3f1   :  { %22690 = vmatmul.mubr.f32.vlgmr.msra.gmra.mrb[6].mxu1 %v25540_v49  ;;  %v4773_v4 = vand.u32 4294901760, %v4772_v43 }
 0x3f2   :  { %22693 = vmatpush3.xpose.msra.mxu1 %v25534_v47  ;;  %22694 = vmatprep.mubr.msk.f32.mxu1 %vm25098_vm1, %v25097_v48 }
 0x3f3   :  { %22697 = vmatprep.subr.mxu1 %v25097_v48 }
 0x3f5   :  { %22670 = vmatmul.mubr.f32.vlgmr.msra.gmra.mrb[4].mxu0 %v25484_v1 }
 0x3f6   :  { %22673 = vmatpush3.xpose.msra.mxu0 %v25532_v15  ;;  %22674 = vmatprep.mubr.msk.f32.mxu0 %vm25098_vm1, %v25097_v48  ;;  %v4774_v15 = vsub.f32 %v4772_v43, %v4773_v4 }
 0x3f7   :  { %22707 = vmatprep.subr.mxu0 %v25097_v48 }
 0x3f8   :  { %v4775_v14 = vand.u32 4294901760, %v4774_v15 }
 0x3f9   :  { %22695 = vmatmul.mubr.f32.vlgmr.msra.gmra.mrb[6].mxu1 %v3858_v37 }
 0x3fa   :  { %22698 = vmatpush3.xpose.msra.mxu1 %v3869_v55  ;;  %22699 = vmatprep.mubr.msk.f32.mxu1 %vm25098_vm1, %v25097_v48 }
 0x3fb   :  { %22702 = vmatprep.subr.mxu1 %v25097_v48 }
 0x3fd   :  { %22675 = vmatmul.mubr.f32.vlgmr.msra.gmra.mrb[4].mxu0 %v25484_v1  ;;  %v4762_v1 = vand.u32 4294901760, %v4761_v44 }
 0x3fe   :  { %22708 = vmatpush3.xpose.msra.mxu0 %v25600_v11  ;;  %22709 = vmatprep.mubr.msk.f32.mxu0 %vm25098_vm1, %v25097_v48 }
 0x3ff   :  { %22712 = vmatprep.subr.mxu0 %v25097_v48  ;;  %v4763_v46 = vsub.f32 %v4761_v44, %v4762_v1 }
 0x401   :  { %22710 = vmatmul.mubr.f32.vlgmr.msra.gmra.mrb[6].mxu0 %v4312_v5  ;;  %22700 = vmatmul.mubr.f32.vlgmr.msra.gmra.mrb[6].mxu1 %v25530_v12 }
 0x402   :  { %22713 = vmatpush3.xpose.msra.mxu0 %v4323_v45  ;;  %22703 = vmatpush3.xpose.msra.mxu1 %v25534_v47  ;;  %v4764_v47 = vand.u32 4294901760, %v4763_v46 }
 0x403   :  { %22714 = vmatprep.mubr.msk.f32.mxu0 %vm25098_vm1, %v25097_v48  ;;  %22717 = vmatprep.subr.mxu0 %v25097_v48 }
 0x404   :  { %22704 = vmatprep.mubr.msk.f32.mxu1 %vm25098_vm1, %v25097_v48  ;;  %22737 = vmatprep.subr.mxu1 %v25097_v48 }
 0x409   :  { %22715 = vmatmul.mubr.f32.vlgmr.msra.gmra.mrb[6].mxu0 %v25598_v7  ;;  %22705 = vmatmul.mubr.f32.vlgmr.msra.gmra.mrb[6].mxu1 %v25530_v12 }
 0x40a   :  { %22718 = vmatpush3.xpose.msra.mxu0 %v4320_v16  ;;  %22738 = vmatpush3.xpose.msra.mxu1 %v4695_v42 }
 0x40b   :  { %22739 = vmatprep.mubr.msk.f32.mxu1 %vm25098_vm1, %v25097_v48  ;;  %22742 = vmatprep.subr.mxu1 %v25097_v48 }
 0x40c   :  { %22719 = vmatprep.mubr.msk.f32.mxu0 %vm25098_vm1, %v25097_v48  ;;  %22722 = vmatprep.subr.mxu0 %v25097_v48 }
 0x40d   :  { %22740 = vmatmul.mubr.f32.vlgmr.msra.gmra.mrb[8].mxu1 %v4764_v47 }
 0x40e   :  { %22743 = vmatpush3.xpose.msra.mxu1 %v4775_v14  ;;  %22744 = vmatprep.mubr.msk.f32.mxu1 %vm25098_vm1, %v25097_v48 }
 0x40f   :  { %22747 = vmatprep.subr.mxu1 %v25097_v48 }
 0x411   :  { %22720 = vmatmul.mubr.f32.vlgmr.msra.gmra.mrb[6].mxu0 %v4309_v6 }
 0x412   :  { %22723 = vmatpush3.xpose.msra.mxu0 %v25600_v11  ;;  %22724 = vmatprep.mubr.msk.f32.mxu0 %vm25098_vm1, %v25097_v48 }
 0x413   :  { %22727 = vmatprep.subr.mxu0 %v25097_v48 }
 0x415   :  { %22745 = vmatmul.mubr.f32.vlgmr.msra.gmra.mrb[8].mxu1 %v25619_v40 }
 0x416   :  { %22748 = vmatpush3.xpose.msra.mxu1 %v4772_v43  ;;  %22749 = vmatprep.mubr.msk.f32.mxu1 %vm25098_vm1, %v25097_v48 }
 0x417   :  { %22752 = vmatprep.subr.mxu1 %v25097_v48 }
 0x419   :  { %22725 = vmatmul.mubr.f32.vlgmr.msra.gmra.mrb[6].mxu0 %v4310_v21 }
 0x41a   :  { %22728 = vmatpush3.xpose.msra.mxu0 %v4321_v23  ;;  %22729 = vmatprep.mubr.msk.f32.mxu0 %vm25098_vm1, %v25097_v48 }
 0x41b   :  { %22732 = vmatprep.subr.mxu0 %v25097_v48 }
 0x41d   :  { %22750 = vmatmul.mubr.f32.vlgmr.msra.gmra.mrb[8].mxu1 %v4761_v44 }
 0x41e   :  { %22753 = vmatpush3.xpose.msra.mxu1 %v4695_v42  ;;  %22754 = vmatprep.mubr.msk.f32.mxu1 %vm25098_vm1, %v25097_v48 }
 0x41f   :  { %22757 = vmatprep.subr.mxu1 %v25097_v48 }
 0x421   :  { %22730 = vmatmul.mubr.f32.vlgmr.msra.gmra.mrb[6].mxu0 %v25598_v7 }
 0x422   :  { %22733 = vmatpush3.xpose.msra.mxu0 %v25600_v11  ;;  %22734 = vmatprep.mubr.msk.f32.mxu0 %vm25098_vm1, %v25097_v48 }
 0x423   :  { %22767 = vmatprep.subr.mxu0 %v25097_v48 }
 0x425   :  { %22755 = vmatmul.mubr.f32.vlgmr.msra.gmra.mrb[8].mxu1 %v4762_v1 }
 0x426   :  { %22758 = vmatpush3.xpose.msra.mxu1 %v4773_v4  ;;  %22759 = vmatprep.mubr.msk.f32.mxu1 %vm25098_vm1, %v25097_v48 }
 0x427   :  { %22762 = vmatprep.subr.mxu1 %v25097_v48 }
 0x429   :  { %22735 = vmatmul.mubr.f32.vlgmr.msra.gmra.mrb[6].mxu0 %v25598_v7 }
 0x42a   :  { %22769 = vmatprep.mubr.msk.f32.mxu0 %vm25098_vm1, %v25097_v48 }
 0x42d   :  { %22760 = vmatmul.mubr.f32.vlgmr.msra.gmra.mrb[8].mxu1 %v25619_v40 }
 0x42e   :  { %22763 = vmatpush3.xpose.msra.mxu1 %v4695_v42  ;;  %22764 = vmatprep.mubr.msk.f32.mxu1 %vm25098_vm1, %v25097_v48 }
 0x42f   :  { %22797 = vmatprep.subr.mxu1 %v25097_v48 }
 0x435   :  { %22765 = vmatmul.mubr.f32.vlgmr.msra.gmra.mrb[8].mxu1 %v25619_v40 }
 0x436   :  { %22799 = vmatprep.mubr.msk.f32.mxu1 %vm25098_vm1, %v25097_v48 }
 0x458   :  { %v1972_v12 = vpop.f32.mrb[0].mxu1  ;;  %v2876_v22 = vpop.f32.mrb[2].mxu0 }
 0x459   :  { %v22556_v49 = vpop.f32.mrb[1].mxu1  ;;  %v22616_v50 = vpop.f32.mrb[3].mxu0  ;;  %v5140_v51 = vsel %vm1523_vm2, %v1972_v12, -inf  ;;  %v5146_v36 = vsel %vm1523_vm2, %v2876_v22, -inf }
 0x45a   :  { %5141 = vmax.xlane.f32.xlu0 %v5140_v51 }
 0x45e   :  { %5147 = vmax.xlane.f32.xlu0 %v5146_v36 }
 0x484   :  { %v2424_v37 = vpop.f32.mrb[2].mxu1 }
 0x485   :  { %v22586_v53 = vpop.f32.mrb[3].mxu1  ;;  %v5143_v55 = vsel %vm1523_vm2, %v2424_v37, -inf }
 0x486   :  { %5144 = vmax.xlane.f32.xlu1 %v5143_v55 }
 0x4b0   :  { %v3328_v57 = vpop.f32.mrb[4].mxu1 }
 0x4b1   :  { %v22646_v9 = vpop.f32.mrb[5].mxu1  ;;  %v5149_v58 = vsel %vm1523_vm2, %v3328_v57, -inf }
 0x4b2   :  { %5150 = vmax.xlane.f32.xlu0 %v5149_v58 }
 0x4d0   :  { %v3780_v59 = vpop.f32.mrb[4].mxu0 }
 0x4d1   :  { %v22676_v60 = vpop.f32.mrb[5].mxu0  ;;  %v5152_v61 = vsel %vm1523_vm2, %v3780_v59, -inf }
 0x4d2   :  { %5153 = vmax.xlane.f32.xlu0 %v5152_v61 }
 0x4dc   :  { %v4232_v62 = vpop.f32.mrb[6].mxu1 }
 0x4dd   :  { %v22706_v63 = vpop.f32.mrb[7].mxu1  ;;  %v5155_v24 = vsel %vm1523_vm2, %v4232_v62, -inf }
 0x4de   :  { %5156 = vmax.xlane.f32.xlu1 %v5155_v24 }
 0x4e7   :  { %v5142_v28 = vpop.xlane.xlu0 %5141 }
 0x4e8   :  { %v5164_v30 = vsub.f32 %v1972_v12, %v5142_v28 }
 0x4ea   :  { %v5172_v31 = vmul.f32 1.442695, %v5164_v30 }
 0x4ec   :  { %24952 = vpow2.f32 %v5172_v31 }
 0x4ef   :  { %959 = vrot.lane.b32.xlu1 %v25215_v27, %s25099_s24  ;;  %v5148_v27 = vpop.xlane.xlu0 %5147 }
 0x4f0   :  { %v5166_v19 = vsub.f32 %v2876_v22, %v5148_v27 }
 0x4f3   :  { %963 = vrot.lane.b32.xlu1 %v25213_v26, %s25099_s24  ;;  %v5176_v26 = vmul.f32 1.442695, %v5166_v19 }
 0x4f6   :  { %v24953_v0 = vpop.eup %24952 }
 0x4f7   :  { %v5188_v2 = vsel %vm1523_vm2, %v24953_v0, 0.0 }
 0x4f8   :  { %5189 = vadd.xlane.f32.xlu0 %v5188_v2 }
 0x4fc   :  { %v25689_v8 = vpop.f32.mrb[6].mxu0 }
 0x4fd   :  { %v22736_v3 = vpop.f32.mrb[7].mxu0  ;;  %v5158_v33 = vsel %vm1523_vm2, %v25689_v8, -inf }
 0x508   :  { %v25691_v7 = vpop.f32.mrb[8].mxu1 }
 0x509   :  { %v22766_v11 = vpop.f32.mrb[9].mxu1  ;;  %v5161_v44 = vsel %vm1523_vm2, %v25691_v7, -inf }
 0x50e   :  { %955 = vrot.lane.b32.xlu0 %v25203_v20, %s25099_s24 }
 0x513   :  { %v5145_v6 = vpop.xlane.xlu1 %5144 }
 0x514   :  { %v5165_v16 = vsub.f32 %v2424_v37, %v5145_v6 }
 0x516   :  { %v5174_v17 = vmul.f32 1.442695, %v5165_v16 }
 0x518   :  { %24954 = vpow2.f32 %v5174_v17 }
 0x519   :  { %24956 = vpow2.f32 %v5176_v26 }
 0x522   :  { %v25695_v21 = vpop.eup %24954 }
 0x523   :  { %v5191_v23 = vsel %vm1523_vm2, %v25695_v21, 0.0  ;;  %v25701_v38 = vpop.eup %24956 }
 0x524   :  { %5192 = vadd.xlane.f32.xlu1 %v5191_v23  ;;  %v5194_v20 = vsel %vm1523_vm2, %v25701_v38, 0.0 }
 0x52d   :  { %5159 = vmax.xlane.f32.xlu0 %v5158_v33 }
 0x531   :  { %5195 = vadd.xlane.f32.xlu0 %v5194_v20 }
 0x535   :  { %967 = vrot.lane.b32.xlu1 %v25228_v32, %s25099_s24 }
 0x53f   :  { %v5151_v39 = vpop.xlane.xlu0 %5150 }
 0x540   :  { %v5167_v40 = vsub.f32 %v3328_v57, %v5151_v39 }
 0x542   :  { %v5178_v41 = vmul.f32 1.442695, %v5167_v40 }
 0x544   :  { %24958 = vpow2.f32 %v5178_v41 }
 0x54e   :  { %v25707_v42 = vpop.eup %24958 }
 0x54f   :  { %v5197_v5 = vsel %vm1523_vm2, %v25707_v42, 0.0 }
 0x550   :  { %5198 = vadd.xlane.f32.xlu0 %v5197_v5 }
 0x559   :  { %5162 = vmax.xlane.f32.xlu1 %v5161_v44 }
 0x55f   :  { %v5154_v45 = vpop.xlane.xlu0 %5153 }
 0x560   :  { %v5168_v43 = vsub.f32 %v3780_v59, %v5154_v45 }
 0x562   :  { %v5180_v1 = vmul.f32 1.442695, %v5168_v43 }
 0x564   :  { %24960 = vpow2.f32 %v5180_v1 }
 0x56a   :  { %961 = vrot.lane.b32.xlu1 %v25283_v13, %s25099_s24 }
 0x56b   :  { %v5157_v46 = vpop.xlane.xlu1 %5156 }
 0x56c   :  { %v5169_v15 = vsub.f32 %v4232_v62, %v5157_v46 }
 0x56e   :  { %v25715_v32 = vpop.eup %24960  ;;  %965 = vrot.lane.b32.xlu1 %v25295_v34, %s25099_s24  ;;  %v5182_v47 = vmul.f32 1.442695, %v5169_v15 }
 0x56f   :  { %v5200_v4 = vsel %vm1523_vm2, %v25715_v32, 0.0  ;;  %v960_v34 = vpop.permute.xlu1 %959 }
 0x570   :  { %5201 = vadd.xlane.f32.xlu0 %v5200_v4  ;;  %24962 = vpow2.f32 %v5182_v47 }
 0x573   :  { %v964_v22 = vpop.permute.xlu1 %963 }
 0x57a   :  { %v25723_v14 = vpop.eup %24962 }
 0x57b   :  { %v5203_v13 = vsel %vm1523_vm2, %v25723_v14, 0.0 }
 0x585   :  { %v5190_v12 = vpop.xlane.xlu0 %5189 }
 0x586   :  { %957 = vrot.lane.b32.xlu0 %v25201_v18, %s25099_s24  ;;  %24964 = vrcp.f32 %v5190_v12 }
 0x589   :  { %v956_v50 = vpop.permute.xlu0 %955 }
 0x58a   :  { %v979_v37 = vcombine.low %v956_v50, %v964_v22  ;;  %v980_v18 = vcombine.high %v956_v50, %v964_v22 }
 0x58c   :  { %v987_v58 = vrot.slane %v979_v37, %v25222_v29  ;;  %v994_v59 = vrot.slane %v980_v18, %v25222_v29 }
 0x590   :  { %v24965_v49 = vpop.eup %24964 }
 0x591   :  { %v5213_v36 = vmul.f32 %v24965_v49, %v24953_v0 }
 0x592   :  { %5204 = vadd.xlane.f32.xlu1 %v5203_v13 }
 0x593   :  { %v5229_v9 = vsel %vm1523_vm2, %v5213_v36, 0 }
 0x594   :  { %v25734_v61 = vand.u32 4294901760, %v5229_v9 }
 0x596   :  { %v25743_v27 = vsub.f32 %v5229_v9, %v25734_v61 }
 0x598   :  { %v5299_v41 = vand.u32 4294901760, %v25743_v27 }
 0x59a   :  { %v5300_v46 = vsub.f32 %v25743_v27, %v5299_v41 }
 0x59c   :  { %v5301_v50 = vand.u32 4294901760, %v5300_v46 }
 0x5a3   :  { %969 = vrot.lane.b32.xlu1 %v25293_v25, %s25099_s24 }
 0x5b1   :  { %v5193_v51 = vpop.xlane.xlu1 %5192 }
 0x5b2   :  { %24966 = vrcp.f32 %v5193_v51 }
 0x5b5   :  { %v968_v53 = vpop.permute.xlu1 %967 }
 0x5b6   :  { %v995_v55 = vcombine.low %v960_v34, %v968_v53  ;;  %v996_v57 = vcombine.high %v960_v34, %v968_v53 }
 0x5b8   :  { %v1003_v25 = vrot.slane %v995_v55, %v25222_v29  ;;  %v1010_v60 = vrot.slane %v996_v57, %v25222_v29 }
 0x5ba   :  { %v1011_v62 = vcombine.low %v987_v58, %v1003_v25  ;;  %v1012_v63 = vcombine.high %v987_v58, %v1003_v25  ;;  %v1027_v24 = vcombine.low %v994_v59, %v1010_v60  ;;  %v1028_v28 = vcombine.high %v994_v59, %v1010_v60  ;;  %v5160_v30 = vpop.xlane.xlu0 %5159 }
 0x5bb   :  { %v5170_v31 = vsub.f32 %v25689_v8, %v5160_v30 }
 0x5bc   :  { %v24967_v0 = vpop.eup %24966  ;;  %v1019_v2 = vrot.slane %v1011_v62, %v25239_v35  ;;  %v1026_v3 = vrot.slane %v1012_v63, %v25239_v35  ;;  %v1035_v11 = vrot.slane %v1027_v24, %v25239_v35  ;;  %v1042_v6 = vrot.slane %v1028_v28, %v25239_v35 }
 0x5bd   :  { %v5215_v16 = vmul.f32 %v24967_v0, %v25695_v21  ;;  %v5184_v17 = vmul.f32 1.442695, %v5170_v31 }
 0x5be   :  { %v1387_v19 = vcombine.low %v1019_v2, %v1026_v3  ;;  %v21696_v26 = vcombine.high %v1019_v2, %v1026_v3  ;;  %v1403_v23 = vcombine.low %v1035_v11, %v1042_v6  ;;  %v21697_v33 = vcombine.high %v1035_v11, %v1042_v6  ;;  %v5196_v58 = vpop.xlane.xlu0 %5195 }
 0x5bf   :  { %24968 = vpow2.f32 %v5184_v17  ;;  %v5678_v8 = vsel %vm1523_vm2, %v5215_v16, 0 }
 0x5c0   :  { %v25747_v20 = vrot.slane %v1387_v19, %v25222_v29  ;;  %v25750_v39 = vrot.slane %v21696_v26, %v25222_v29  ;;  %v25753_v40 = vrot.slane %v1403_v23, %v25222_v29  ;;  %v25756_v21 = vrot.slane %v21697_v33, %v25222_v29 }
 0x5c1   :  { %v25759_v5 = vand.u32 4294901760, %v5678_v8  ;;  %24970 = vrcp.f32 %v5196_v58 }
 0x5c2   :  { %v1419_v44 = vcombine.low %v25747_v20, %v25750_v39  ;;  %v1435_v45 = vcombine.low %v25753_v40, %v25756_v21  ;;  %v1420_v60 = vcombine.high %v25747_v20, %v25750_v39  ;;  %v1436_v62 = vcombine.high %v25753_v40, %v25756_v21 }
 0x5c3   :  { %v25766_v43 = vsub.f32 %v5678_v8, %v25759_v5 }
 0x5c4   :  { %v1427_v1 = vrot.slane %v1419_v44, %v25239_v35  ;;  %v1443_v4 = vrot.slane %v1435_v45, %v25239_v35  ;;  %v1434_v30 = vrot.slane %v1420_v60, %v25239_v35  ;;  %v1450_v31 = vrot.slane %v1436_v62, %v25239_v35 }
 0x5c5   :  { %v5748_v15 = vand.u32 4294901760, %v25766_v43 }
 0x5c6   :  { %v1451_v47 = vcombine.low %v1427_v1, %v1443_v4  ;;  %v1452_v13 = vcombine.high %v1427_v1, %v1443_v4  ;;  %v1453_v0 = vcombine.low %v1434_v30, %v1450_v31  ;;  %v1454_v2 = vcombine.high %v1434_v30, %v1450_v31 }
 0x5c7   :  { %v5749_v12 = vsub.f32 %v25766_v43, %v5748_v15 }
 0x5c8   :  { %v25775_v34 = vand.u32 4294901760, %v1451_v47  ;;  %v25777_v22 = vand.u32 4294901760, %v1452_v13  ;;  %v25832_v16 = vand.u32 4294901760, %v1453_v0  ;;  %v25834_v17 = vand.u32 4294901760, %v1454_v2 }
 0x5c9   :  { %v25779_v49 = vpop.eup %24968  ;;  %v5750_v51 = vand.u32 4294901760, %v5749_v12 }
 0x5ca   :  { %22768 = vmatpush3.msra.mxu0 %v25775_v34  ;;  %v5309_v36 = vsub.f32 %v1451_v47, %v25775_v34  ;;  %22798 = vmatpush3.msra.mxu1 %v25777_v22  ;;  %v5758_v37 = vsub.f32 %v1452_v13, %v25777_v22  ;;  %v5206_v18 = vsel %vm1523_vm2, %v25779_v49, 0.0  ;;  %v6207_v33 = vsub.f32 %v1453_v0, %v25832_v16 }
 0x5cb   :  { %22770 = vmatmul.mubr.f32.vlgmr.msra.gmra.mrb[8].mxu0 %v5301_v50  ;;  %22800 = vmatmul.mubr.f32.vlgmr.msra.gmra.mrb[10].mxu1 %v5750_v51  ;;  %v24971_v63 = vpop.eup %24970 }
 0x5cc   :  { %5207 = vadd.xlane.f32.xlu0 %v5206_v18  ;;  %22772 = vmatprep.subr.mxu0 %v25097_v48  ;;  %v5310_v53 = vand.u32 4294901760, %v5309_v36  ;;  %v5759_v55 = vand.u32 4294901760, %v5758_v37  ;;  %v5217_v28 = vmul.f32 %v24971_v63, %v25701_v38  ;;  %v6208_v40 = vand.u32 4294901760, %v6207_v33 }
 0x5cd   :  { %22802 = vmatprep.subr.mxu1 %v25097_v48  ;;  %22774 = vmatprep.mubr.msk.f32.mxu0 %vm25098_vm1, %v25097_v48 }
 0x5ce   :  { %v5311_v57 = vsub.f32 %v5309_v36, %v5310_v53  ;;  %v5760_v9 = vsub.f32 %v5758_v37, %v5759_v55  ;;  %22804 = vmatprep.mubr.msk.f32.mxu1 %vm25098_vm1, %v25097_v48  ;;  %v6127_v3 = vsel %vm1523_vm2, %v5217_v28, 0 }
 0x5cf   :  { %v25828_v11 = vand.u32 4294901760, %v6127_v3 }
 0x5d0   :  { %v5312_v59 = vand.u32 4294901760, %v5311_v57  ;;  %v5761_v25 = vand.u32 4294901760, %v5760_v9 }
 0x5d1   :  { %v25838_v23 = vsub.f32 %v6127_v3, %v25828_v11 }
 0x5d2   :  { %22773 = vmatpush3.msra.mxu0 %v5312_v59  ;;  %22803 = vmatpush3.msra.mxu1 %v5761_v25 }
 0x5d3   :  { %22775 = vmatmul.mubr.f32.vlgmr.msra.gmra.mrb[8].mxu0 %v25734_v61  ;;  %22777 = vmatprep.subr.mxu0 %v25097_v48 }
 0x5d4   :  { %22805 = vmatmul.mubr.f32.vlgmr.msra.gmra.mrb[10].mxu1 %v25759_v5  ;;  %22807 = vmatprep.subr.mxu1 %v25097_v48 }
 0x5d5   :  { %22778 = vmatpush3.msra.mxu0 %v5309_v36  ;;  %22808 = vmatpush3.msra.mxu1 %v5758_v37 }
 0x5d6   :  { %22779 = vmatprep.mubr.msk.f32.mxu0 %vm25098_vm1, %v25097_v48  ;;  %22782 = vmatprep.subr.mxu0 %v25097_v48 }
 0x5d7   :  { %22809 = vmatprep.mubr.msk.f32.mxu1 %vm25098_vm1, %v25097_v48  ;;  %22812 = vmatprep.subr.mxu1 %v25097_v48 }
 0x5db   :  { %22780 = vmatmul.mubr.f32.vlgmr.msra.gmra.mrb[8].mxu0 %v25743_v27 }
 0x5dc   :  { %22783 = vmatpush3.msra.mxu0 %v25775_v34  ;;  %22810 = vmatmul.mubr.f32.vlgmr.msra.gmra.mrb[10].mxu1 %v25766_v43  ;;  %v6209_v43 = vsub.f32 %v6207_v33, %v6208_v40 }
 0x5dd   :  { %22813 = vmatpush3.msra.mxu1 %v25777_v22  ;;  %v5199_v24 = vpop.xlane.xlu0 %5198  ;;  %22784 = vmatprep.mubr.msk.f32.mxu0 %vm25098_vm1, %v25097_v48 }
 0x5de   :  { %24972 = vrcp.f32 %v5199_v24  ;;  %22787 = vmatprep.subr.mxu0 %v25097_v48  ;;  %22814 = vmatprep.mubr.msk.f32.mxu1 %vm25098_vm1, %v25097_v48 }
 0x5df   :  { %22817 = vmatprep.subr.mxu1 %v25097_v48 }
 0x5e3   :  { %22785 = vmatmul.mubr.f32.vlgmr.msra.gmra.mrb[8].mxu0 %v5299_v41 }
 0x5e4   :  { %22788 = vmatpush3.msra.mxu0 %v5310_v53  ;;  %22815 = vmatmul.mubr.f32.vlgmr.msra.gmra.mrb[10].mxu1 %v5748_v15 }
 0x5e5   :  { %22818 = vmatpush3.msra.mxu1 %v5759_v55  ;;  %22789 = vmatprep.mubr.msk.f32.mxu0 %vm25098_vm1, %v25097_v48 }
 0x5e6   :  { %v5163_v38 = vpop.xlane.xlu1 %5162  ;;  %22792 = vmatprep.subr.mxu0 %v25097_v48  ;;  %22819 = vmatprep.mubr.msk.f32.mxu1 %vm25098_vm1, %v25097_v48 }
 0x5e7   :  { %v5171_v6 = vsub.f32 %v25691_v7, %v5163_v38  ;;  %22822 = vmatprep.subr.mxu1 %v25097_v48  ;;  %v6656_v7 = vsub.f32 %v1454_v2, %v25834_v17 }
 0x5e8   :  { %v24973_v27 = vpop.eup %24972 }
 0x5e9   :  { %v5219_v19 = vmul.f32 %v24973_v27, %v25707_v42  ;;  %v5186_v26 = vmul.f32 1.442695, %v5171_v6  ;;  %v6197_v42 = vand.u32 4294901760, %v25838_v23  ;;  %v6657_v21 = vand.u32 4294901760, %v6656_v7 }
 0x5ea   :  { %v962_v12 = vpop.permute.xlu1 %961 }
 0x5eb   :  { %24974 = vpow2.f32 %v5186_v26  ;;  %22790 = vmatmul.mubr.f32.vlgmr.msra.gmra.mrb[8].mxu0 %v25734_v61  ;;  %v6576_v8 = vsel %vm1523_vm2, %v5219_v19, 0  ;;  %v6198_v44 = vsub.f32 %v25838_v23, %v6197_v42  ;;  %v6658_v1 = vsub.f32 %v6656_v7, %v6657_v21 }
 0x5ec   :  { %22793 = vmatpush3.msra.mxu0 %v25775_v34  ;;  %22820 = vmatmul.mubr.f32.vlgmr.msra.gmra.mrb[10].mxu1 %v25759_v5  ;;  %v25846_v20 = vand.u32 4294901760, %v6576_v8 }
 0x5ed   :  { %22823 = vmatpush3.msra.mxu1 %v25777_v22  ;;  %22794 = vmatprep.mubr.msk.f32.mxu0 %vm25098_vm1, %v25097_v48  ;;  %v6199_v15 = vand.u32 4294901760, %v6198_v44  ;;  %v6659_v47 = vand.u32 4294901760, %v6658_v1 }
 0x5ee   :  { %22824 = vmatprep.mubr.msk.f32.mxu1 %vm25098_vm1, %v25097_v48  ;;  %22827 = vmatprep.subr.mxu0 %v25097_v48  ;;  %v6645_v39 = vsub.f32 %v6576_v8, %v25846_v20  ;;  %v966_v34 = vpop.permute.xlu1 %965 }
 0x5ef   :  { %22857 = vmatprep.subr.mxu1 %v25097_v48 }
 0x5f0   :  { %v6646_v41 = vand.u32 4294901760, %v6645_v39 }
 0x5f2   :  { %v6647_v45 = vsub.f32 %v6645_v39, %v6646_v41 }
 0x5f3   :  { %22795 = vmatmul.mubr.f32.vlgmr.msra.gmra.mrb[8].mxu0 %v25734_v61 }
 0x5f4   :  { %22825 = vmatmul.mubr.f32.vlgmr.msra.gmra.mrb[10].mxu1 %v25759_v5  ;;  %22828 = vmatpush3.msra.mxu0 %v25832_v16  ;;  %v6648_v4 = vand.u32 4294901760, %v6647_v45  ;;  %v6210_v5 = vand.u32 4294901760, %v6209_v43 }
 0x5f5   :  { %v25861_v46 = vpop.eup %24974  ;;  %22858 = vmatpush3.msra.mxu1 %v25834_v17  ;;  %22829 = vmatprep.mubr.msk.f32.mxu0 %vm25098_vm1, %v25097_v48 }
 0x5f6   :  { %22832 = vmatprep.subr.mxu0 %v25097_v48  ;;  %22859 = vmatprep.mubr.msk.f32.mxu1 %vm25098_vm1, %v25097_v48  ;;  %v5209_v61 = vsel %vm1523_vm2, %v25861_v46, 0.0 }
 0x5f7   :  { %22862 = vmatprep.subr.mxu1 %v25097_v48  ;;  %5210 = vadd.xlane.f32.xlu1 %v5209_v61 }
 0x5f8   :  { %22830 = vmatmul.mubr.f32.vlgmr.msra.gmra.mrb[10].mxu0 %v6199_v15  ;;  %22860 = vmatmul.mubr.f32.vlgmr.msra.gmra.mrb[12].mxu1 %v6648_v4 }
 0x5f9   :  { %22833 = vmatpush3.msra.mxu0 %v6210_v5  ;;  %22863 = vmatpush3.msra.mxu1 %v6659_v47 }
 0x5fa   :  { %22834 = vmatprep.mubr.msk.f32.mxu0 %vm25098_vm1, %v25097_v48  ;;  %22837 = vmatprep.subr.mxu0 %v25097_v48 }
 0x5fb   :  { %22864 = vmatprep.mubr.msk.f32.mxu1 %vm25098_vm1, %v25097_v48  ;;  %22867 = vmatprep.subr.mxu1 %v25097_v48 }
 0x5fd   :  { %v5202_v13 = vpop.xlane.xlu0 %5201 }
 0x5fe   :  { %24976 = vrcp.f32 %v5202_v13 }
 0x600   :  { %22835 = vmatmul.mubr.f32.vlgmr.msra.gmra.mrb[10].mxu0 %v25828_v11  ;;  %22865 = vmatmul.mubr.f32.vlgmr.msra.gmra.mrb[12].mxu1 %v25846_v20 }
 0x601   :  { %22838 = vmatpush3.msra.mxu0 %v6207_v33  ;;  %22868 = vmatpush3.msra.mxu1 %v6656_v7  ;;  %v958_v50 = vpop.permute.xlu0 %957 }
 0x602   :  { %22839 = vmatprep.mubr.msk.f32.mxu0 %vm25098_vm1, %v25097_v48  ;;  %22842 = vmatprep.subr.mxu0 %v25097_v48  ;;  %v1047_v37 = vcombine.low %v958_v50, %v966_v34  ;;  %v1048_v18 = vcombine.high %v958_v50, %v966_v34 }
 0x603   :  { %22869 = vmatprep.mubr.msk.f32.mxu1 %vm25098_vm1, %v25097_v48  ;;  %22872 = vmatprep.subr.mxu1 %v25097_v48 }
 0x604   :  { %v1062_v58 = vrot.slane %v1048_v18, %v25222_v29 }
 0x608   :  { %22840 = vmatmul.mubr.f32.vlgmr.msra.gmra.mrb[10].mxu0 %v25838_v23  ;;  %22870 = vmatmul.mubr.f32.vlgmr.msra.gmra.mrb[12].mxu1 %v6645_v39  ;;  %v24977_v22 = vpop.eup %24976 }
 0x609   :  { %22843 = vmatpush3.msra.mxu0 %v25832_v16  ;;  %22873 = vmatpush3.msra.mxu1 %v25834_v17  ;;  %v5221_v36 = vmul.f32 %v24977_v22, %v25715_v32  ;;  %v1055_v32 = vrot.slane %v1047_v37, %v25222_v29 }
 0x60a   :  { %22844 = vmatprep.mubr.msk.f32.mxu0 %vm25098_vm1, %v25097_v48  ;;  %22847 = vmatprep.subr.mxu0 %v25097_v48 }
 0x60b   :  { %22874 = vmatprep.mubr.msk.f32.mxu1 %vm25098_vm1, %v25097_v48  ;;  %22877 = vmatprep.subr.mxu1 %v25097_v48  ;;  %v7025_v9 = vsel %vm1523_vm2, %v5221_v36, 0 }
 0x60c   :  { %v25923_v60 = vand.u32 4294901760, %v7025_v9 }
 0x610   :  { %22845 = vmatmul.mubr.f32.vlgmr.msra.gmra.mrb[10].mxu0 %v6197_v42  ;;  %22875 = vmatmul.mubr.f32.vlgmr.msra.gmra.mrb[12].mxu1 %v6646_v41 }
 0x611   :  { %22848 = vmatpush3.msra.mxu0 %v6208_v40  ;;  %22878 = vmatpush3.msra.mxu1 %v6657_v21 }
 0x612   :  { %22849 = vmatprep.mubr.msk.f32.mxu0 %vm25098_vm1, %v25097_v48  ;;  %22852 = vmatprep.subr.mxu0 %v25097_v48 }
 0x613   :  { %22879 = vmatprep.mubr.msk.f32.mxu1 %vm25098_vm1, %v25097_v48  ;;  %22882 = vmatprep.subr.mxu1 %v25097_v48 }
 0x618   :  { %22850 = vmatmul.mubr.f32.vlgmr.msra.gmra.mrb[10].mxu0 %v25828_v11  ;;  %22880 = vmatmul.mubr.f32.vlgmr.msra.gmra.mrb[12].mxu1 %v25846_v20 }
 0x619   :  { %22853 = vmatpush3.msra.mxu0 %v25832_v16  ;;  %22883 = vmatpush3.msra.mxu1 %v25834_v17 }
 0x61a   :  { %22854 = vmatprep.mubr.msk.f32.mxu0 %vm25098_vm1, %v25097_v48  ;;  %22884 = vmatprep.mubr.msk.f32.mxu1 %vm25098_vm1, %v25097_v48 }
 0x61b   :  { %22887 = vmatprep.subr.mxu0 %v25097_v48  ;;  %22917 = vmatprep.subr.mxu1 %v25097_v48 }
 0x61f   :  { %v5205_v51 = vpop.xlane.xlu1 %5204 }
 0x620   :  { %24978 = vrcp.f32 %v5205_v51  ;;  %22855 = vmatmul.mubr.f32.vlgmr.msra.gmra.mrb[10].mxu0 %v25828_v11  ;;  %22885 = vmatmul.mubr.f32.vlgmr.msra.gmra.mrb[12].mxu1 %v25846_v20  ;;  %v7094_v11 = vsub.f32 %v7025_v9, %v25923_v60 }
 0x621   :  { %22889 = vmatprep.mubr.msk.f32.mxu0 %vm25098_vm1, %v25097_v48  ;;  %22919 = vmatprep.mubr.msk.f32.mxu1 %vm25098_vm1, %v25097_v48 }
 0x623   :  { %v970_v53 = vpop.permute.xlu1 %969 }
 0x624   :  { %v1063_v55 = vcombine.low %v962_v12, %v970_v53  ;;  %v1064_v57 = vcombine.high %v962_v12, %v970_v53 }
 0x626   :  { %v1071_v59 = vrot.slane %v1063_v55, %v25222_v29  ;;  %v1078_v25 = vrot.slane %v1064_v57, %v25222_v29 }
 0x628   :  { %v1079_v62 = vcombine.low %v1055_v32, %v1071_v59  ;;  %v1080_v63 = vcombine.high %v1055_v32, %v1071_v59  ;;  %v1095_v24 = vcombine.low %v1062_v58, %v1078_v25  ;;  %v1096_v28 = vcombine.high %v1062_v58, %v1078_v25 }
 0x62a   :  { %v24979_v30 = vpop.eup %24978  ;;  %v1087_v31 = vrot.slane %v1079_v62, %v25239_v35  ;;  %v1094_v0 = vrot.slane %v1080_v63, %v25239_v35  ;;  %v1103_v2 = vrot.slane %v1095_v24, %v25239_v35  ;;  %v1110_v3 = vrot.slane %v1096_v28, %v25239_v35 }
 0x62b   :  { %v5223_v38 = vmul.f32 %v24979_v30, %v25723_v14  ;;  %v7095_v14 = vand.u32 4294901760, %v7094_v11 }
 0x62c   :  { %v1455_v6 = vcombine.low %v1087_v31, %v1094_v0  ;;  %v21698_v16 = vcombine.high %v1087_v31, %v1094_v0  ;;  %v1471_v17 = vcombine.low %v1103_v2, %v1110_v3  ;;  %v21699_v27 = vcombine.high %v1103_v2, %v1110_v3 }
 0x62d   :  { %v7474_v19 = vsel %vm1523_vm2, %v5223_v38, 0  ;;  %v7096_v41 = vsub.f32 %v7094_v11, %v7095_v14 }
 0x62e   :  { %v25933_v26 = vrot.slane %v1455_v6, %v25222_v29  ;;  %v25936_v23 = vrot.slane %v21698_v16, %v25222_v29  ;;  %v25939_v33 = vrot.slane %v1471_v17, %v25222_v29  ;;  %v25942_v7 = vrot.slane %v21699_v27, %v25222_v29 }
 0x62f   :  { %v25944_v8 = vand.u32 4294901760, %v7474_v19  ;;  %v7097_v15 = vand.u32 4294901760, %v7096_v41 }
 0x630   :  { %v1487_v20 = vcombine.low %v25933_v26, %v25936_v23  ;;  %v1503_v42 = vcombine.low %v25939_v33, %v25942_v7  ;;  %v1488_v37 = vcombine.high %v25933_v26, %v25936_v23  ;;  %v1504_v18 = vcombine.high %v25939_v33, %v25942_v7 }
 0x631   :  { %v7543_v39 = vsub.f32 %v7474_v19, %v25944_v8 }
 0x632   :  { %v1495_v40 = vrot.slane %v1487_v20, %v25239_v35  ;;  %v1511_v21 = vrot.slane %v1503_v42, %v25239_v35  ;;  %v1502_v53 = vrot.slane %v1488_v37, %v25239_v35  ;;  %v1518_v55 = vrot.slane %v1504_v18, %v25239_v35 }
 0x633   :  { %v7544_v44 = vand.u32 4294901760, %v7543_v39 }
 0x634   :  { %v1519_v45 = vcombine.low %v1495_v40, %v1511_v21  ;;  %v1520_v43 = vcombine.high %v1495_v40, %v1511_v21  ;;  %v1521_v9 = vcombine.low %v1502_v53, %v1518_v55  ;;  %v1522_v32 = vcombine.high %v1502_v53, %v1518_v55 }
 0x635   :  { %v7545_v1 = vsub.f32 %v7543_v39, %v7544_v44 }
 0x636   :  { %v7028_v4 = vand.u32 4294901760, %v1519_v45  ;;  %v7477_v61 = vand.u32 4294901760, %v1520_v43  ;;  %v7926_v58 = vand.u32 4294901760, %v1521_v9  ;;  %v25996_v59 = vand.u32 4294901760, %v1522_v32 }
 0x637   :  { %v7546_v5 = vand.u32 4294901760, %v7545_v1 }
 0x638   :  { %22888 = vmatpush3.msra.mxu0 %v7028_v4  ;;  %v7105_v47 = vsub.f32 %v1519_v45, %v7028_v4  ;;  %22918 = vmatpush3.msra.mxu1 %v7477_v61  ;;  %v7554_v13 = vsub.f32 %v1520_v43, %v7477_v61  ;;  %v8003_v63 = vsub.f32 %v1521_v9, %v7926_v58 }
 0x639   :  { %22890 = vmatmul.mubr.f32.vlgmr.msra.gmra.mrb[12].mxu0 %v7097_v15  ;;  %22920 = vmatmul.mubr.f32.vlgmr.msra.gmra.mrb[14].mxu1 %v7546_v5  ;;  %v8452_v6 = vsub.f32 %v1522_v32, %v25996_v59 }
 0x63a   :  { %22892 = vmatprep.subr.mxu0 %v25097_v48  ;;  %22922 = vmatprep.subr.mxu1 %v25097_v48  ;;  %v7106_v12 = vand.u32 4294901760, %v7105_v47  ;;  %v7555_v34 = vand.u32 4294901760, %v7554_v13  ;;  %v8004_v28 = vand.u32 4294901760, %v8003_v63 }
 0x63b   :  { %22894 = vmatprep.mubr.msk.f32.mxu0 %vm25098_vm1, %v25097_v48  ;;  %22924 = vmatprep.mubr.msk.f32.mxu1 %vm25098_vm1, %v25097_v48  ;;  %v8453_v19 = vand.u32 4294901760, %v8452_v6 }
 0x63c   :  { %v7107_v22 = vsub.f32 %v7105_v47, %v7106_v12  ;;  %v7556_v50 = vsub.f32 %v7554_v13, %v7555_v34  ;;  %v8005_v0 = vsub.f32 %v8003_v63, %v8004_v28 }
 0x63d   :  { %v8454_v33 = vsub.f32 %v8452_v6, %v8453_v19 }
 0x63e   :  { %v7108_v51 = vand.u32 4294901760, %v7107_v22  ;;  %v7557_v36 = vand.u32 4294901760, %v7556_v50  ;;  %v8006_v38 = vand.u32 4294901760, %v8005_v0 }
 0x640   :  { %22893 = vmatpush3.msra.mxu0 %v7108_v51  ;;  %22923 = vmatpush3.msra.mxu1 %v7557_v36 }
 0x641   :  { %22895 = vmatmul.mubr.f32.vlgmr.msra.gmra.mrb[12].mxu0 %v25923_v60  ;;  %22897 = vmatprep.subr.mxu0 %v25097_v48 }
 0x642   :  { %22925 = vmatmul.mubr.f32.vlgmr.msra.gmra.mrb[14].mxu1 %v25944_v8  ;;  %22927 = vmatprep.subr.mxu1 %v25097_v48 }
 0x643   :  { %22898 = vmatpush3.msra.mxu0 %v7105_v47  ;;  %22928 = vmatpush3.msra.mxu1 %v7554_v13 }
 0x644   :  { %22899 = vmatprep.mubr.msk.f32.mxu0 %vm25098_vm1, %v25097_v48  ;;  %22902 = vmatprep.subr.mxu0 %v25097_v48 }
 0x645   :  { %22929 = vmatprep.mubr.msk.f32.mxu1 %vm25098_vm1, %v25097_v48  ;;  %22932 = vmatprep.subr.mxu1 %v25097_v48 }
 0x649   :  { %22900 = vmatmul.mubr.f32.vlgmr.msra.gmra.mrb[12].mxu0 %v7094_v11 }
 0x64a   :  { %22903 = vmatpush3.msra.mxu0 %v7028_v4  ;;  %22930 = vmatmul.mubr.f32.vlgmr.msra.gmra.mrb[14].mxu1 %v7543_v39 }
 0x64b   :  { %22933 = vmatpush3.msra.mxu1 %v7477_v61  ;;  %22904 = vmatprep.mubr.msk.f32.mxu0 %vm25098_vm1, %v25097_v48 }
 0x64c   :  { %22907 = vmatprep.subr.mxu0 %v25097_v48  ;;  %22934 = vmatprep.mubr.msk.f32.mxu1 %vm25098_vm1, %v25097_v48 }
 0x64d   :  { %22937 = vmatprep.subr.mxu1 %v25097_v48 }
 0x651   :  { %22905 = vmatmul.mubr.f32.vlgmr.msra.gmra.mrb[12].mxu0 %v7095_v14 }
 0x652   :  { %22908 = vmatpush3.msra.mxu0 %v7106_v12  ;;  %22935 = vmatmul.mubr.f32.vlgmr.msra.gmra.mrb[14].mxu1 %v7544_v44 }
 0x653   :  { %22938 = vmatpush3.msra.mxu1 %v7555_v34  ;;  %22909 = vmatprep.mubr.msk.f32.mxu0 %vm25098_vm1, %v25097_v48 }
 0x654   :  { %22912 = vmatprep.subr.mxu0 %v25097_v48  ;;  %22939 = vmatprep.mubr.msk.f32.mxu1 %vm25098_vm1, %v25097_v48 }
 0x655   :  { %22942 = vmatprep.subr.mxu1 %v25097_v48 }
 0x659   :  { %v5208_v57 = vpop.xlane.xlu0 %5207  ;;  %22910 = vmatmul.mubr.f32.vlgmr.msra.gmra.mrb[12].mxu0 %v25923_v60 }
 0x65a   :  { %24980 = vrcp.f32 %v5208_v57  ;;  %22913 = vmatpush3.msra.mxu0 %v7028_v4  ;;  %22940 = vmatmul.mubr.f32.vlgmr.msra.gmra.mrb[14].mxu1 %v25944_v8 }
 0x65b   :  { %22943 = vmatpush3.msra.mxu1 %v7477_v61  ;;  %22914 = vmatprep.mubr.msk.f32.mxu0 %vm25098_vm1, %v25097_v48 }
 0x65c   :  { %22944 = vmatprep.mubr.msk.f32.mxu1 %vm25098_vm1, %v25097_v48  ;;  %22947 = vmatprep.subr.mxu0 %v25097_v48 }
 0x65d   :  { %22977 = vmatprep.subr.mxu1 %v25097_v48 }
 0x661   :  { %22915 = vmatmul.mubr.f32.vlgmr.msra.gmra.mrb[12].mxu0 %v25923_v60 }
 0x662   :  { %22945 = vmatmul.mubr.f32.vlgmr.msra.gmra.mrb[14].mxu1 %v25944_v8  ;;  %22948 = vmatpush3.msra.mxu0 %v7926_v58  ;;  %v8455_v8 = vand.u32 4294901760, %v8454_v33 }
 0x663   :  { %22978 = vmatpush3.msra.mxu1 %v25996_v59  ;;  %22949 = vmatprep.mubr.msk.f32.mxu0 %vm25098_vm1, %v25097_v48 }
 0x664   :  { %v24981_v25 = vpop.eup %24980  ;;  %22952 = vmatprep.subr.mxu0 %v25097_v48  ;;  %22979 = vmatprep.mubr.msk.f32.mxu1 %vm25098_vm1, %v25097_v48 }
 0x665   :  { %v5225_v62 = vmul.f32 %v24981_v25, %v25779_v49  ;;  %22982 = vmatprep.subr.mxu1 %v25097_v48 }
 0x667   :  { %v7923_v60 = vsel %vm1523_vm2, %v5225_v62, 0 }
 0x668   :  { %v7991_v24 = vand.u32 4294901760, %v7923_v60 }
 0x66a   :  { %v7992_v30 = vsub.f32 %v7923_v60, %v7991_v24 }
 0x66c   :  { %v7993_v31 = vand.u32 4294901760, %v7992_v30 }
 0x66e   :  { %v7994_v2 = vsub.f32 %v7992_v30, %v7993_v31 }
 0x670   :  { %v7995_v3 = vand.u32 4294901760, %v7994_v2 }
 0x672   :  { %22950 = vmatmul.mubr.f32.vlgmr.msra.gmra.mrb[14].mxu0 %v7995_v3 }
 0x673   :  { %22953 = vmatpush3.msra.mxu0 %v8006_v38  ;;  %22954 = vmatprep.mubr.msk.f32.mxu0 %vm25098_vm1, %v25097_v48 }
 0x674   :  { %22957 = vmatprep.subr.mxu0 %v25097_v48 }
 0x67a   :  { %22955 = vmatmul.mubr.f32.vlgmr.msra.gmra.mrb[14].mxu0 %v7991_v24 }
 0x67b   :  { %22958 = vmatpush3.msra.mxu0 %v8003_v63  ;;  %22959 = vmatprep.mubr.msk.f32.mxu0 %vm25098_vm1, %v25097_v48 }
 0x67c   :  { %22962 = vmatprep.subr.mxu0 %v25097_v48 }
 0x682   :  { %22960 = vmatmul.mubr.f32.vlgmr.msra.gmra.mrb[14].mxu0 %v7992_v30 }
 0x683   :  { %22963 = vmatpush3.msra.mxu0 %v7926_v58  ;;  %22964 = vmatprep.mubr.msk.f32.mxu0 %vm25098_vm1, %v25097_v48 }
 0x684   :  { %v5211_v49 = vpop.xlane.xlu1 %5210  ;;  %22967 = vmatprep.subr.mxu0 %v25097_v48 }
 0x685   :  { %24982 = vrcp.f32 %v5211_v49 }
 0x68a   :  { %22965 = vmatmul.mubr.f32.vlgmr.msra.gmra.mrb[14].mxu0 %v7993_v31 }
 0x68b   :  { %22968 = vmatpush3.msra.mxu0 %v8004_v28  ;;  %22969 = vmatprep.mubr.msk.f32.mxu0 %vm25098_vm1, %v25097_v48 }
 0x68c   :  { %22972 = vmatprep.subr.mxu0 %v25097_v48 }
 0x68f   :  { %v24983_v11 = vpop.eup %24982 }
 0x690   :  { %v5227_v16 = vmul.f32 %v24983_v11, %v25861_v46 }
 0x692   :  { %22970 = vmatmul.mubr.f32.vlgmr.msra.gmra.mrb[14].mxu0 %v7991_v24  ;;  %v8372_v17 = vsel %vm1523_vm2, %v5227_v16, 0 }
 0x693   :  { %22973 = vmatpush3.msra.mxu0 %v7926_v58  ;;  %22974 = vmatprep.mubr.msk.f32.mxu0 %vm25098_vm1, %v25097_v48  ;;  %v8440_v27 = vand.u32 4294901760, %v8372_v17 }
 0x695   :  { %v8441_v26 = vsub.f32 %v8372_v17, %v8440_v27 }
 0x697   :  { %v8442_v23 = vand.u32 4294901760, %v8441_v26 }
 0x699   :  { %v8443_v7 = vsub.f32 %v8441_v26, %v8442_v23 }
 0x69a   :  { %22975 = vmatmul.mubr.f32.vlgmr.msra.gmra.mrb[14].mxu0 %v7991_v24 }
 0x69b   :  { %v8444_v14 = vand.u32 4294901760, %v8443_v7 }
 0x69d   :  { %22980 = vmatmul.mubr.f32.vlgmr.msra.gmra.mrb[16].mxu1 %v8444_v14 }
 0x69e   :  { %22983 = vmatpush3.msra.mxu1 %v8455_v8  ;;  %22984 = vmatprep.mubr.msk.f32.mxu1 %vm25098_vm1, %v25097_v48 }
 0x69f   :  { %22987 = vmatprep.subr.mxu1 %v25097_v48 }
 0x6a5   :  { %22985 = vmatmul.mubr.f32.vlgmr.msra.gmra.mrb[16].mxu1 %v8440_v27 }
 0x6a6   :  { %22988 = vmatpush3.msra.mxu1 %v8452_v6  ;;  %22989 = vmatprep.mubr.msk.f32.mxu1 %vm25098_vm1, %v25097_v48 }
 0x6a7   :  { %22992 = vmatprep.subr.mxu1 %v25097_v48 }
 0x6ad   :  { %22990 = vmatmul.mubr.f32.vlgmr.msra.gmra.mrb[16].mxu1 %v8441_v26 }
 0x6ae   :  { %22993 = vmatpush3.msra.mxu1 %v25996_v59  ;;  %22994 = vmatprep.mubr.msk.f32.mxu1 %vm25098_vm1, %v25097_v48 }
 0x6af   :  { %22997 = vmatprep.subr.mxu1 %v25097_v48 }
 0x6b5   :  { %22995 = vmatmul.mubr.f32.vlgmr.msra.gmra.mrb[16].mxu1 %v8442_v23 }
 0x6b6   :  { %22998 = vmatpush3.msra.mxu1 %v8453_v19  ;;  %22999 = vmatprep.mubr.msk.f32.mxu1 %vm25098_vm1, %v25097_v48 }
 0x6b7   :  { %23002 = vmatprep.subr.mxu1 %v25097_v48 }
 0x6bd   :  { %23000 = vmatmul.mubr.f32.vlgmr.msra.gmra.mrb[16].mxu1 %v8440_v27 }
 0x6be   :  { %23003 = vmatpush3.msra.mxu1 %v25996_v59  ;;  %23004 = vmatprep.mubr.msk.f32.mxu1 %vm25098_vm1, %v25097_v48 }
 0x6c5   :  { %23005 = vmatmul.mubr.f32.vlgmr.msra.gmra.mrb[16].mxu1 %v8440_v27 }
 0x6c6   :  { %v5673_v46 = vpop.f32.mrb[8].mxu0 }
 0x6c7   :  { %v6122_v20 = vpop.f32.mrb[10].mxu1  ;;  %v22796_v42 = vpop.f32.mrb[9].mxu0 }
 0x6c8   :  { %v22826_v39 = vpop.f32.mrb[11].mxu1 }
 0x6f3   :  { %v6571_v40 = vpop.f32.mrb[10].mxu0  ;;  %v7020_v21 = vpop.f32.mrb[12].mxu1 }
 0x6f4   :  { %v8820_v41 = vcombine.low %v5673_v46, %v6571_v40  ;;  %v8821_v44 = vcombine.high %v5673_v46, %v6571_v40  ;;  %v8836_v45 = vcombine.low %v6122_v20, %v7020_v21  ;;  %v8837_v43 = vcombine.high %v6122_v20, %v7020_v21  ;;  %v22856_v1 = vpop.f32.mrb[11].mxu0  ;;  %v22886_v4 = vpop.f32.mrb[13].mxu1 }
 0x6f6   :  { %v8828_v61 = vrot.slane %v8820_v41, %v25222_v29  ;;  %v8835_v15 = vrot.slane %v8821_v44, %v25222_v29  ;;  %v8844_v5 = vrot.slane %v8836_v45, %v25222_v29  ;;  %v8851_v47 = vrot.slane %v8837_v43, %v25222_v29 }
 0x6f8   :  { %v8852_v13 = vcombine.low %v8828_v61, %v8844_v5  ;;  %v8853_v12 = vcombine.high %v8828_v61, %v8844_v5  ;;  %v8868_v34 = vcombine.low %v8835_v15, %v8851_v47  ;;  %v8869_v22 = vcombine.high %v8835_v15, %v8851_v47 }
 0x6fa   :  { %v8860_v50 = vrot.slane %v8852_v13, %v25239_v35  ;;  %v8867_v51 = vrot.slane %v8853_v12, %v25239_v35  ;;  %v8876_v36 = vrot.slane %v8868_v34, %v25239_v35  ;;  %v8883_v37 = vrot.slane %v8869_v22, %v25239_v35 }
 0x6fc   :  { %v8956_v18 = vcombine.low %v8860_v50, %v8867_v51  ;;  %v21700_v53 = vcombine.high %v8860_v50, %v8867_v51  ;;  %v8972_v55 = vcombine.low %v8876_v36, %v8883_v37  ;;  %v21701_v57 = vcombine.high %v8876_v36, %v8883_v37 }
 0x6fe   :  { %v8963_v9 = vrot.slane %v8956_v18, %v25222_v29  ;;  %v8971_v32 = vrot.slane %v21700_v53, %v25222_v29  ;;  %v8979_v58 = vrot.slane %v8972_v55, %v25222_v29  ;;  %v8987_v59 = vrot.slane %v21701_v57, %v25222_v29 }
 0x700   :  { %v8988_v25 = vcombine.low %v8963_v9, %v8971_v32  ;;  %v9004_v62 = vcombine.low %v8979_v58, %v8987_v59  ;;  %v8989_v63 = vcombine.high %v8963_v9, %v8971_v32  ;;  %v9005_v60 = vcombine.high %v8979_v58, %v8987_v59 }
 0x702   :  { %v8996_v24 = vrot.slane %v8988_v25, %v25239_v35  ;;  %v9012_v28 = vrot.slane %v9004_v62, %v25239_v35  ;;  %v9003_v30 = vrot.slane %v8989_v63, %v25239_v35  ;;  %v9019_v31 = vrot.slane %v9005_v60, %v25239_v35 }
 0x704   :  { %v9021_v0 = vcombine.high %v8996_v24, %v9012_v28  ;;  %v9020_v2 = vcombine.low %v8996_v24, %v9012_v28  ;;  %v9022_v3 = vcombine.low %v9003_v30, %v9019_v31  ;;  %v9023_v38 = vcombine.high %v9003_v30, %v9019_v31 }
 0x706   :  { %9094 = vrot.lane.b32.xlu0 %v9021_v0, %s25090_s8 }
 0x70a   :  { %9102 = vrot.lane.b32.xlu0 %v9022_v3, %s25100_s25 }
 0x70e   :  { %9110 = vrot.lane.b32.xlu0 %v9023_v38, %s25101_s26  ;;  %v44_v38 = vld [vmem:[%s27446_s2] sm:$0xff] }
 0x734   :  { %v7469_v49 = vpop.f32.mrb[12].mxu0 }
 0x735   :  { %v7918_v11 = vpop.f32.mrb[14].mxu1  ;;  %v22916_v6 = vpop.f32.mrb[13].mxu0 }
 0x736   :  { %v22946_v16 = vpop.f32.mrb[15].mxu1 }
 0x737   :  { %v46_v16 = vld [vmem:[%s27446_s2 + $0x10] sm:$0xff] }
 0x76d   :  { %v8367_v17 = vpop.f32.mrb[14].mxu0 }
 0x76e   :  { %v8888_v27 = vcombine.low %v7469_v49, %v8367_v17  ;;  %v8889_v19 = vcombine.high %v7469_v49, %v8367_v17  ;;  %v22976_v26 = vpop.f32.mrb[15].mxu0  ;;  %v45_v49 = vld [vmem:[%s27446_s2 + $0x8] sm:$0xff]  ;;  %v47_v17 = vld [vmem:[%s27446_s2 + $0x18] sm:$0xff] }
 0x76f   :  { %v9134_v6 = vand.u32 4294901760, %v45_v49  ;;  %v9140_v26 = vand.u32 4294901760, %v47_v17 }
 0x770   :  { %v8896_v4 = vrot.slane %v8888_v27, %v25222_v29  ;;  %v8903_v61 = vrot.slane %v8889_v19, %v25222_v29  ;;  %v9137_v19 = vand.u32 4294901760, %v46_v16 }
 0x778   :  { %v9095_v23 = vpop.permute.xlu0 %9094 }
 0x779   :  { %v9116_v7 = vsel %vm1523_vm2, %v9020_v2, %v9095_v23 }
 0x77c   :  { %v9103_v33 = vpop.permute.xlu0 %9102 }
 0x77d   :  { %v9119_v14 = vsel %vm9118_vm3, %v9116_v7, %v9103_v33  ;;  %v9228_v33 = vsub.f32 %v45_v49, %v9134_v6  ;;  %v26106_v7 = vpack.c.bf16 %v9140_v26, %v9137_v19 }
 0x780   :  { %v9111_v8 = vpop.permute.xlu0 %9110 }
 0x781   :  { %v9122_v46 = vsel %vm9121_vm4, %v9119_v14, %v9111_v8  ;;  %v9229_v8 = vand.u32 4294901760, %v9228_v33 }
 0x782   :  { %v9125_v20 = vsel %vm61_vm0, %v9122_v46, 0 }
 0x783   :  { %v26064_v42 = vand.u32 4294901760, %v9125_v20 }
 0x785   :  { %v26067_v39 = vsub.f32 %v9125_v20, %v26064_v42  ;;  %v9235_v20 = vsub.f32 %v46_v16, %v9137_v19 }
 0x787   :  { %v9201_v40 = vand.u32 4294901760, %v26067_v39 }
 0x789   :  { %v9202_v21 = vsub.f32 %v26067_v39, %v9201_v40 }
 0x78b   :  { %v9203_v41 = vand.u32 4294901760, %v9202_v21  ;;  %v9242_v21 = vsub.f32 %v47_v17, %v9140_v26 }
 0x78d   :  { %23015 = vmatprep.mubr.f32.mxu0 %v9203_v41  ;;  %v9230_v41 = vsub.f32 %v9228_v33, %v9229_v8 }
 0x798   :  { %v8816_v44 = vpop.f32.mrb[16].mxu1 }
 0x799   :  { %v8904_v45 = vcombine.low %v7918_v11, %v8816_v44  ;;  %v8905_v43 = vcombine.high %v7918_v11, %v8816_v44  ;;  %v23006_v1 = vpop.f32.mrb[17].mxu1  ;;  %v9131_v11 = vand.u32 4294901760, %v44_v38 }
 0x79a   :  { %v9231_v1 = vand.u32 4294901760, %v9230_v41 }
 0x79b   :  { %v8912_v15 = vrot.slane %v8904_v45, %v25222_v29  ;;  %v8919_v5 = vrot.slane %v8905_v43, %v25222_v29  ;;  %v26102_v27 = vpack.c.bf16 %v9134_v6, %v9131_v11  ;;  %v9221_v23 = vsub.f32 %v44_v38, %v9131_v11 }
 0x79c   :  { %v9236_v45 = vand.u32 4294901760, %v9235_v20  ;;  %v9243_v43 = vand.u32 4294901760, %v9242_v21 }
 0x79d   :  { %v8920_v47 = vcombine.low %v8896_v4, %v8912_v15  ;;  %v8921_v13 = vcombine.high %v8896_v4, %v8912_v15  ;;  %v8936_v12 = vcombine.low %v8903_v61, %v8919_v5  ;;  %v8937_v34 = vcombine.high %v8903_v61, %v8919_v5  ;;  %24094 = vmatprep.subr.bf16.mxu0 %v26102_v27 }
 0x79e   :  { %v9222_v14 = vand.u32 4294901760, %v9221_v23  ;;  %24096 = vmatpush3.bf16.msra.mxu0 %v26102_v27  ;;  %v9237_v4 = vsub.f32 %v9235_v20, %v9236_v45  ;;  %v9244_v61 = vsub.f32 %v9242_v21, %v9243_v43 }
 0x79f   :  { %v8928_v22 = vrot.slane %v8920_v47, %v25239_v35  ;;  %v8935_v50 = vrot.slane %v8921_v13, %v25239_v35  ;;  %v8944_v51 = vrot.slane %v8936_v12, %v25239_v35  ;;  %v8951_v36 = vrot.slane %v8937_v34, %v25239_v35  ;;  %24098 = vmatprep.subr.bf16.mxu0 %v26106_v7 }
 0x7a0   :  { %v9223_v46 = vsub.f32 %v9221_v23, %v9222_v14  ;;  %v9238_v5 = vand.u32 4294901760, %v9237_v4  ;;  %v9245_v47 = vand.u32 4294901760, %v9244_v61  ;;  %v24109_v12 = vpack.c.bf16 %v9228_v33, %v9221_v23  ;;  %v48_v33 = vld [vmem:[%s27447_s3] sm:$0xff] }
 0x7a1   :  { %v9024_v37 = vcombine.low %v8928_v22, %v8935_v50  ;;  %v21702_v18 = vcombine.high %v8928_v22, %v8935_v50  ;;  %v9040_v53 = vcombine.low %v8944_v51, %v8951_v36  ;;  %v21703_v55 = vcombine.high %v8944_v51, %v8951_v36 }
 0x7a2   :  { %v9224_v44 = vand.u32 4294901760, %v9223_v46  ;;  %24100 = vmatpush3.bf16.msra.mxu0 %v26106_v7  ;;  %v24105_v13 = vpack.c.bf16 %v9245_v47, %v9238_v5  ;;  %v24113_v34 = vpack.c.bf16 %v9242_v21, %v9235_v20  ;;  %v24125_v22 = vpack.c.bf16 %v9229_v8, %v9222_v14  ;;  %v50_v14 = vld [vmem:[%s27447_s3 + $0x10] sm:$0xff]  ;;  %v51_v20 = vld [vmem:[%s27447_s3 + $0x18] sm:$0xff] }
 0x7a3   :  { %v9031_v57 = vrot.slane %v9024_v37, %v25222_v29  ;;  %v9039_v9 = vrot.slane %v21702_v18, %v25222_v29  ;;  %v9047_v32 = vrot.slane %v9040_v53, %v25222_v29  ;;  %v9055_v58 = vrot.slane %v21703_v55, %v25222_v29 }
 0x7a4   :  { %v24101_v15 = vpack.c.bf16 %v9231_v1, %v9224_v44  ;;  %v24129_v50 = vpack.c.bf16 %v9243_v43, %v9236_v45  ;;  %v9715_v8 = vand.u32 4294901760, %v48_v33  ;;  %v9721_v21 = vand.u32 4294901760, %v50_v14 }
 0x7a5   :  { %v9056_v59 = vcombine.low %v9031_v57, %v9039_v9  ;;  %v9072_v25 = vcombine.low %v9047_v32, %v9055_v58  ;;  %v9057_v62 = vcombine.high %v9031_v57, %v9039_v9  ;;  %v9073_v63 = vcombine.high %v9047_v32, %v9055_v58 }
 0x7a6   :  { %24102 = vmatprep.subr.bf16.mxu0 %v24101_v15  ;;  %v9724_v41 = vand.u32 4294901760, %v51_v20  ;;  %v9805_v43 = vsub.f32 %v48_v33, %v9715_v8  ;;  %v9819_v47 = vsub.f32 %v50_v14, %v9721_v21 }
 0x7a7   :  { %v9064_v60 = vrot.slane %v9056_v59, %v25239_v35  ;;  %v9080_v24 = vrot.slane %v9072_v25, %v25239_v35  ;;  %v9071_v28 = vrot.slane %v9057_v62, %v25239_v35  ;;  %v9087_v30 = vrot.slane %v9073_v63, %v25239_v35 }
 0x7a8   :  { %v26165_v45 = vpack.c.bf16 %v9724_v41, %v9721_v21  ;;  %v9806_v4 = vand.u32 4294901760, %v9805_v43 }
 0x7a9   :  { %v9089_v31 = vcombine.high %v9064_v60, %v9080_v24  ;;  %v9088_v0 = vcombine.low %v9064_v60, %v9080_v24  ;;  %v9090_v2 = vcombine.low %v9071_v28, %v9087_v30  ;;  %v9091_v3 = vcombine.high %v9071_v28, %v9087_v30  ;;  %v25037_v60 = vld [vmem:[#allocation2 + $0x8] sm:$0xff]  ;;  %v25038_v28 = vld [vmem:[#allocation2] sm:$0xff] }
 0x7ab   :  { %9096 = vrot.lane.b32.xlu1 %v9089_v31, %s25090_s8 }
 0x7af   :  { %9104 = vrot.lane.b32.xlu1 %v9090_v2, %s25100_s25 }
 0x7b3   :  { %9112 = vrot.lane.b32.xlu1 %v9091_v3, %s25101_s26 }
 0x81d   :  { %v9097_v51 = vpop.permute.xlu1 %9096 }
 0x81e   :  { %v9117_v37 = vsel %vm1523_vm2, %v9088_v0, %v9097_v51 }
 0x821   :  { %v9105_v36 = vpop.permute.xlu1 %9104 }
 0x822   :  { %v9120_v18 = vsel %vm9118_vm3, %v9117_v37, %v9105_v36 }
 0x825   :  { %v9113_v53 = vpop.permute.xlu1 %9112 }
 0x826   :  { %v9123_v55 = vsel %vm9121_vm4, %v9120_v18, %v9113_v53 }
 0x827   :  { %v9128_v57 = vsel %vm61_vm0, %v9123_v55, 0 }
 0x828   :  { %v9209_v9 = vand.u32 4294901760, %v9128_v57 }
 0x82a   :  { %v9210_v32 = vsub.f32 %v9128_v57, %v9209_v9 }
 0x82c   :  { %v9211_v58 = vand.u32 4294901760, %v9210_v32 }
 0x82e   :  { %v9212_v59 = vsub.f32 %v9210_v32, %v9211_v58 }
 0x830   :  { %v9213_v25 = vand.u32 4294901760, %v9212_v59 }
 0x832   :  { %23016 = vmatmul.mubr.f32.vlgmr.msra.gmra.mrb[16].mxu0 %v9213_v25 }
 0x833   :  { %24104 = vmatpush3.bf16.msra.mxu0 %v24101_v15  ;;  %23026 = vmatprep.mubr.f32.mxu0 %v26064_v42  ;;  %v9807_v15 = vsub.f32 %v9805_v43, %v9806_v4 }
 0x834   :  { %24106 = vmatprep.subr.bf16.mxu0 %v24105_v13 }
 0x837   :  { %24108 = vmatpush3.bf16.msra.mxu0 %v24105_v13  ;;  %v9826_v13 = vsub.f32 %v51_v20, %v9724_v41 }
 0x838   :  { %24110 = vmatprep.subr.bf16.mxu0 %v24109_v12 }
 0x83a   :  { %23027 = vmatmul.mubr.f32.vlgmr.msra.gmra.mrb[16].mxu0 %v9209_v9 }
 0x83b   :  { %24112 = vmatpush3.bf16.msra.mxu0 %v24109_v12  ;;  %23037 = vmatprep.mubr.f32.mxu0 %v26067_v39  ;;  %v9662_v39 = vsub.s32 5, %v25177_v52  ;;  %v9808_v12 = vand.u32 4294901760, %v9807_v15 }
 0x83c   :  { %24114 = vmatprep.subr.bf16.mxu0 %v24113_v34 }
 0x83f   :  { %24116 = vmatpush3.bf16.msra.mxu0 %v24113_v34 }
 0x840   :  { %24118 = vmatprep.subr.bf16.mxu0 %v26102_v27 }
 0x842   :  { %23038 = vmatmul.mubr.f32.vlgmr.msra.gmra.mrb[16].mxu0 %v9210_v32 }
 0x843   :  { %24120 = vmatpush3.bf16.msra.mxu0 %v26102_v27  ;;  %23048 = vmatprep.mubr.f32.mxu0 %v9201_v40  ;;  %v26134_v40 = vld [vmem:[%s27449_s5] sm:$0xff] }
 0x844   :  { %24122 = vmatprep.subr.bf16.mxu0 %v26106_v7  ;;  %v9663_v62 = vrot.slane %v26134_v40, %v9662_v39 }
 0x847   :  { %24124 = vmatpush3.bf16.msra.mxu0 %v26106_v7 }
 0x848   :  { %24126 = vmatprep.subr.bf16.mxu0 %v24125_v22 }
 0x84a   :  { %23049 = vmatmul.mubr.f32.vlgmr.msra.gmra.mrb[16].mxu0 %v9211_v58 }
 0x84b   :  { %24128 = vmatpush3.bf16.msra.mxu0 %v24125_v22  ;;  %23059 = vmatprep.mubr.f32.mxu0 %v26064_v42  ;;  %v9820_v22 = vand.u32 4294901760, %v9819_v47 }
 0x84c   :  { %24130 = vmatprep.subr.bf16.mxu0 %v24129_v50 }
 0x84d   :  { %v9821_v36 = vsub.f32 %v9819_v47, %v9820_v22 }
 0x84f   :  { %24132 = vmatpush3.bf16.msra.mxu0 %v24129_v50  ;;  %v9827_v50 = vand.u32 4294901760, %v9826_v13  ;;  %v9822_v18 = vand.u32 4294901760, %v9821_v36 }
 0x850   :  { %24134 = vmatprep.subr.bf16.mxu0 %v26102_v27 }
 0x851   :  { %v9828_v37 = vsub.f32 %v9826_v13, %v9827_v50  ;;  %v24177_v58 = vpack.c.bf16 %v9827_v50, %v9820_v22  ;;  %v58_v50 = vld [vmem:[%s27448_s4 + $0x30] sm:$0xff] }
 0x852   :  { %23060 = vmatmul.mubr.f32.vlgmr.msra.gmra.mrb[16].mxu0 %v9209_v9 }
 0x853   :  { %24136 = vmatpush3.bf16.msra.mxu0 %v26102_v27  ;;  %23070 = vmatprep.mubr.f32.mxu0 %v26064_v42  ;;  %v9829_v53 = vand.u32 4294901760, %v9828_v37 }
 0x854   :  { %24138 = vmatprep.subr.bf16.mxu0 %v26106_v7 }
 0x855   :  { %v24153_v55 = vpack.c.bf16 %v9829_v53, %v9822_v18  ;;  %v10286_v18 = vand.u32 4294901760, %v58_v50 }
 0x857   :  { %24140 = vmatpush3.bf16.msra.mxu0 %v26106_v7  ;;  %v49_v7 = vld [vmem:[%s27447_s3 + $0x8] sm:$0xff] }
 0x858   :  { %v9718_v46 = vand.u32 4294901760, %v49_v7 }
 0x85a   :  { %23071 = vmatmul.mubr.f32.vlgmr.msra.gmra.mrb[16].mxu0 %v9209_v9  ;;  %v26163_v44 = vpack.c.bf16 %v9718_v46, %v9715_v8  ;;  %v9812_v1 = vsub.f32 %v49_v7, %v9718_v46  ;;  %v24161_v9 = vpack.c.bf16 %v9826_v13, %v9819_v47  ;;  %v56_v47 = vld [vmem:[%s27448_s4 + $0x20] sm:$0xff] }
 0x85b   :  { %v10280_v22 = vand.u32 4294901760, %v56_v47 }
 0x85c   :  { %24142 = vmatprep.subr.bf16.mxu1 %v26163_v44  ;;  %v9813_v61 = vand.u32 4294901760, %v9812_v1  ;;  %v24157_v57 = vpack.c.bf16 %v9812_v1, %v9805_v43 }
 0x85d   :  { %24144 = vmatpush3.bf16.msra.mxu1 %v26163_v44 }
 0x85e   :  { %24146 = vmatprep.subr.bf16.mxu1 %v26165_v45  ;;  %v9814_v5 = vsub.f32 %v9812_v1, %v9813_v61  ;;  %v24173_v32 = vpack.c.bf16 %v9813_v61, %v9806_v4  ;;  %v53_v4 = vld [vmem:[%s27448_s4 + $0x8] sm:$0xff] }
 0x85f   :  { %v10271_v15 = vand.u32 4294901760, %v53_v4 }
 0x860   :  { %v9815_v34 = vand.u32 4294901760, %v9814_v5 }
 0x861   :  { %24148 = vmatpush3.bf16.msra.mxu1 %v26165_v45 }
 0x862   :  { %v24149_v51 = vpack.c.bf16 %v9815_v34, %v9808_v12  ;;  %v57_v34 = vld [vmem:[%s27448_s4 + $0x28] sm:$0xff] }
 0x863   :  { %v10283_v36 = vand.u32 4294901760, %v57_v34 }
 0x864   :  { %24150 = vmatprep.subr.bf16.mxu1 %v24149_v51 }
 0x92d   :  { %v23072_v63 = vpop.f32.mrb[16].mxu0 }
 0x92e   :  { %v9659_v24 = vadd.f32 %v25037_v60, %v23072_v63  ;;  %v9648_v42 = vpop.f32.mrb[17].mxu0 }
 0x92f   :  { %v9658_v30 = vadd.f32 %v25038_v28, %v9648_v42  ;;  %v9694_v42 = vsub.s32 2, %v25177_v52  ;;  %v9700_v28 = vsub.s32 3, %v25177_v52 }
 0x930   :  { %v26139_v31 = vadd.f32 %v9663_v62, %v9659_v24 }
 0x931   :  { %v26141_v0 = vadd.f32 %v9663_v62, %v9658_v30  ;;  %v9695_v30 = vrot.slane %v26134_v40, %v9694_v42 }
 0x932   :  { %v9669_v2 = vsel %vm61_vm0, %v26139_v31, 0.0 }
 0x933   :  { %9670 = vadd.xlane.f32.xlu1 %v9669_v2  ;;  %v9666_v3 = vsel %vm61_vm0, %v26141_v0, 0.0 }
 0x934   :  { %9667 = vadd.xlane.f32.xlu0 %v9666_v3 }
 0x9c0   :  { %v9671_v38 = vpop.xlane.xlu1 %9670 }
 0x9c1   :  { %v9673_v49 = vmul.f32 0.03125, %v9671_v38  ;;  %v9668_v11 = vpop.xlane.xlu0 %9667  ;;  %v9701_v38 = vrot.slane %v26134_v40, %v9700_v28 }
 0x9c2   :  { %v9672_v6 = vmul.f32 0.03125, %v9668_v11 }
 0x9c3   :  { %v9675_v16 = vsub.f32 %v26139_v31, %v9673_v49 }
 0x9c4   :  { %v9674_v17 = vsub.f32 %v26141_v0, %v9672_v6 }
 0x9c5   :  { %v9677_v26 = vmul.f32 %v9675_v16, %v9675_v16 }
 0x9c6   :  { %v9676_v27 = vmul.f32 %v9674_v17, %v9674_v17 }
 0x9c7   :  { %v9681_v23 = vsel %vm61_vm0, %v9677_v26, 0.0 }
 0x9c8   :  { %v9678_v19 = vsel %vm61_vm0, %v9676_v27, 0.0 }
 0x9c9   :  { %9679 = vadd.xlane.f32.xlu0 %v9678_v19 }
 0x9cd   :  { %9682 = vadd.xlane.f32.xlu0 %v9681_v23 }
 0xa56   :  { %v9680_v59 = vpop.xlane.xlu0 %9679 }
 0xa57   :  { %v9684_v25 = vmul.f32 0.03125, %v9680_v59 }
 0xa59   :  { %v9686_v62 = vadd.f32 1e-05, %v9684_v25 }
 0xa5a   :  { %v9683_v63 = vpop.xlane.xlu0 %9682 }
 0xa5b   :  { %24984 = vrsqrt.f32 %v9686_v62  ;;  %v9685_v60 = vmul.f32 0.03125, %v9683_v63 }
 0xa5d   :  { %v9687_v24 = vadd.f32 1e-05, %v9685_v60 }
 0xa5f   :  { %24986 = vrsqrt.f32 %v9687_v24 }
 0xa65   :  { %v24985_v2 = vpop.eup %24984 }
 0xa66   :  { %v9690_v3 = vmul.f32 %v24985_v2, %v9674_v17 }
 0xa68   :  { %v9696_v49 = vmul.f32 %v9695_v30, %v9690_v3 }
 0xa69   :  { %v24987_v11 = vpop.eup %24986 }
 0xa6a   :  { %v9691_v6 = vmul.f32 %v24987_v11, %v9675_v16  ;;  %v9702_v27 = vadd.f32 %v9701_v38, %v9696_v49  ;;  %v52_v16 = vld [vmem:[%s27448_s4] sm:$0xff] }
 0xa6b   :  { %v10268_v61 = vand.u32 4294901760, %v52_v16 }
 0xa6c   :  { %v9697_v19 = vmul.f32 %v9695_v30, %v9691_v6  ;;  %v9709_v26 = vsel %vm61_vm0, %v9702_v27, 0  ;;  %v10390_v6 = vsub.f32 %v56_v47, %v10280_v22  ;;  %v10397_v27 = vsub.f32 %v57_v34, %v10283_v36 }
 0xa6d   :  { %v9783_v23 = vand.u32 4294901760, %v9709_v26  ;;  %v26195_v5 = vpack.c.bf16 %v10271_v15, %v10268_v61 }
 0xa6e   :  { %v9703_v33 = vadd.f32 %v9701_v38, %v9697_v19 }
 0xa6f   :  { %v9784_v7 = vsub.f32 %v9709_v26, %v9783_v23  ;;  %24238 = vmatprep.subr.bf16.mxu0 %v26195_v5 }
 0xa70   :  { %v9712_v14 = vsel %vm61_vm0, %v9703_v33, 0  ;;  %24240 = vmatpush3.bf16.msra.mxu0 %v26195_v5  ;;  %v10391_v33 = vand.u32 4294901760, %v10390_v6 }
 0xa71   :  { %v9785_v8 = vand.u32 4294901760, %v9784_v7  ;;  %v9793_v46 = vand.u32 4294901760, %v9712_v14 }
 0xa73   :  { %v9786_v20 = vsub.f32 %v9784_v7, %v9785_v8  ;;  %v9794_v17 = vsub.f32 %v9712_v14, %v9793_v46 }
 0xa75   :  { %v9787_v21 = vand.u32 4294901760, %v9786_v20  ;;  %v9795_v41 = vand.u32 4294901760, %v9794_v17 }
 0xa77   :  { %23081 = vmatprep.mubr.f32.mxu1 %v9787_v21  ;;  %v9796_v43 = vsub.f32 %v9794_v17, %v9795_v41 }
 0xa79   :  { %v9797_v1 = vand.u32 4294901760, %v9796_v43 }
 0xa7b   :  { %23082 = vmatmul.mubr.f32.vlgmr.msra.gmra.mrb[18].mxu1 %v9797_v1 }
 0xa7c   :  { %24152 = vmatpush3.bf16.msra.mxu1 %v24149_v51  ;;  %23092 = vmatprep.mubr.f32.mxu1 %v9783_v23  ;;  %v59_v51 = vld [vmem:[%s27448_s4 + $0x38] sm:$0xff] }
 0xa7d   :  { %24154 = vmatprep.subr.bf16.mxu1 %v24153_v55  ;;  %v10289_v53 = vand.u32 4294901760, %v59_v51 }
 0xa80   :  { %24156 = vmatpush3.bf16.msra.mxu1 %v24153_v55  ;;  %v26221_v55 = vpack.c.bf16 %v10283_v36, %v10280_v22  ;;  %v9706_v36 = vsub.s32 6, %v25177_v52 }
 0xa81   :  { %24158 = vmatprep.subr.bf16.mxu1 %v24157_v57 }
 0xa83   :  { %23093 = vmatmul.mubr.f32.vlgmr.msra.gmra.mrb[18].mxu1 %v9793_v46 }
 0xa84   :  { %24160 = vmatpush3.bf16.msra.mxu1 %v24157_v57  ;;  %23103 = vmatprep.mubr.f32.mxu1 %v9784_v7  ;;  %v26229_v57 = vpack.c.bf16 %v10289_v53, %v10286_v18  ;;  %v10398_v7 = vand.u32 4294901760, %v10397_v27 }
 0xa85   :  { %24162 = vmatprep.subr.bf16.mxu1 %v24161_v9 }
 0xa86   :  { %v10399_v20 = vsub.f32 %v10397_v27, %v10398_v7 }
 0xa88   :  { %24164 = vmatpush3.bf16.msra.mxu1 %v24161_v9  ;;  %v10362_v9 = vsub.f32 %v52_v16, %v10268_v61  ;;  %v10400_v1 = vand.u32 4294901760, %v10399_v20 }
 0xa89   :  { %24166 = vmatprep.subr.bf16.mxu1 %v26163_v44 }
 0xa8b   :  { %23104 = vmatmul.mubr.f32.vlgmr.msra.gmra.mrb[18].mxu1 %v9794_v17  ;;  %v10404_v17 = vsub.f32 %v58_v50, %v10286_v18  ;;  %v26259_v50 = vpack.c.bf16 %v10397_v27, %v10390_v6  ;;  %v9707_v18 = vrot.slane %v26134_v40, %v9706_v36 }
 0xa8c   :  { %24168 = vmatpush3.bf16.msra.mxu1 %v26163_v44  ;;  %23114 = vmatprep.mubr.f32.mxu1 %v9785_v8  ;;  %v26245_v8 = vpack.c.bf16 %v10398_v7, %v10391_v33 }
 0xa8d   :  { %24170 = vmatprep.subr.bf16.mxu1 %v26165_v45  ;;  %v10405_v16 = vand.u32 4294901760, %v10404_v17 }
 0xa90   :  { %24172 = vmatpush3.bf16.msra.mxu1 %v26165_v45 }
 0xa91   :  { %24174 = vmatprep.subr.bf16.mxu1 %v24173_v32 }
 0xa93   :  { %23115 = vmatmul.mubr.f32.vlgmr.msra.gmra.mrb[18].mxu1 %v9795_v41  ;;  %v10411_v41 = vsub.f32 %v59_v51, %v10289_v53 }
 0xa94   :  { %24176 = vmatpush3.bf16.msra.mxu1 %v24173_v32  ;;  %23125 = vmatprep.mubr.f32.mxu1 %v9783_v23  ;;  %v10369_v32 = vsub.f32 %v53_v4, %v10271_v15  ;;  %v10406_v15 = vsub.f32 %v10404_v17, %v10405_v16 }
 0xa95   :  { %24178 = vmatprep.subr.bf16.mxu1 %v24177_v58  ;;  %v10412_v4 = vand.u32 4294901760, %v10411_v41  ;;  %v26261_v51 = vpack.c.bf16 %v10411_v41, %v10404_v17 }
 0xa96   :  { %v10370_v59 = vand.u32 4294901760, %v10369_v32  ;;  %v10407_v47 = vand.u32 4294901760, %v10406_v15  ;;  %v26255_v34 = vpack.c.bf16 %v10369_v32, %v10362_v9 }
 0xa98   :  { %24180 = vmatpush3.bf16.msra.mxu1 %v24177_v58  ;;  %v10363_v58 = vand.u32 4294901760, %v10362_v9  ;;  %v10371_v63 = vsub.f32 %v10369_v32, %v10370_v59 }
 0xa99   :  { %24182 = vmatprep.subr.bf16.mxu1 %v26163_v44 }
 0xa9a   :  { %v26237_v25 = vpack.c.bf16 %v10370_v59, %v10363_v58  ;;  %v10364_v62 = vsub.f32 %v10362_v9, %v10363_v58  ;;  %v10372_v2 = vand.u32 4294901760, %v10371_v63 }
 0xa9b   :  { %23126 = vmatmul.mubr.f32.vlgmr.msra.gmra.mrb[18].mxu1 %v9793_v46 }
 0xa9c   :  { %24184 = vmatpush3.bf16.msra.mxu1 %v26163_v44  ;;  %23136 = vmatprep.mubr.f32.mxu1 %v9783_v23  ;;  %v54_v44 = vld [vmem:[%s27448_s4 + $0x10] sm:$0xff]  ;;  %v10365_v30 = vand.u32 4294901760, %v10364_v62 }
 0xa9d   :  { %24186 = vmatprep.subr.bf16.mxu1 %v26165_v45  ;;  %v10274_v13 = vand.u32 4294901760, %v54_v44 }
 0xa9e   :  { %v26240_v49 = vpack.c.bf16 %v10372_v2, %v10365_v30 }
 0xa9f   :  { %v10376_v60 = vsub.f32 %v54_v44, %v10274_v13  ;;  %v26251_v44 = vpack.c.bf16 %v10412_v4, %v10405_v16 }
 0xaa0   :  { %24188 = vmatpush3.bf16.msra.mxu1 %v26165_v45  ;;  %v55_v45 = vld [vmem:[%s27448_s4 + $0x18] sm:$0xff] }
 0xaa1   :  { %24190 = vmatprep.subr.bf16.mxu1 %v26195_v5  ;;  %v10277_v12 = vand.u32 4294901760, %v55_v45  ;;  %v10377_v3 = vand.u32 4294901760, %v10376_v60 }
 0xaa3   :  { %23137 = vmatmul.mubr.f32.vlgmr.msra.gmra.mrb[18].mxu1 %v9793_v46  ;;  %v26219_v37 = vpack.c.bf16 %v10277_v12, %v10274_v13  ;;  %v10383_v24 = vsub.f32 %v55_v45, %v10277_v12  ;;  %v10378_v11 = vsub.f32 %v10376_v60, %v10377_v3  ;;  %v10392_v46 = vsub.f32 %v10390_v6, %v10391_v33 }
 0xaa4   :  { %24192 = vmatpush3.bf16.msra.mxu1 %v26195_v5  ;;  %v10413_v45 = vsub.f32 %v10411_v41, %v10412_v4 }
 0xaa5   :  { %24242 = vmatprep.subr.bf16.mxu0 %v26219_v37  ;;  %24194 = vmatprep.subr.bf16.mxu1 %v26219_v37  ;;  %v10384_v38 = vand.u32 4294901760, %v10383_v24  ;;  %v10379_v23 = vand.u32 4294901760, %v10378_v11  ;;  %v10393_v43 = vand.u32 4294901760, %v10392_v46  ;;  %v26257_v22 = vpack.c.bf16 %v10383_v24, %v10376_v60 }
 0xaa6   :  { %24244 = vmatpush3.bf16.msra.mxu0 %v26219_v37  ;;  %v10414_v13 = vand.u32 4294901760, %v10413_v45 }
 0xaa7   :  { %24246 = vmatprep.subr.bf16.mxu0 %v26221_v55  ;;  %v26242_v19 = vpack.c.bf16 %v10384_v38, %v10377_v3  ;;  %v10385_v26 = vsub.f32 %v10383_v24, %v10384_v38  ;;  %v26249_v61 = vpack.c.bf16 %v10400_v1, %v10393_v43 }
 0xaa8   :  { %24196 = vmatpush3.bf16.msra.mxu1 %v26219_v37  ;;  %v26253_v12 = vpack.c.bf16 %v10414_v13, %v10407_v47 }
 0xaa9   :  { %24198 = vmatprep.subr.bf16.mxu1 %v26221_v55  ;;  %v10386_v14 = vand.u32 4294901760, %v10385_v26 }
 0xaaa   :  { %24248 = vmatpush3.bf16.msra.mxu0 %v26221_v55 }
 0xaab   :  { %24250 = vmatprep.subr.bf16.mxu0 %v26229_v57  ;;  %v26247_v21 = vpack.c.bf16 %v10386_v14, %v10379_v23 }
 0xaac   :  { %24200 = vmatpush3.bf16.msra.mxu1 %v26221_v55 }
 0xaad   :  { %24202 = vmatprep.subr.bf16.mxu1 %v26229_v57 }
 0xaae   :  { %24252 = vmatpush3.bf16.msra.mxu0 %v26229_v57 }
 0xaaf   :  { %24254 = vmatprep.subr.bf16.mxu0 %v26237_v25 }
 0xab0   :  { %24204 = vmatpush3.bf16.msra.mxu1 %v26229_v57 }
 0xab1   :  { %24206 = vmatprep.subr.bf16.mxu1 %v26240_v49 }
 0xb76   :  { %v23138_v53 = vpop.f32.mrb[18].mxu1 }
 0xb77   :  { %v24527_v58 = vadd.f32 %v23138_v53, %v9707_v18  ;;  %v10232_v59 = vpop.f32.mrb[19].mxu1 }
 0xb78   :  { %v24528_v62 = vadd.f32 %v10232_v59, %v9707_v18 }
 0xb79   :  { %v10245_v63 = vmul.f32 0.044715, %v24527_v58  ;;  %v10243_v26 = vmul.f32 0.5, %v24527_v58 }
 0xb7a   :  { %v10244_v30 = vmul.f32 0.044715, %v24528_v62  ;;  %v10242_v33 = vmul.f32 0.5, %v24528_v62 }
 0xb7b   :  { %v10247_v9 = vmul.f32 %v24527_v58, %v10245_v63 }
 0xb7c   :  { %v10246_v32 = vmul.f32 %v24528_v62, %v10244_v30  ;;  %v21704_v30 = vld [vmem:[%s27445_s1 + $0x20] sm:$0xff] }
 0xb7d   :  { %v10249_v60 = vmul.f32 %v24527_v58, %v10247_v9  ;;  %v21705_v9 = vld [vmem:[%s27445_s1 + $0x28] sm:$0xff] }
 0xb7e   :  { %v10248_v24 = vmul.f32 %v24528_v62, %v10246_v32  ;;  %v21706_v32 = vld [vmem:[%s27445_s1 + $0x30] sm:$0xff] }
 0xb7f   :  { %v10251_v2 = vadd.f32 %v24527_v58, %v10249_v60  ;;  %v10930_v60 = vand.u32 4294901760, %v21704_v30 }
 0xb80   :  { %v10250_v3 = vadd.f32 %v24528_v62, %v10248_v24  ;;  %v10933_v24 = vand.u32 4294901760, %v21705_v9 }
 0xb81   :  { %v10253_v38 = vmul.f32 0.7978846, %v10251_v2  ;;  %v21707_v2 = vld [vmem:[%s27445_s1 + $0x38] sm:$0xff] }
 0xb82   :  { %v10252_v11 = vmul.f32 0.7978846, %v10250_v3  ;;  %v10936_v3 = vand.u32 4294901760, %v21706_v32 }
 0xb83   :  { %24988 = vtanh.f32 %v10253_v38  ;;  %v10939_v38 = vand.u32 4294901760, %v21707_v2 }
 0xb84   :  { %24990 = vtanh.f32 %v10252_v11  ;;  %v26332_v11 = vpack.c.bf16 %v10933_v24, %v10930_v60 }
 0xb8d   :  { %v24989_v6 = vpop.eup %24988 }
 0xb8e   :  { %v24991_v27 = vpop.eup %24990  ;;  %v10257_v23 = vadd.f32 1.0, %v24989_v6  ;;  %v26334_v6 = vpack.c.bf16 %v10939_v38, %v10936_v3 }
 0xb8f   :  { %v10256_v7 = vadd.f32 1.0, %v24991_v27  ;;  %v11020_v27 = vsub.f32 %v21704_v30, %v10930_v60 }
 0xb90   :  { %v10259_v14 = vmul.f32 %v10257_v23, %v10243_v26  ;;  %v11027_v26 = vsub.f32 %v21705_v9, %v10933_v24 }
 0xb91   :  { %v10258_v46 = vmul.f32 %v10256_v7, %v10242_v33  ;;  %v11021_v23 = vand.u32 4294901760, %v11020_v27 }
 0xb92   :  { %v10265_v20 = vsel %vm10260_vm5, %v10259_v14, 0  ;;  %v11028_v33 = vand.u32 4294901760, %v11027_v26 }
 0xb93   :  { %v10262_v17 = vsel %vm10260_vm5, %v10258_v46, 0  ;;  %v10350_v41 = vand.u32 4294901760, %v10265_v20  ;;  %v11022_v7 = vsub.f32 %v11020_v27, %v11021_v23  ;;  %v11034_v46 = vsub.f32 %v21706_v32, %v10936_v3 }
 0xb94   :  { %v10340_v43 = vand.u32 4294901760, %v10262_v17  ;;  %v11029_v14 = vsub.f32 %v11027_v26, %v11028_v33 }
 0xb95   :  { %v10351_v1 = vsub.f32 %v10265_v20, %v10350_v41  ;;  %v11041_v20 = vsub.f32 %v21707_v2, %v10939_v38 }
 0xb96   :  { %v10341_v16 = vsub.f32 %v10262_v17, %v10340_v43  ;;  %v11023_v17 = vand.u32 4294901760, %v11022_v7 }
 0xb97   :  { %v10352_v4 = vand.u32 4294901760, %v10351_v1 }
 0xb98   :  { %v10342_v15 = vand.u32 4294901760, %v10341_v16 }
 0xb99   :  { %v10353_v45 = vsub.f32 %v10351_v1, %v10352_v4 }
 0xb9a   :  { %23212 = vmatprep.mubr.f32.mxu0 %v10342_v15  ;;  %v10343_v47 = vsub.f32 %v10341_v16, %v10342_v15 }
 0xb9b   :  { %23213 = vmatmul.mubr.f32.vlgmr.msra.gmra.mrb[18].mxu0 %v10352_v4  ;;  %v10354_v18 = vand.u32 4294901760, %v10353_v45 }
 0xb9c   :  { %24256 = vmatpush3.bf16.msra.mxu0 %v26237_v25  ;;  %23231 = vmatprep.mubr.f32.mxu0 %v10340_v43  ;;  %v10344_v13 = vand.u32 4294901760, %v10343_v47 }
 0xb9d   :  { %24258 = vmatprep.subr.bf16.mxu0 %v26242_v19 }
 0xb9e   :  { %23155 = vmatprep.mubr.f32.mxu1 %v10344_v13 }
 0xb9f   :  { %23156 = vmatmul.mubr.f32.vlgmr.msra.gmra.mrb[20].mxu1 %v10354_v18  ;;  %v24301_v18 = vpack.c.bf16 %v11027_v26, %v11020_v27 }
 0xba0   :  { %24208 = vmatpush3.bf16.msra.mxu1 %v26240_v49  ;;  %24260 = vmatpush3.bf16.msra.mxu0 %v26242_v19 }
 0xba1   :  { %23174 = vmatprep.mubr.f32.mxu1 %v10340_v43  ;;  %24210 = vmatprep.subr.bf16.mxu1 %v26247_v21 }
 0xba2   :  { %24262 = vmatprep.subr.bf16.mxu0 %v26245_v8 }
 0xba4   :  { %24212 = vmatpush3.bf16.msra.mxu1 %v26247_v21  ;;  %24264 = vmatpush3.bf16.msra.mxu0 %v26245_v8 }
 0xba5   :  { %24214 = vmatprep.subr.bf16.mxu1 %v26249_v61  ;;  %24266 = vmatprep.subr.bf16.mxu0 %v26251_v44 }
 0xba8   :  { %24216 = vmatpush3.bf16.msra.mxu1 %v26249_v61  ;;  %24268 = vmatpush3.bf16.msra.mxu0 %v26251_v44 }
 0xba9   :  { %24218 = vmatprep.subr.bf16.mxu1 %v26253_v12  ;;  %24270 = vmatprep.subr.bf16.mxu0 %v26195_v5 }
 0xbab   :  { %23232 = vmatmul.mubr.f32.vlgmr.msra.gmra.mrb[18].mxu0 %v10350_v41 }
 0xbac   :  { %24220 = vmatpush3.bf16.msra.mxu1 %v26253_v12  ;;  %24272 = vmatpush3.bf16.msra.mxu0 %v26195_v5 }
 0xbad   :  { %23250 = vmatprep.mubr.f32.mxu0 %v10340_v43  ;;  %24222 = vmatprep.subr.bf16.mxu1 %v26255_v34  ;;  %v11035_v43 = vand.u32 4294901760, %v11034_v46 }
 0xbae   :  { %24274 = vmatprep.subr.bf16.mxu0 %v26219_v37 }
 0xbaf   :  { %23175 = vmatmul.mubr.f32.vlgmr.msra.gmra.mrb[20].mxu1 %v10350_v41  ;;  %v11036_v4 = vsub.f32 %v11034_v46, %v11035_v43 }
 0xbb0   :  { %24224 = vmatpush3.bf16.msra.mxu1 %v26255_v34  ;;  %23193 = vmatprep.mubr.f32.mxu1 %v10341_v16 }
 0xbb1   :  { %24276 = vmatpush3.bf16.msra.mxu0 %v26219_v37  ;;  %24226 = vmatprep.subr.bf16.mxu1 %v26257_v22  ;;  %v10851_v37 = vsub.s32 7, %v25177_v52  ;;  %v11037_v45 = vand.u32 4294901760, %v11036_v4 }
 0xbb2   :  { %24278 = vmatprep.subr.bf16.mxu0 %v26221_v55 }
 0xbb4   :  { %24228 = vmatpush3.bf16.msra.mxu1 %v26257_v22 }
 0xbb5   :  { %24280 = vmatpush3.bf16.msra.mxu0 %v26221_v55  ;;  %24230 = vmatprep.subr.bf16.mxu1 %v26259_v50 }
 0xbb6   :  { %24282 = vmatprep.subr.bf16.mxu0 %v26229_v57 }
 0xbb8   :  { %24232 = vmatpush3.bf16.msra.mxu1 %v26259_v50 }
 0xbb9   :  { %24284 = vmatpush3.bf16.msra.mxu0 %v26229_v57  ;;  %24234 = vmatprep.subr.bf16.mxu1 %v26261_v51  ;;  %v10852_v57 = vrot.slane %v26134_v40, %v10851_v37 }
 0xbba   :  { %23379 = vmatprep.subr.mxu0 %v25097_v48 }
 0xbbc   :  { %23251 = vmatmul.mubr.f32.vlgmr.msra.gmra.mrb[18].mxu0 %v10350_v41  ;;  %24236 = vmatpush3.bf16.msra.mxu1 %v26261_v51  ;;  %v11030_v41 = vand.u32 4294901760, %v11029_v14 }
 0xbbd   :  { %23381 = vmatprep.mubr.msk.f32.mxu0 %vm25098_vm1, %v25097_v48  ;;  %24286 = vmatprep.subr.bf16.mxu1 %v26332_v11 }
 0xbbe   :  { %v24293_v16 = vpack.c.bf16 %v11030_v41, %v11023_v17 }
 0xbbf   :  { %23194 = vmatmul.mubr.f32.vlgmr.msra.gmra.mrb[20].mxu1 %v10351_v1  ;;  %v11042_v1 = vand.u32 4294901760, %v11041_v20 }
 0xbc0   :  { %24288 = vmatpush3.bf16.msra.mxu1 %v26332_v11 }
 0xbc1   :  { %24290 = vmatprep.subr.bf16.mxu1 %v26334_v6  ;;  %v11043_v15 = vsub.f32 %v11041_v20, %v11042_v1 }
 0xbc3   :  { %v11044_v47 = vand.u32 4294901760, %v11043_v15 }
 0xbc4   :  { %24292 = vmatpush3.bf16.msra.mxu1 %v26334_v6 }
 0xbc5   :  { %24294 = vmatprep.subr.bf16.mxu1 %v24293_v16  ;;  %v24297_v13 = vpack.c.bf16 %v11044_v47, %v11037_v45 }
 0xc8f   :  { %v23252_v5 = vpop.f32.mrb[18].mxu0 }
 0xc90   :  { %v10837_v55 = vpop.f32.mrb[19].mxu0 }
 0xc92   :  { %v23195_v25 = vpop.f32.mrb[20].mxu1 }
 0xc93   :  { %v24529_v49 = vadd.f32 %v23252_v5, %v23195_v25  ;;  %v10561_v19 = vpop.f32.mrb[21].mxu1  ;;  %v24305_v5 = vpack.c.bf16 %v11041_v20, %v11034_v46  ;;  %v24321_v25 = vpack.c.bf16 %v11042_v1, %v11035_v43 }
 0xc94   :  { %v24530_v8 = vadd.f32 %v10837_v55, %v10561_v19  ;;  %v24317_v55 = vpack.c.bf16 %v11028_v33, %v11021_v23 }
 0xc95   :  { %v10848_v21 = vadd.f32 %v24529_v49, %v26139_v31 }
 0xc96   :  { %v10847_v61 = vadd.f32 %v24530_v8, %v26141_v0 }
 0xc97   :  { %v26308_v44 = vadd.f32 %v10852_v57, %v10848_v21 }
 0xc98   :  { %v26310_v12 = vadd.f32 %v10852_v57, %v10847_v61 }
 0xc99   :  { %v10884_v34 = vsel %vm61_vm0, %v26308_v44, 0.0 }
 0xc9a   :  { %10885 = vadd.xlane.f32.xlu1 %v10884_v34  ;;  %v10881_v22 = vsel %vm61_vm0, %v26310_v12, 0.0  ;;  %v21724_v34 = vld [vmem:[%s27449_s5 + $0x8] sm:$0xff] }
 0xc9b   :  { %10882 = vadd.xlane.f32.xlu0 %v10881_v22  ;;  %v10910_v22 = vrot.slane %v21724_v34, %v91_v54 }
 0xd27   :  { %v10886_v50 = vpop.xlane.xlu1 %10885 }
 0xd28   :  { %v10888_v40 = vmul.f32 0.03125, %v10886_v50  ;;  %v10883_v51 = vpop.xlane.xlu0 %10882 }
 0xd29   :  { %v10887_v53 = vmul.f32 0.03125, %v10883_v51 }
 0xd2a   :  { %v10890_v31 = vsub.f32 %v26308_v44, %v10888_v40 }
 0xd2b   :  { %v10889_v0 = vsub.f32 %v26310_v12, %v10887_v53  ;;  %v10916_v53 = vrot.slane %v21724_v34, %v97_v56  ;;  %v10922_v56 = vrot.slane %v21724_v34, %v103_v10 }
 0xd2c   :  { %v10892_v58 = vmul.f32 %v10890_v31, %v10890_v31 }
 0xd2d   :  { %v10891_v59 = vmul.f32 %v10889_v0, %v10889_v0 }
 0xd2e   :  { %v10896_v62 = vsel %vm61_vm0, %v10892_v58, 0.0 }
 0xd2f   :  { %10897 = vadd.xlane.f32.xlu1 %v10896_v62  ;;  %v10893_v63 = vsel %vm61_vm0, %v10891_v59, 0.0 }
 0xd30   :  { %10894 = vadd.xlane.f32.xlu0 %v10893_v63 }
 0xdbc   :  { %v10898_v49 = vpop.xlane.xlu1 %10897 }
 0xdbd   :  { %v10900_v57 = vmul.f32 0.03125, %v10898_v49  ;;  %v10895_v19 = vpop.xlane.xlu0 %10894 }
 0xdbe   :  { %v10899_v8 = vmul.f32 0.03125, %v10895_v19 }
 0xdbf   :  { %v10902_v21 = vadd.f32 1e-05, %v10900_v57 }
 0xdc0   :  { %v10901_v61 = vadd.f32 1e-05, %v10899_v8 }
 0xdc1   :  { %24992 = vrsqrt.f32 %v10902_v21 }
 0xdc2   :  { %24994 = vrsqrt.f32 %v10901_v61 }
 0xdcb   :  { %v24993_v50 = vpop.eup %24992 }
 0xdcc   :  { %v24995_v40 = vpop.eup %24994  ;;  %v10906_v51 = vmul.f32 %v24993_v50, %v10890_v31 }
 0xdcd   :  { %v10905_v58 = vmul.f32 %v24995_v40, %v10889_v0 }
 0xdce   :  { %v10912_v59 = vmul.f32 %v10910_v22, %v10906_v51 }
 0xdcf   :  { %v10911_v62 = vmul.f32 %v10910_v22, %v10905_v58 }
 0xdd0   :  { %v10918_v63 = vadd.f32 %v10916_v53, %v10912_v59 }
 0xdd1   :  { %v10917_v30 = vadd.f32 %v10916_v53, %v10911_v62 }
 0xdd2   :  { %v10927_v9 = vsel %vm61_vm0, %v10918_v63, 0 }
 0xdd3   :  { %v10924_v32 = vsel %vm61_vm0, %v10917_v30, 0  ;;  %v11008_v60 = vand.u32 4294901760, %v10927_v9 }
 0xdd4   :  { %v10998_v24 = vand.u32 4294901760, %v10924_v32 }
 0xdd5   :  { %v11009_v2 = vsub.f32 %v10927_v9, %v11008_v60 }
 0xdd6   :  { %v10999_v3 = vsub.f32 %v10924_v32, %v10998_v24 }
 0xdd7   :  { %v11010_v54 = vand.u32 4294901760, %v11009_v2 }
 0xdd8   :  { %v11000_v38 = vand.u32 4294901760, %v10999_v3 }
 0xdd9   :  { %v11011_v27 = vsub.f32 %v11009_v2, %v11010_v54 }
 0xdda   :  { %v11001_v31 = vsub.f32 %v10999_v3, %v11000_v38 }
 0xddb   :  { %v11012_v23 = vand.u32 4294901760, %v11011_v27 }
 0xddc   :  { %v11002_v26 = vand.u32 4294901760, %v11001_v31 }
 0xdde   :  { %23261 = vmatprep.mubr.f32.mxu1 %v11002_v26 }
 0xddf   :  { %23262 = vmatmul.mubr.f32.vlgmr.msra.gmra.mrb[22].mxu1 %v11012_v23 }
 0xde0   :  { %24296 = vmatpush3.bf16.msra.mxu1 %v24293_v16  ;;  %23272 = vmatprep.mubr.f32.mxu1 %v10998_v24 }
 0xde1   :  { %24298 = vmatprep.subr.bf16.mxu1 %v24297_v13 }
 0xde4   :  { %24300 = vmatpush3.bf16.msra.mxu1 %v24297_v13 }
 0xde5   :  { %24302 = vmatprep.subr.bf16.mxu1 %v24301_v18 }
 0xde7   :  { %23273 = vmatmul.mubr.f32.vlgmr.msra.gmra.mrb[22].mxu1 %v11008_v60 }
 0xde8   :  { %24304 = vmatpush3.bf16.msra.mxu1 %v24301_v18  ;;  %23283 = vmatprep.mubr.f32.mxu1 %v10999_v3 }
 0xde9   :  { %24306 = vmatprep.subr.bf16.mxu1 %v24305_v5 }
 0xdec   :  { %24308 = vmatpush3.bf16.msra.mxu1 %v24305_v5 }
 0xded   :  { %24310 = vmatprep.subr.bf16.mxu1 %v26332_v11 }
 0xdef   :  { %23284 = vmatmul.mubr.f32.vlgmr.msra.gmra.mrb[22].mxu1 %v11009_v2 }
 0xdf0   :  { %24312 = vmatpush3.bf16.msra.mxu1 %v26332_v11  ;;  %23294 = vmatprep.mubr.f32.mxu1 %v11000_v38 }
 0xdf1   :  { %24314 = vmatprep.subr.bf16.mxu1 %v26334_v6 }
 0xdf4   :  { %24316 = vmatpush3.bf16.msra.mxu1 %v26334_v6 }
 0xdf5   :  { %24318 = vmatprep.subr.bf16.mxu1 %v24317_v55 }
 0xdf7   :  { %23295 = vmatmul.mubr.f32.vlgmr.msra.gmra.mrb[22].mxu1 %v11010_v54 }
 0xdf8   :  { %24320 = vmatpush3.bf16.msra.mxu1 %v24317_v55  ;;  %23305 = vmatprep.mubr.f32.mxu1 %v10998_v24 }
 0xdf9   :  { %24322 = vmatprep.subr.bf16.mxu1 %v24321_v25 }
 0xdfc   :  { %24324 = vmatpush3.bf16.msra.mxu1 %v24321_v25 }
 0xdfd   :  { %24326 = vmatprep.subr.bf16.mxu1 %v26332_v11 }
 0xdff   :  { %23306 = vmatmul.mubr.f32.vlgmr.msra.gmra.mrb[22].mxu1 %v11008_v60 }
 0xe00   :  { %24328 = vmatpush3.bf16.msra.mxu1 %v26332_v11  ;;  %23316 = vmatprep.mubr.f32.mxu1 %v10998_v24 }
 0xe01   :  { %24330 = vmatprep.subr.bf16.mxu1 %v26334_v6 }
 0xe04   :  { %24332 = vmatpush3.bf16.msra.mxu1 %v26334_v6 }
 0xe05   :  { %23319 = vmatprep.subr.mxu1 %v25097_v48 }
 0xe07   :  { %23317 = vmatmul.mubr.f32.vlgmr.msra.gmra.mrb[22].mxu1 %v11008_v60 }
 0xe08   :  { %23321 = vmatprep.mubr.msk.f32.mxu1 %vm25098_vm1, %v25097_v48 }
 0xeda   :  { %v23318_v0 = vpop.f32.mrb[22].mxu1 }
 0xedb   :  { %v26362_v33 = vadd.f32 %v23318_v0, %v10922_v56  ;;  %v11447_v7 = vpop.f32.mrb[23].mxu1 }
 0xedc   :  { %v26364_v14 = vadd.f32 %v11447_v7, %v10922_v56 }
 0xede   :  { %11465 = vrot.lane.b32.xlu1 %v26364_v14, %s25091_s20  ;;  %11459 = vrot.lane.b32.xlu0 %v26364_v14, %s25092_s21 }
 0xee2   :  { %11471 = vrot.lane.b32.xlu1 %v26364_v14, %s25093_s22 }
 0xee6   :  { %11613 = vrot.lane.b32.xlu1 %v26364_v14, %s25094_s23 }
 0xf50   :  { %v26374_v11 = vpop.permute.xlu1 %11465  ;;  %v26376_v10 = vpop.permute.xlu0 %11459 }
 0xf51   :  { %11621 = vrot.lane.b32.xlu1 %v26374_v11, %s25094_s23  ;;  %11617 = vrot.lane.b32.xlu0 %v26376_v10, %s25094_s23  ;;  %v11477_v6 = vcombine.low %v26364_v14, %v26374_v11  ;;  %v11478_v46 = vcombine.high %v26364_v14, %v26374_v11 }
 0xf53   :  { %v11485_v43 = vrot.slane %v11477_v6, %v25222_v29  ;;  %v11492_v1 = vrot.slane %v11478_v46, %v25222_v29 }
 0xf54   :  { %v26386_v20 = vpop.permute.xlu1 %11471 }
 0xf55   :  { %v11493_v17 = vcombine.low %v26376_v10, %v26386_v20  ;;  %v11494_v41 = vcombine.high %v26376_v10, %v26386_v20  ;;  %11461 = vrot.lane.b32.xlu1 %v26362_v33, %s25092_s21  ;;  %11625 = vrot.lane.b32.xlu0 %v26386_v20, %s25094_s23 }
 0xf57   :  { %v11501_v16 = vrot.slane %v11493_v17, %v25222_v29  ;;  %v11508_v4 = vrot.slane %v11494_v41, %v25222_v29 }
 0xf58   :  { %v11614_v63 = vpop.permute.xlu1 %11613 }
 0xf59   :  { %v11509_v15 = vcombine.low %v11485_v43, %v11501_v16  ;;  %v11510_v45 = vcombine.high %v11485_v43, %v11501_v16  ;;  %v11525_v47 = vcombine.low %v11492_v1, %v11508_v4  ;;  %v11526_v13 = vcombine.high %v11492_v1, %v11508_v4  ;;  %11473 = vrot.lane.b32.xlu1 %v26362_v33, %s25093_s22 }
 0xf5a   :  { %11467 = vrot.lane.b32.xlu0 %v26362_v33, %s25091_s20 }
 0xf5b   :  { %v11517_v18 = vrot.slane %v11509_v15, %v25239_v35  ;;  %v11524_v5 = vrot.slane %v11510_v45, %v25239_v35  ;;  %v11533_v55 = vrot.slane %v11525_v47, %v25239_v35  ;;  %v11540_v25 = vrot.slane %v11526_v13, %v25239_v35 }
 0xf5d   :  { %v11933_v49 = vcombine.low %v11517_v18, %v11524_v5  ;;  %v21725_v57 = vcombine.high %v11517_v18, %v11524_v5  ;;  %v11949_v19 = vcombine.low %v11533_v55, %v11540_v25  ;;  %v21726_v8 = vcombine.high %v11533_v55, %v11540_v25 }
 0xf5e   :  { %11615 = vrot.lane.b32.xlu0 %v26362_v33, %s25094_s23 }
 0xf5f   :  { %v11940_v21 = vrot.slane %v11933_v49, %v25222_v29  ;;  %v11948_v61 = vrot.slane %v21725_v57, %v25222_v29  ;;  %v11956_v34 = vrot.slane %v11949_v19, %v25222_v29  ;;  %v11964_v22 = vrot.slane %v21726_v8, %v25222_v29 }
 0xf61   :  { %v11966_v50 = vcombine.high %v11940_v21, %v11948_v61  ;;  %v11982_v40 = vcombine.high %v11956_v34, %v11964_v22  ;;  %v11965_v59 = vcombine.low %v11940_v21, %v11948_v61  ;;  %v11981_v62 = vcombine.low %v11956_v34, %v11964_v22 }
 0xf63   :  { %v26415_v51 = vrot.slane %v11966_v50, %v25239_v35  ;;  %v26418_v53 = vrot.slane %v11982_v40, %v25239_v35  ;;  %v26423_v30 = vrot.slane %v11965_v59, %v25239_v35  ;;  %v26426_v9 = vrot.slane %v11981_v62, %v25239_v35 }
 0xf65   :  { %v12000_v58 = vcombine.high %v26415_v51, %v26418_v53  ;;  %v11997_v24 = vcombine.low %v26423_v30, %v26426_v9  ;;  %v11999_v2 = vcombine.low %v26415_v51, %v26418_v53 }
 0xf67   :  { %v12342_v23 = vsel %vm1523_vm2, %v11997_v24, 0  ;;  %v13246_v56 = vsel %vm1523_vm2, %v11999_v2, 0 }
 0xf68   :  { %v26450_v15 = vand.u32 4294901760, %v12342_v23  ;;  %v26452_v45 = vand.u32 4294901760, %v13246_v56 }
 0xf6a   :  { %v26459_v19 = vsub.f32 %v12342_v23, %v26450_v15  ;;  %v26462_v8 = vsub.f32 %v13246_v56, %v26452_v45 }
 0xfc3   :  { %v11622_v32 = vpop.permute.xlu1 %11621  ;;  %v11618_v60 = vpop.permute.xlu0 %11617 }
 0xfc4   :  { %v11637_v3 = vcombine.low %v11614_v63, %v11622_v32  ;;  %v11638_v54 = vcombine.high %v11614_v63, %v11622_v32  ;;  %v12415_v63 = vand.u32 4294901760, %v26459_v19  ;;  %v13319_v32 = vand.u32 4294901760, %v26462_v8 }
 0xfc6   :  { %v11645_v0 = vrot.slane %v11637_v3, %v25222_v29  ;;  %v11652_v7 = vrot.slane %v11638_v54, %v25222_v29  ;;  %v12416_v56 = vsub.f32 %v26459_v19, %v12415_v63 }
 0xfc7   :  { %v26432_v38 = vpop.permute.xlu1 %11461  ;;  %v11626_v27 = vpop.permute.xlu0 %11625 }
 0xfc8   :  { %v11653_v31 = vcombine.low %v11618_v60, %v11626_v27  ;;  %v11654_v26 = vcombine.high %v11618_v60, %v11626_v27  ;;  %11619 = vrot.lane.b32.xlu1 %v26432_v38, %s25094_s23 }
 0xfca   :  { %v11661_v6 = vrot.slane %v11653_v31, %v25222_v29  ;;  %v11668_v46 = vrot.slane %v11654_v26, %v25222_v29 }
 0xfcb   :  { %v26442_v17 = vpop.permute.xlu1 %11473 }
 0xfcc   :  { %v11669_v41 = vcombine.low %v11645_v0, %v11661_v6  ;;  %v11670_v43 = vcombine.high %v11645_v0, %v11661_v6  ;;  %v11685_v1 = vcombine.low %v11652_v7, %v11668_v46  ;;  %v11686_v16 = vcombine.high %v11652_v7, %v11668_v46  ;;  %v26444_v4 = vpop.permute.xlu0 %11467  ;;  %11627 = vrot.lane.b32.xlu1 %v26442_v17, %s25094_s23 }
 0xfcd   :  { %11623 = vrot.lane.b32.xlu0 %v26444_v4, %s25094_s23  ;;  %v13320_v0 = vsub.f32 %v26462_v8, %v13319_v32 }
 0xfce   :  { %v11677_v47 = vrot.slane %v11669_v41, %v25239_v35  ;;  %v11684_v13 = vrot.slane %v11670_v43, %v25239_v35  ;;  %v11693_v18 = vrot.slane %v11685_v1, %v25239_v35  ;;  %v11700_v5 = vrot.slane %v11686_v16, %v25239_v35 }
 0xfcf   :  { %v12417_v43 = vand.u32 4294901760, %v12416_v56  ;;  %v13321_v1 = vand.u32 4294901760, %v13320_v0 }
 0xfd0   :  { %v12069_v55 = vcombine.low %v11677_v47, %v11684_v13  ;;  %v21729_v25 = vcombine.high %v11677_v47, %v11684_v13  ;;  %v12085_v49 = vcombine.low %v11693_v18, %v11700_v5  ;;  %v21730_v57 = vcombine.high %v11693_v18, %v11700_v5 }
 0xfd2   :  { %v12076_v21 = vrot.slane %v12069_v55, %v25222_v29  ;;  %v12084_v61 = vrot.slane %v21729_v25, %v25222_v29  ;;  %v12092_v34 = vrot.slane %v12085_v49, %v25222_v29  ;;  %v12100_v22 = vrot.slane %v21730_v57, %v25222_v29 }
 0xfd3   :  { %v11998_v25 = vcombine.high %v26423_v30, %v26426_v9 }
 0xfd4   :  { %v12101_v50 = vcombine.low %v12076_v21, %v12084_v61  ;;  %v12102_v40 = vcombine.high %v12076_v21, %v12084_v61  ;;  %v12117_v59 = vcombine.low %v12092_v34, %v12100_v22  ;;  %v12118_v62 = vcombine.high %v12092_v34, %v12100_v22 }
 0xfd5   :  { %v12794_v57 = vsel %vm1523_vm2, %v11998_v25, 0 }
 0xfd6   :  { %v12109_v60 = vrot.slane %v12101_v50, %v25239_v35  ;;  %v12125_v24 = vrot.slane %v12117_v59, %v25239_v35  ;;  %v26473_v2 = vrot.slane %v12102_v40, %v25239_v35  ;;  %v26476_v3 = vrot.slane %v12118_v62, %v25239_v35 }
 0xfd7   :  { %v11545_v62 = vcombine.low %v26362_v33, %v26444_v4 }
 0xfd8   :  { %v12133_v54 = vcombine.low %v12109_v60, %v12125_v24  ;;  %v12135_v27 = vcombine.low %v26473_v2, %v26476_v3  ;;  %v12136_v31 = vcombine.high %v26473_v2, %v26476_v3  ;;  %v12134_v49 = vcombine.high %v12109_v60, %v12125_v24 }
 0xfda   :  { %v12345_v26 = vsel %vm1523_vm2, %v12133_v54, 0  ;;  %v13249_v23 = vsel %vm1523_vm2, %v12135_v27, 0  ;;  %v11553_v54 = vrot.slane %v11545_v62, %v25222_v29 }
 0xfdb   :  { %v12348_v7 = vand.u32 4294901760, %v12345_v26  ;;  %v13252_v6 = vand.u32 4294901760, %v13249_v23 }
 0xfdd   :  { %23320 = vmatpush3.xpose.msra.mxu1 %v12348_v7  ;;  %v12425_v46 = vsub.f32 %v12345_v26, %v12348_v7  ;;  %23380 = vmatpush3.xpose.msra.mxu0 %v13252_v6  ;;  %v13329_v41 = vsub.f32 %v13249_v23, %v13252_v6  ;;  %v13701_v26 = vsel %vm1523_vm2, %v12136_v31, 0 }
 0xfde   :  { %23324 = vmatprep.subr.mxu1 %v25097_v48  ;;  %23384 = vmatprep.subr.mxu0 %v25097_v48  ;;  %v26573_v0 = vand.u32 4294901760, %v13701_v26 }
 0xfdf   :  { %v12426_v16 = vand.u32 4294901760, %v12425_v46  ;;  %v13330_v47 = vand.u32 4294901760, %v13329_v41 }
 0xfe0   :  { %23322 = vmatmul.mubr.f32.vlgmr.msra.gmra.mrb[24].mxu1 %v12417_v43  ;;  %23382 = vmatmul.mubr.f32.vlgmr.msra.gmra.mrb[20].mxu0 %v13321_v1 }
 0xfe1   :  { %v12427_v13 = vsub.f32 %v12425_v46, %v12426_v16  ;;  %v13331_v18 = vsub.f32 %v13329_v41, %v13330_v47  ;;  %23326 = vmatprep.mubr.msk.f32.mxu1 %vm25098_vm1, %v25097_v48  ;;  %23386 = vmatprep.mubr.msk.f32.mxu0 %vm25098_vm1, %v25097_v48 }
 0xfe3   :  { %v12428_v5 = vand.u32 4294901760, %v12427_v13  ;;  %v13332_v55 = vand.u32 4294901760, %v13331_v18 }
 0xfe5   :  { %23325 = vmatpush3.xpose.msra.mxu1 %v12428_v5  ;;  %23385 = vmatpush3.xpose.msra.mxu0 %v13332_v55 }
 0xfe6   :  { %23329 = vmatprep.subr.mxu1 %v25097_v48  ;;  %23389 = vmatprep.subr.mxu0 %v25097_v48 }
 0xfe8   :  { %23327 = vmatmul.mubr.f32.vlgmr.msra.gmra.mrb[24].mxu1 %v26450_v15  ;;  %23387 = vmatmul.mubr.f32.vlgmr.msra.gmra.mrb[20].mxu0 %v26452_v45 }
 0xfe9   :  { %23330 = vmatpush3.xpose.msra.mxu1 %v12425_v46  ;;  %23390 = vmatpush3.xpose.msra.mxu0 %v13329_v41  ;;  %v26583_v46 = vsub.f32 %v13701_v26, %v26573_v0 }
 0xfea   :  { %23331 = vmatprep.mubr.msk.f32.mxu1 %vm25098_vm1, %v25097_v48  ;;  %23334 = vmatprep.subr.mxu1 %v25097_v48 }
 0xfeb   :  { %23391 = vmatprep.mubr.msk.f32.mxu0 %vm25098_vm1, %v25097_v48  ;;  %23394 = vmatprep.subr.mxu0 %v25097_v48  ;;  %v13782_v13 = vand.u32 4294901760, %v26583_v46 }
 0xff0   :  { %23332 = vmatmul.mubr.f32.vlgmr.msra.gmra.mrb[24].mxu1 %v26459_v19  ;;  %23392 = vmatmul.mubr.f32.vlgmr.msra.gmra.mrb[20].mxu0 %v26462_v8  ;;  %v12797_v19 = vsel %vm1523_vm2, %v12134_v49, 0  ;;  %v26517_v8 = vand.u32 4294901760, %v12794_v57 }
 0xff1   :  { %23335 = vmatpush3.xpose.msra.mxu1 %v12348_v7  ;;  %23395 = vmatpush3.xpose.msra.mxu0 %v13252_v6  ;;  %v12800_v30 = vand.u32 4294901760, %v12797_v19 }
 0xff2   :  { %23336 = vmatprep.mubr.msk.f32.mxu1 %vm25098_vm1, %v25097_v48  ;;  %23339 = vmatprep.subr.mxu1 %v25097_v48  ;;  %v12866_v9 = vsub.f32 %v12794_v57, %v26517_v8  ;;  %v13783_v57 = vsub.f32 %v26583_v46, %v13782_v13 }
 0xff3   :  { %23396 = vmatprep.mubr.msk.f32.mxu0 %vm25098_vm1, %v25097_v48  ;;  %23399 = vmatprep.subr.mxu0 %v25097_v48  ;;  %v12877_v21 = vsub.f32 %v12797_v19, %v12800_v30 }
 0xff4   :  { %v12867_v61 = vand.u32 4294901760, %v12866_v9 }
 0xff5   :  { %v12878_v34 = vand.u32 4294901760, %v12877_v21 }
 0xff6   :  { %v12868_v22 = vsub.f32 %v12866_v9, %v12867_v61 }
 0xff7   :  { %v12879_v50 = vsub.f32 %v12877_v21, %v12878_v34 }
 0xff8   :  { %23337 = vmatmul.mubr.f32.vlgmr.msra.gmra.mrb[24].mxu1 %v12415_v63  ;;  %23397 = vmatmul.mubr.f32.vlgmr.msra.gmra.mrb[20].mxu0 %v13319_v32  ;;  %v12869_v40 = vand.u32 4294901760, %v12868_v22  ;;  %v11546_v63 = vcombine.high %v26362_v33, %v26444_v4  ;;  %v13698_v32 = vsel %vm1523_vm2, %v12000_v58, 0  ;;  %v11616_v22 = vpop.permute.xlu0 %11615 }
 0xff9   :  { %23340 = vmatpush3.xpose.msra.mxu1 %v12426_v16  ;;  %23400 = vmatpush3.xpose.msra.mxu0 %v13330_v47  ;;  %v12880_v59 = vand.u32 4294901760, %v12879_v50  ;;  %v26570_v51 = vand.u32 4294901760, %v13698_v32 }
 0xffa   :  { %23341 = vmatprep.mubr.msk.f32.mxu1 %vm25098_vm1, %v25097_v48  ;;  %23344 = vmatprep.subr.mxu1 %v25097_v48  ;;  %v11560_v27 = vrot.slane %v11546_v63, %v25222_v29 }
 0xffb   :  { %23401 = vmatprep.mubr.msk.f32.mxu0 %vm25098_vm1, %v25097_v48  ;;  %23404 = vmatprep.subr.mxu0 %v25097_v48 }
0x1000   :  { %23342 = vmatmul.mubr.f32.vlgmr.msra.gmra.mrb[24].mxu1 %v26450_v15  ;;  %23402 = vmatmul.mubr.f32.vlgmr.msra.gmra.mrb[20].mxu0 %v26452_v45 }
0x1001   :  { %23345 = vmatpush3.xpose.msra.mxu1 %v12348_v7  ;;  %23405 = vmatpush3.xpose.msra.mxu0 %v13252_v6  ;;  %v26576_v7 = vsub.f32 %v13698_v32, %v26570_v51 }
0x1002   :  { %23346 = vmatprep.mubr.msk.f32.mxu1 %vm25098_vm1, %v25097_v48  ;;  %23349 = vmatprep.subr.mxu1 %v25097_v48 }
0x1003   :  { %23406 = vmatprep.mubr.msk.f32.mxu0 %vm25098_vm1, %v25097_v48  ;;  %23439 = vmatprep.subr.mxu0 %v25097_v48  ;;  %v13771_v41 = vand.u32 4294901760, %v26576_v7 }
0x1005   :  { %v13772_v18 = vsub.f32 %v26576_v7, %v13771_v41 }
0x1008   :  { %23347 = vmatmul.mubr.f32.vlgmr.msra.gmra.mrb[24].mxu1 %v26450_v15  ;;  %23407 = vmatmul.mubr.f32.vlgmr.msra.gmra.mrb[20].mxu0 %v26452_v45  ;;  %v11561_v15 = vcombine.low %v26432_v38, %v26442_v17  ;;  %v11562_v45 = vcombine.high %v26432_v38, %v26442_v17 }
0x1009   :  { %23350 = vmatpush3.xpose.msra.mxu1 %v12800_v30  ;;  %23351 = vmatprep.mubr.msk.f32.mxu1 %vm25098_vm1, %v25097_v48 }
0x100a   :  { %23354 = vmatprep.subr.mxu1 %v25097_v48  ;;  %23441 = vmatprep.mubr.msk.f32.mxu0 %vm25098_vm1, %v25097_v48  ;;  %v11569_v60 = vrot.slane %v11561_v15, %v25222_v29  ;;  %v11576_v24 = vrot.slane %v11562_v45, %v25222_v29 }
0x100c   :  { %23352 = vmatmul.mubr.f32.vlgmr.msra.gmra.mrb[26].mxu1 %v12869_v40  ;;  %v11577_v53 = vcombine.low %v11553_v54, %v11569_v60  ;;  %v11578_v58 = vcombine.high %v11553_v54, %v11569_v60  ;;  %v11593_v23 = vcombine.low %v11560_v27, %v11576_v24  ;;  %v11594_v56 = vcombine.high %v11560_v27, %v11576_v24 }
0x100d   :  { %23355 = vmatpush3.xpose.msra.mxu1 %v12880_v59  ;;  %23356 = vmatprep.mubr.msk.f32.mxu1 %vm25098_vm1, %v25097_v48 }
0x100e   :  { %23359 = vmatprep.subr.mxu1 %v25097_v48  ;;  %v11585_v2 = vrot.slane %v11577_v53, %v25239_v35  ;;  %v11592_v3 = vrot.slane %v11578_v58, %v25239_v35  ;;  %v11601_v31 = vrot.slane %v11593_v23, %v25239_v35  ;;  %v11608_v6 = vrot.slane %v11594_v56, %v25239_v35 }
0x1010   :  { %v12001_v43 = vcombine.low %v11585_v2, %v11592_v3  ;;  %v21727_v1 = vcombine.high %v11585_v2, %v11592_v3  ;;  %v12017_v16 = vcombine.low %v11601_v31, %v11608_v6  ;;  %v21728_v47 = vcombine.high %v11601_v31, %v11608_v6 }
0x1012   :  { %v26595_v5 = vrot.slane %v12001_v43, %v25222_v29  ;;  %v26598_v55 = vrot.slane %v21727_v1, %v25222_v29  ;;  %v26601_v25 = vrot.slane %v12017_v16, %v25222_v29  ;;  %v26604_v49 = vrot.slane %v21728_v47, %v25222_v29 }
0x1014   :  { %23357 = vmatmul.mubr.f32.vlgmr.msra.gmra.mrb[26].mxu1 %v26517_v8  ;;  %v12033_v19 = vcombine.low %v26595_v5, %v26598_v55 }
0x1015   :  { %23360 = vmatpush3.xpose.msra.mxu1 %v12877_v21  ;;  %23361 = vmatprep.mubr.msk.f32.mxu1 %vm25098_vm1, %v25097_v48  ;;  %v13784_v21 = vand.u32 4294901760, %v13783_v57 }
0x1016   :  { %23364 = vmatprep.subr.mxu1 %v25097_v48 }
0x101c   :  { %23362 = vmatmul.mubr.f32.vlgmr.msra.gmra.mrb[26].mxu1 %v12866_v9  ;;  %v13773_v9 = vand.u32 4294901760, %v13772_v18 }
0x101d   :  { %23365 = vmatpush3.xpose.msra.mxu1 %v12800_v30  ;;  %23366 = vmatprep.mubr.msk.f32.mxu1 %vm25098_vm1, %v25097_v48 }
0x101e   :  { %23369 = vmatprep.subr.mxu1 %v25097_v48 }
0x1024   :  { %23367 = vmatmul.mubr.f32.vlgmr.msra.gmra.mrb[26].mxu1 %v12867_v61  ;;  %v12041_v61 = vrot.slane %v12033_v19, %v25239_v35 }
0x1025   :  { %23370 = vmatpush3.xpose.msra.mxu1 %v12878_v34  ;;  %23371 = vmatprep.mubr.msk.f32.mxu1 %vm25098_vm1, %v25097_v48 }
0x1026   :  { %23374 = vmatprep.subr.mxu1 %v25097_v48 }
0x102c   :  { %23372 = vmatmul.mubr.f32.vlgmr.msra.gmra.mrb[26].mxu1 %v26517_v8 }
0x102d   :  { %23375 = vmatpush3.xpose.msra.mxu1 %v12800_v30  ;;  %23376 = vmatprep.mubr.msk.f32.mxu1 %vm25098_vm1, %v25097_v48  ;;  %v12049_v30 = vcombine.low %v26601_v25, %v26604_v49 }
0x102e   :  { %23409 = vmatprep.subr.mxu1 %v25097_v48 }
0x102f   :  { %v12057_v34 = vrot.slane %v12049_v30, %v25239_v35 }
0x1031   :  { %v12065_v40 = vcombine.low %v12041_v61, %v12057_v34 }
0x1033   :  { %v14150_v27 = vsel %vm1523_vm2, %v12065_v40, 0 }
0x1034   :  { %23377 = vmatmul.mubr.f32.vlgmr.msra.gmra.mrb[26].mxu1 %v26517_v8  ;;  %v26633_v56 = vand.u32 4294901760, %v14150_v27 }
0x1035   :  { %23410 = vmatpush3.xpose.msra.mxu1 %v26573_v0  ;;  %23411 = vmatprep.mubr.msk.f32.mxu1 %vm25098_vm1, %v25097_v48 }
0x1036   :  { %23414 = vmatprep.subr.mxu1 %v25097_v48  ;;  %v26644_v18 = vsub.f32 %v14150_v27, %v26633_v56 }
0x1038   :  { %23412 = vmatmul.mubr.f32.vlgmr.msra.gmra.mrb[28].mxu1 %v13773_v9 }
0x1039   :  { %23415 = vmatpush3.xpose.msra.mxu1 %v13784_v21  ;;  %23416 = vmatprep.mubr.msk.f32.mxu1 %vm25098_vm1, %v25097_v48  ;;  %v12066_v21 = vcombine.high %v12041_v61, %v12057_v34 }
0x103a   :  { %v11620_v8 = vpop.permute.xlu1 %11619  ;;  %23419 = vmatprep.subr.mxu1 %v25097_v48 }
0x103e   :  { %v11628_v50 = vpop.permute.xlu1 %11627 }
0x103f   :  { %v11721_v59 = vcombine.low %v11620_v8, %v11628_v50  ;;  %v11722_v15 = vcombine.high %v11620_v8, %v11628_v50  ;;  %v11624_v45 = vpop.permute.xlu0 %11623 }
0x1040   :  { %v11705_v62 = vcombine.low %v11616_v22, %v11624_v45  ;;  %v11706_v63 = vcombine.high %v11616_v22, %v11624_v45  ;;  %23417 = vmatmul.mubr.f32.vlgmr.msra.gmra.mrb[28].mxu1 %v26570_v51 }
0x1041   :  { %v11729_v32 = vrot.slane %v11721_v59, %v25222_v29  ;;  %v11736_v60 = vrot.slane %v11722_v15, %v25222_v29  ;;  %23420 = vmatpush3.xpose.msra.mxu1 %v26583_v46  ;;  %23421 = vmatprep.mubr.msk.f32.mxu1 %vm25098_vm1, %v25097_v48  ;;  %v14223_v59 = vand.u32 4294901760, %v26644_v18  ;;  %v14602_v15 = vsel %vm1523_vm2, %v12066_v21, 0 }
0x1042   :  { %v11713_v24 = vrot.slane %v11705_v62, %v25222_v29  ;;  %v11720_v54 = vrot.slane %v11706_v63, %v25222_v29  ;;  %23424 = vmatprep.subr.mxu1 %v25097_v48 }
0x1043   :  { %v14224_v34 = vsub.f32 %v26644_v18, %v14223_v59 }
0x1044   :  { %v11737_v26 = vcombine.low %v11713_v24, %v11729_v32  ;;  %v11738_v53 = vcombine.high %v11713_v24, %v11729_v32  ;;  %v11753_v58 = vcombine.low %v11720_v54, %v11736_v60  ;;  %v11754_v23 = vcombine.high %v11720_v54, %v11736_v60 }
0x1046   :  { %v11745_v2 = vrot.slane %v11737_v26, %v25239_v35  ;;  %v11752_v3 = vrot.slane %v11738_v53, %v25239_v35  ;;  %v11761_v31 = vrot.slane %v11753_v58, %v25239_v35  ;;  %v11768_v6 = vrot.slane %v11754_v23, %v25239_v35 }
0x1048   :  { %v12137_v43 = vcombine.low %v11745_v2, %v11752_v3  ;;  %v21731_v1 = vcombine.high %v11745_v2, %v11752_v3  ;;  %v12153_v16 = vcombine.low %v11761_v31, %v11768_v6  ;;  %v21732_v47 = vcombine.high %v11761_v31, %v11768_v6  ;;  %23422 = vmatmul.mubr.f32.vlgmr.msra.gmra.mrb[28].mxu1 %v26576_v7 }
0x1049   :  { %23425 = vmatpush3.xpose.msra.mxu1 %v26573_v0  ;;  %23426 = vmatprep.mubr.msk.f32.mxu1 %vm25098_vm1, %v25097_v48  ;;  %v26679_v7 = vand.u32 4294901760, %v14602_v15  ;;  %v12034_v3 = vcombine.high %v26595_v5, %v26598_v55  ;;  %v12050_v31 = vcombine.high %v26601_v25, %v26604_v49 }
0x104a   :  { %v26647_v57 = vrot.slane %v12137_v43, %v25222_v29  ;;  %v26650_v19 = vrot.slane %v21731_v1, %v25222_v29  ;;  %v26653_v30 = vrot.slane %v12153_v16, %v25222_v29  ;;  %v26656_v9 = vrot.slane %v21732_v47, %v25222_v29  ;;  %23429 = vmatprep.subr.mxu1 %v25097_v48 }
0x104b   :  { %v26689_v60 = vsub.f32 %v14602_v15, %v26679_v7  ;;  %v12048_v5 = vrot.slane %v12034_v3, %v25239_v35  ;;  %v12064_v55 = vrot.slane %v12050_v31, %v25239_v35 }
0x104c   :  { %v12169_v8 = vcombine.low %v26647_v57, %v26650_v19  ;;  %v12185_v22 = vcombine.low %v26653_v30, %v26656_v9  ;;  %v12186_v43 = vcombine.high %v26653_v30, %v26656_v9 }
0x104d   :  { %v14675_v26 = vand.u32 4294901760, %v26689_v60  ;;  %v12067_v1 = vcombine.low %v12048_v5, %v12064_v55  ;;  %v12068_v21 = vcombine.high %v12048_v5, %v12064_v55 }
0x104e   :  { %v12177_v50 = vrot.slane %v12169_v8, %v25239_v35  ;;  %v12193_v40 = vrot.slane %v12185_v22, %v25239_v35  ;;  %v12200_v49 = vrot.slane %v12186_v43, %v25239_v35 }
0x104f   :  { %v14676_v23 = vsub.f32 %v26689_v60, %v14675_v26  ;;  %v15054_v47 = vsel %vm1523_vm2, %v12067_v1, 0 }
0x1050   :  { %23427 = vmatmul.mubr.f32.vlgmr.msra.gmra.mrb[28].mxu1 %v13771_v41  ;;  %v12201_v45 = vcombine.low %v12177_v50, %v12193_v40  ;;  %v12202_v62 = vcombine.high %v12177_v50, %v12193_v40  ;;  %v15506_v40 = vsel %vm1523_vm2, %v12068_v21, 0 }
0x1051   :  { %23430 = vmatpush3.xpose.msra.mxu1 %v13782_v13  ;;  %23431 = vmatprep.mubr.msk.f32.mxu1 %vm25098_vm1, %v25097_v48  ;;  %v14225_v13 = vand.u32 4294901760, %v14224_v34  ;;  %v14677_v2 = vand.u32 4294901760, %v14676_v23 }
0x1052   :  { %v14153_v61 = vsel %vm1523_vm2, %v12201_v45, 0  ;;  %23434 = vmatprep.subr.mxu1 %v25097_v48  ;;  %v14605_v63 = vsel %vm1523_vm2, %v12202_v62, 0  ;;  %v26768_v45 = vand.u32 4294901760, %v15506_v40 }
0x1053   :  { %v26681_v41 = vand.u32 4294901760, %v14153_v61  ;;  %v26683_v32 = vand.u32 4294901760, %v14605_v63 }
0x1055   :  { %23440 = vmatpush3.xpose.msra.mxu0 %v26681_v41  ;;  %v14233_v46 = vsub.f32 %v14153_v61, %v26681_v41  ;;  %v26692_v54 = vsub.f32 %v14605_v63, %v26683_v32  ;;  %v15578_v63 = vsub.f32 %v15506_v40, %v26768_v45 }
0x1056   :  { %23444 = vmatprep.subr.mxu0 %v25097_v48 }
0x1057   :  { %v14234_v24 = vand.u32 4294901760, %v14233_v46  ;;  %v14686_v58 = vand.u32 4294901760, %v26692_v54 }
0x1058   :  { %23442 = vmatmul.mubr.f32.vlgmr.msra.gmra.mrb[22].mxu0 %v14225_v13  ;;  %23432 = vmatmul.mubr.f32.vlgmr.msra.gmra.mrb[28].mxu1 %v26570_v51 }
0x1059   :  { %23435 = vmatpush3.xpose.msra.mxu1 %v26573_v0  ;;  %v14235_v27 = vsub.f32 %v14233_v46, %v14234_v24  ;;  %23446 = vmatprep.mubr.msk.f32.mxu0 %vm25098_vm1, %v25097_v48  ;;  %v14687_v0 = vsub.f32 %v26692_v54, %v14686_v58 }
0x105a   :  { %23436 = vmatprep.mubr.msk.f32.mxu1 %vm25098_vm1, %v25097_v48  ;;  %23469 = vmatprep.subr.mxu1 %v25097_v48 }
0x105b   :  { %v14236_v53 = vand.u32 4294901760, %v14235_v27  ;;  %v14688_v6 = vand.u32 4294901760, %v14687_v0 }
0x105d   :  { %23445 = vmatpush3.xpose.msra.mxu0 %v14236_v53 }
0x105e   :  { %23449 = vmatprep.subr.mxu0 %v25097_v48 }
0x1060   :  { %23447 = vmatmul.mubr.f32.vlgmr.msra.gmra.mrb[22].mxu0 %v26633_v56  ;;  %23437 = vmatmul.mubr.f32.vlgmr.msra.gmra.mrb[28].mxu1 %v26570_v51  ;;  %v12170_v51 = vcombine.high %v26647_v57, %v26650_v19  ;;  %v26747_v19 = vand.u32 4294901760, %v15054_v47 }
0x1061   :  { %23450 = vmatpush3.xpose.msra.mxu0 %v14233_v46  ;;  %23470 = vmatpush3.xpose.msra.mxu1 %v26683_v32 }
0x1062   :  { %23471 = vmatprep.mubr.msk.f32.mxu1 %vm25098_vm1, %v25097_v48  ;;  %23474 = vmatprep.subr.mxu1 %v25097_v48  ;;  %v12184_v25 = vrot.slane %v12170_v51, %v25239_v35 }
0x1063   :  { %23451 = vmatprep.mubr.msk.f32.mxu0 %vm25098_vm1, %v25097_v48  ;;  %23454 = vmatprep.subr.mxu0 %v25097_v48 }
0x1064   :  { %23472 = vmatmul.mubr.f32.vlgmr.msra.gmra.mrb[30].mxu1 %v14677_v2  ;;  %v12203_v16 = vcombine.low %v12184_v25, %v12200_v49  ;;  %v12204_v8 = vcombine.high %v12184_v25, %v12200_v49 }
0x1065   :  { %23475 = vmatpush3.xpose.msra.mxu1 %v14688_v6  ;;  %23476 = vmatprep.mubr.msk.f32.mxu1 %vm25098_vm1, %v25097_v48 }
0x1066   :  { %23479 = vmatprep.subr.mxu1 %v25097_v48  ;;  %v15057_v57 = vsel %vm1523_vm2, %v12203_v16, 0 }
0x1067   :  { %v26749_v30 = vand.u32 4294901760, %v15057_v57 }
0x1068   :  { %23452 = vmatmul.mubr.f32.vlgmr.msra.gmra.mrb[22].mxu0 %v26644_v18  ;;  %v15126_v18 = vsub.f32 %v15054_v47, %v26747_v19 }
0x1069   :  { %23455 = vmatpush3.xpose.msra.mxu0 %v26681_v41  ;;  %23456 = vmatprep.mubr.msk.f32.mxu0 %vm25098_vm1, %v25097_v48  ;;  %v15137_v9 = vsub.f32 %v15057_v57, %v26749_v30 }
0x106a   :  { %23459 = vmatprep.subr.mxu0 %v25097_v48  ;;  %v15127_v22 = vand.u32 4294901760, %v15126_v18 }
0x106b   :  { %v15138_v50 = vand.u32 4294901760, %v15137_v9 }
0x106c   :  { %23477 = vmatmul.mubr.f32.vlgmr.msra.gmra.mrb[30].mxu1 %v26679_v7  ;;  %v15128_v15 = vsub.f32 %v15126_v18, %v15127_v22 }
0x106d   :  { %23480 = vmatpush3.xpose.msra.mxu1 %v26692_v54  ;;  %23481 = vmatprep.mubr.msk.f32.mxu1 %vm25098_vm1, %v25097_v48  ;;  %v15139_v62 = vsub.f32 %v15137_v9, %v15138_v50 }
0x106e   :  { %23484 = vmatprep.subr.mxu1 %v25097_v48  ;;  %v15129_v34 = vand.u32 4294901760, %v15128_v15 }
0x1070   :  { %23457 = vmatmul.mubr.f32.vlgmr.msra.gmra.mrb[22].mxu0 %v14223_v59  ;;  %v15509_v59 = vsel %vm1523_vm2, %v12204_v8, 0 }
0x1071   :  { %23460 = vmatpush3.xpose.msra.mxu0 %v14234_v24  ;;  %23461 = vmatprep.mubr.msk.f32.mxu0 %vm25098_vm1, %v25097_v48  ;;  %v15512_v61 = vand.u32 4294901760, %v15509_v59 }
0x1072   :  { %23464 = vmatprep.subr.mxu0 %v25097_v48 }
0x1073   :  { %v15589_v46 = vsub.f32 %v15509_v59, %v15512_v61 }
0x1074   :  { %23482 = vmatmul.mubr.f32.vlgmr.msra.gmra.mrb[30].mxu1 %v26689_v60 }
0x1075   :  { %23485 = vmatpush3.xpose.msra.mxu1 %v26683_v32  ;;  %23486 = vmatprep.mubr.msk.f32.mxu1 %vm25098_vm1, %v25097_v48  ;;  %v15590_v13 = vand.u32 4294901760, %v15589_v46 }
0x1076   :  { %23489 = vmatprep.subr.mxu1 %v25097_v48 }
0x1077   :  { %v15591_v24 = vsub.f32 %v15589_v46, %v15590_v13 }
0x1078   :  { %23462 = vmatmul.mubr.f32.vlgmr.msra.gmra.mrb[22].mxu0 %v26633_v56 }
0x1079   :  { %23465 = vmatpush3.xpose.msra.mxu0 %v26681_v41  ;;  %23466 = vmatprep.mubr.msk.f32.mxu0 %vm25098_vm1, %v25097_v48  ;;  %v15140_v41 = vand.u32 4294901760, %v15139_v62  ;;  %v15592_v54 = vand.u32 4294901760, %v15591_v24 }
0x107a   :  { %23499 = vmatprep.subr.mxu0 %v25097_v48 }
0x107c   :  { %23487 = vmatmul.mubr.f32.vlgmr.msra.gmra.mrb[30].mxu1 %v14675_v26 }
0x107d   :  { %23490 = vmatpush3.xpose.msra.mxu1 %v14686_v58  ;;  %23491 = vmatprep.mubr.msk.f32.mxu1 %vm25098_vm1, %v25097_v48 }
0x107e   :  { %23494 = vmatprep.subr.mxu1 %v25097_v48 }
0x1080   :  { %23467 = vmatmul.mubr.f32.vlgmr.msra.gmra.mrb[22].mxu0 %v26633_v56  ;;  %v15579_v56 = vand.u32 4294901760, %v15578_v63 }
0x1081   :  { %23500 = vmatpush3.xpose.msra.mxu0 %v26749_v30  ;;  %23501 = vmatprep.mubr.msk.f32.mxu0 %vm25098_vm1, %v25097_v48 }
0x1082   :  { %23504 = vmatprep.subr.mxu0 %v25097_v48  ;;  %v15580_v60 = vsub.f32 %v15578_v63, %v15579_v56 }
0x1084   :  { %23502 = vmatmul.mubr.f32.vlgmr.msra.gmra.mrb[24].mxu0 %v15129_v34  ;;  %23492 = vmatmul.mubr.f32.vlgmr.msra.gmra.mrb[30].mxu1 %v26679_v7 }
0x1085   :  { %23505 = vmatpush3.xpose.msra.mxu0 %v15140_v41  ;;  %23495 = vmatpush3.xpose.msra.mxu1 %v26683_v32  ;;  %v15581_v32 = vand.u32 4294901760, %v15580_v60 }
0x1086   :  { %23506 = vmatprep.mubr.msk.f32.mxu0 %vm25098_vm1, %v25097_v48  ;;  %23509 = vmatprep.subr.mxu0 %v25097_v48 }
0x1087   :  { %23496 = vmatprep.mubr.msk.f32.mxu1 %vm25098_vm1, %v25097_v48  ;;  %23529 = vmatprep.subr.mxu1 %v25097_v48 }
0x108c   :  { %23507 = vmatmul.mubr.f32.vlgmr.msra.gmra.mrb[24].mxu0 %v26747_v19  ;;  %23497 = vmatmul.mubr.f32.vlgmr.msra.gmra.mrb[30].mxu1 %v26679_v7 }
0x108d   :  { %23510 = vmatpush3.xpose.msra.mxu0 %v15137_v9  ;;  %23530 = vmatpush3.xpose.msra.mxu1 %v15512_v61 }
0x108e   :  { %23531 = vmatprep.mubr.msk.f32.mxu1 %vm25098_vm1, %v25097_v48  ;;  %23534 = vmatprep.subr.mxu1 %v25097_v48 }
0x108f   :  { %23511 = vmatprep.mubr.msk.f32.mxu0 %vm25098_vm1, %v25097_v48  ;;  %23514 = vmatprep.subr.mxu0 %v25097_v48 }
0x1090   :  { %23532 = vmatmul.mubr.f32.vlgmr.msra.gmra.mrb[32].mxu1 %v15581_v32 }
0x1091   :  { %23535 = vmatpush3.xpose.msra.mxu1 %v15592_v54  ;;  %23536 = vmatprep.mubr.msk.f32.mxu1 %vm25098_vm1, %v25097_v48 }
0x1092   :  { %23539 = vmatprep.subr.mxu1 %v25097_v48 }
0x1094   :  { %23512 = vmatmul.mubr.f32.vlgmr.msra.gmra.mrb[24].mxu0 %v15126_v18 }
0x1095   :  { %23515 = vmatpush3.xpose.msra.mxu0 %v26749_v30  ;;  %23516 = vmatprep.mubr.msk.f32.mxu0 %vm25098_vm1, %v25097_v48 }
0x1096   :  { %23519 = vmatprep.subr.mxu0 %v25097_v48 }
0x1098   :  { %23537 = vmatmul.mubr.f32.vlgmr.msra.gmra.mrb[32].mxu1 %v26768_v45 }
0x1099   :  { %23540 = vmatpush3.xpose.msra.mxu1 %v15589_v46  ;;  %23541 = vmatprep.mubr.msk.f32.mxu1 %vm25098_vm1, %v25097_v48 }
0x109a   :  { %23544 = vmatprep.subr.mxu1 %v25097_v48 }
0x109c   :  { %23517 = vmatmul.mubr.f32.vlgmr.msra.gmra.mrb[24].mxu0 %v15127_v22 }
0x109d   :  { %23520 = vmatpush3.xpose.msra.mxu0 %v15138_v50  ;;  %23521 = vmatprep.mubr.msk.f32.mxu0 %vm25098_vm1, %v25097_v48 }
0x109e   :  { %23524 = vmatprep.subr.mxu0 %v25097_v48 }
0x10a0   :  { %23542 = vmatmul.mubr.f32.vlgmr.msra.gmra.mrb[32].mxu1 %v15578_v63 }
0x10a1   :  { %23545 = vmatpush3.xpose.msra.mxu1 %v15512_v61  ;;  %23546 = vmatprep.mubr.msk.f32.mxu1 %vm25098_vm1, %v25097_v48 }
0x10a2   :  { %23549 = vmatprep.subr.mxu1 %v25097_v48 }
0x10a4   :  { %23522 = vmatmul.mubr.f32.vlgmr.msra.gmra.mrb[24].mxu0 %v26747_v19 }
0x10a5   :  { %23525 = vmatpush3.xpose.msra.mxu0 %v26749_v30  ;;  %23526 = vmatprep.mubr.msk.f32.mxu0 %vm25098_vm1, %v25097_v48 }
0x10a6   :  { %23559 = vmatprep.subr.mxu0 %v25097_v48 }
0x10a8   :  { %23547 = vmatmul.mubr.f32.vlgmr.msra.gmra.mrb[32].mxu1 %v15579_v56 }
0x10a9   :  { %23550 = vmatpush3.xpose.msra.mxu1 %v15590_v13  ;;  %23551 = vmatprep.mubr.msk.f32.mxu1 %vm25098_vm1, %v25097_v48 }
0x10aa   :  { %23554 = vmatprep.subr.mxu1 %v25097_v48 }
0x10ac   :  { %23527 = vmatmul.mubr.f32.vlgmr.msra.gmra.mrb[24].mxu0 %v26747_v19 }
0x10ad   :  { %23561 = vmatprep.mubr.msk.f32.mxu0 %vm25098_vm1, %v25097_v48 }
0x10b0   :  { %23552 = vmatmul.mubr.f32.vlgmr.msra.gmra.mrb[32].mxu1 %v26768_v45 }
0x10b1   :  { %23555 = vmatpush3.xpose.msra.mxu1 %v15512_v61  ;;  %23556 = vmatprep.mubr.msk.f32.mxu1 %vm25098_vm1, %v25097_v48 }
0x10b2   :  { %23589 = vmatprep.subr.mxu1 %v25097_v48 }
0x10b8   :  { %23557 = vmatmul.mubr.f32.vlgmr.msra.gmra.mrb[32].mxu1 %v26768_v45 }
0x10b9   :  { %23591 = vmatprep.mubr.msk.f32.mxu1 %vm25098_vm1, %v25097_v48 }
0x10db   :  { %v12789_v7 = vpop.f32.mrb[24].mxu1  ;;  %v13693_v27 = vpop.f32.mrb[20].mxu0 }
0x10dc   :  { %v23348_v26 = vpop.f32.mrb[25].mxu1  ;;  %v23408_v53 = vpop.f32.mrb[21].mxu0  ;;  %v15957_v58 = vsel %vm1523_vm2, %v12789_v7, -inf  ;;  %v15963_v23 = vsel %vm1523_vm2, %v13693_v27, -inf }
0x10dd   :  { %15958 = vmax.xlane.f32.xlu0 %v15957_v58 }
0x10e1   :  { %15964 = vmax.xlane.f32.xlu0 %v15963_v23 }
0x1107   :  { %v13241_v0 = vpop.f32.mrb[26].mxu1 }
0x1108   :  { %v23378_v2 = vpop.f32.mrb[27].mxu1  ;;  %v15960_v3 = vsel %vm1523_vm2, %v13241_v0, -inf }
0x1109   :  { %15961 = vmax.xlane.f32.xlu1 %v15960_v3 }
0x1133   :  { %v14145_v31 = vpop.f32.mrb[28].mxu1 }
0x1134   :  { %v23438_v6 = vpop.f32.mrb[29].mxu1  ;;  %v15966_v51 = vsel %vm1523_vm2, %v14145_v31, -inf }
0x1135   :  { %15967 = vmax.xlane.f32.xlu0 %v15966_v51 }
0x1153   :  { %v14597_v43 = vpop.f32.mrb[22].mxu0 }
0x1154   :  { %v23468_v5 = vpop.f32.mrb[23].mxu0  ;;  %v15969_v55 = vsel %vm1523_vm2, %v14597_v43, -inf }
0x1155   :  { %15970 = vmax.xlane.f32.xlu0 %v15969_v55 }
0x115f   :  { %v15049_v25 = vpop.f32.mrb[30].mxu1 }
0x1160   :  { %v23498_v49 = vpop.f32.mrb[31].mxu1  ;;  %v15972_v1 = vsel %vm1523_vm2, %v15049_v25, -inf }
0x1161   :  { %15973 = vmax.xlane.f32.xlu1 %v15972_v1 }
0x116a   :  { %v15959_v16 = vpop.xlane.xlu0 %15958 }
0x116b   :  { %v15981_v47 = vsub.f32 %v12789_v7, %v15959_v16 }
0x116d   :  { %v15989_v57 = vmul.f32 1.442695, %v15981_v47 }
0x116f   :  { %24996 = vpow2.f32 %v15989_v57 }
0x1172   :  { %11777 = vrot.lane.b32.xlu1 %v26376_v10, %s25099_s24  ;;  %v15965_v10 = vpop.xlane.xlu0 %15964 }
0x1173   :  { %v15983_v59 = vsub.f32 %v13693_v27, %v15965_v10 }
0x1176   :  { %11781 = vrot.lane.b32.xlu1 %v26374_v11, %s25099_s24  ;;  %v15993_v11 = vmul.f32 1.442695, %v15983_v59 }
0x1179   :  { %v24997_v19 = vpop.eup %24996 }
0x117a   :  { %v16005_v30 = vsel %vm1523_vm2, %v24997_v19, 0.0 }
0x117b   :  { %16006 = vadd.xlane.f32.xlu0 %v16005_v30 }
0x117f   :  { %v26838_v18 = vpop.f32.mrb[24].mxu0 }
0x1180   :  { %v23528_v9 = vpop.f32.mrb[25].mxu0  ;;  %v15975_v62 = vsel %vm1523_vm2, %v26838_v18, -inf }
0x118b   :  { %v26840_v21 = vpop.f32.mrb[32].mxu1 }
0x118c   :  { %v23558_v8 = vpop.f32.mrb[33].mxu1  ;;  %v15978_v13 = vsel %vm1523_vm2, %v26840_v21, -inf }
0x1191   :  { %11773 = vrot.lane.b32.xlu0 %v26364_v14, %s25099_s24 }
0x1196   :  { %v15962_v22 = vpop.xlane.xlu1 %15961 }
0x1197   :  { %v15982_v50 = vsub.f32 %v13241_v0, %v15962_v22 }
0x1199   :  { %v15991_v40 = vmul.f32 1.442695, %v15982_v50 }
0x119b   :  { %24998 = vpow2.f32 %v15991_v40 }
0x119c   :  { %25000 = vpow2.f32 %v15993_v11 }
0x11a5   :  { %v26844_v15 = vpop.eup %24998 }
0x11a6   :  { %v16008_v45 = vsel %vm1523_vm2, %v26844_v15, 0.0  ;;  %v26850_v61 = vpop.eup %25000 }
0x11a7   :  { %16009 = vadd.xlane.f32.xlu1 %v16008_v45  ;;  %v16011_v14 = vsel %vm1523_vm2, %v26850_v61, 0.0 }
0x11b0   :  { %15976 = vmax.xlane.f32.xlu0 %v15975_v62 }
0x11b4   :  { %16012 = vadd.xlane.f32.xlu0 %v16011_v14 }
0x11b8   :  { %11785 = vrot.lane.b32.xlu1 %v26386_v20, %s25099_s24 }
0x11c2   :  { %v15968_v34 = vpop.xlane.xlu0 %15967 }
0x11c3   :  { %v15984_v63 = vsub.f32 %v14145_v31, %v15968_v34 }
0x11c5   :  { %v15995_v41 = vmul.f32 1.442695, %v15984_v63 }
0x11c7   :  { %25002 = vpow2.f32 %v15995_v41 }
0x11d1   :  { %v26856_v46 = vpop.eup %25002 }
0x11d2   :  { %v16014_v56 = vsel %vm1523_vm2, %v26856_v46, 0.0 }
0x11d3   :  { %16015 = vadd.xlane.f32.xlu0 %v16014_v56 }
0x11dc   :  { %15979 = vmax.xlane.f32.xlu1 %v15978_v13 }
0x11e2   :  { %v15971_v60 = vpop.xlane.xlu0 %15970 }
0x11e3   :  { %v15985_v24 = vsub.f32 %v14597_v43, %v15971_v60 }
0x11e5   :  { %v15997_v32 = vmul.f32 1.442695, %v15985_v24 }
0x11e7   :  { %25004 = vpow2.f32 %v15997_v32 }
0x11ed   :  { %11779 = vrot.lane.b32.xlu1 %v26432_v38, %s25099_s24 }
0x11ee   :  { %v15974_v7 = vpop.xlane.xlu1 %15973 }
0x11ef   :  { %v15986_v27 = vsub.f32 %v15049_v25, %v15974_v7 }
0x11f1   :  { %v26864_v20 = vpop.eup %25004  ;;  %11783 = vrot.lane.b32.xlu1 %v26444_v4, %s25099_s24  ;;  %v15999_v26 = vmul.f32 1.442695, %v15986_v27 }
0x11f2   :  { %v16017_v54 = vsel %vm1523_vm2, %v26864_v20, 0.0  ;;  %v11778_v4 = vpop.permute.xlu1 %11777 }
0x11f3   :  { %16018 = vadd.xlane.f32.xlu0 %v16017_v54  ;;  %25006 = vpow2.f32 %v15999_v26 }
0x11f6   :  { %v11782_v23 = vpop.permute.xlu1 %11781 }
0x11fd   :  { %v26872_v53 = vpop.eup %25006 }
0x11fe   :  { %v16020_v38 = vsel %vm1523_vm2, %v26872_v53, 0.0 }
0x1208   :  { %v16007_v58 = vpop.xlane.xlu0 %16006 }
0x1209   :  { %11775 = vrot.lane.b32.xlu0 %v26362_v33, %s25099_s24  ;;  %25008 = vrcp.f32 %v16007_v58 }
0x120c   :  { %v11774_v2 = vpop.permute.xlu0 %11773 }
0x120d   :  { %v11797_v6 = vcombine.low %v11774_v2, %v11782_v23  ;;  %v11798_v33 = vcombine.high %v11774_v2, %v11782_v23 }
0x120f   :  { %v11805_v25 = vrot.slane %v11797_v6, %v25222_v29  ;;  %v11812_v49 = vrot.slane %v11798_v33, %v25222_v29 }
0x1213   :  { %v25009_v0 = vpop.eup %25008 }
0x1214   :  { %v16030_v31 = vmul.f32 %v25009_v0, %v24997_v19 }
0x1215   :  { %16021 = vadd.xlane.f32.xlu1 %v16020_v38 }
0x1216   :  { %v16046_v55 = vsel %vm1523_vm2, %v16030_v31, 0 }
0x1217   :  { %v26883_v16 = vand.u32 4294901760, %v16046_v55 }
0x1219   :  { %v26892_v62 = vsub.f32 %v16046_v55, %v26883_v16 }
0x121b   :  { %v16116_v24 = vand.u32 4294901760, %v26892_v62 }
0x121d   :  { %v16117_v58 = vsub.f32 %v26892_v62, %v16116_v24 }
0x121f   :  { %v16118_v33 = vand.u32 4294901760, %v16117_v58 }
0x1226   :  { %11787 = vrot.lane.b32.xlu1 %v26442_v17, %s25099_s24 }
0x1234   :  { %v16010_v3 = vpop.xlane.xlu1 %16009 }
0x1235   :  { %25010 = vrcp.f32 %v16010_v3 }
0x1238   :  { %v11786_v51 = vpop.permute.xlu1 %11785 }
0x1239   :  { %v11813_v43 = vcombine.low %v11778_v4, %v11786_v51  ;;  %v11814_v5 = vcombine.high %v11778_v4, %v11786_v51 }
0x123b   :  { %v11821_v17 = vrot.slane %v11813_v43, %v25222_v29  ;;  %v11828_v1 = vrot.slane %v11814_v5, %v25222_v29 }
0x123d   :  { %v11829_v47 = vcombine.low %v11805_v25, %v11821_v17  ;;  %v11830_v57 = vcombine.high %v11805_v25, %v11821_v17  ;;  %v11845_v19 = vcombine.low %v11812_v49, %v11828_v1  ;;  %v11846_v30 = vcombine.high %v11812_v49, %v11828_v1  ;;  %v15977_v9 = vpop.xlane.xlu0 %15976 }
0x123e   :  { %v15987_v8 = vsub.f32 %v26838_v18, %v15977_v9 }
0x123f   :  { %v25011_v22 = vpop.eup %25010  ;;  %v11837_v50 = vrot.slane %v11829_v47, %v25239_v35  ;;  %v11844_v40 = vrot.slane %v11830_v57, %v25239_v35  ;;  %v11853_v10 = vrot.slane %v11845_v19, %v25239_v35  ;;  %v11860_v59 = vrot.slane %v11846_v30, %v25239_v35 }
0x1240   :  { %v16032_v11 = vmul.f32 %v25011_v22, %v26844_v15  ;;  %v16001_v45 = vmul.f32 1.442695, %v15987_v8 }
0x1241   :  { %v12205_v14 = vcombine.low %v11837_v50, %v11844_v40  ;;  %v21733_v34 = vcombine.high %v11837_v50, %v11844_v40  ;;  %v12221_v63 = vcombine.low %v11853_v10, %v11860_v59  ;;  %v21734_v41 = vcombine.high %v11853_v10, %v11860_v59  ;;  %v16013_v47 = vpop.xlane.xlu0 %16012 }
0x1242   :  { %25012 = vpow2.f32 %v16001_v45  ;;  %v16495_v18 = vsel %vm1523_vm2, %v16032_v11, 0 }
0x1243   :  { %v26896_v56 = vrot.slane %v12205_v14, %v25222_v29  ;;  %v26899_v13 = vrot.slane %v21733_v34, %v25222_v29  ;;  %v26902_v60 = vrot.slane %v12221_v63, %v25222_v29  ;;  %v26905_v15 = vrot.slane %v21734_v41, %v25222_v29 }
0x1244   :  { %v26908_v32 = vand.u32 4294901760, %v16495_v18  ;;  %25014 = vrcp.f32 %v16013_v47 }
0x1245   :  { %v12237_v54 = vcombine.low %v26896_v56, %v26899_v13  ;;  %v12253_v7 = vcombine.low %v26902_v60, %v26905_v15  ;;  %v12238_v30 = vcombine.high %v26896_v56, %v26899_v13  ;;  %v12254_v9 = vcombine.high %v26902_v60, %v26905_v15 }
0x1246   :  { %v26915_v27 = vsub.f32 %v16495_v18, %v26908_v32 }
0x1247   :  { %v12245_v26 = vrot.slane %v12237_v54, %v25239_v35  ;;  %v12261_v38 = vrot.slane %v12253_v7, %v25239_v35  ;;  %v12252_v40 = vrot.slane %v12238_v30, %v25239_v35  ;;  %v12268_v10 = vrot.slane %v12254_v9, %v25239_v35 }
0x1248   :  { %v16565_v4 = vand.u32 4294901760, %v26915_v27 }
0x1249   :  { %v12269_v23 = vcombine.low %v12245_v26, %v12261_v38  ;;  %v12270_v0 = vcombine.high %v12245_v26, %v12261_v38  ;;  %v12271_v59 = vcombine.low %v12252_v40, %v12268_v10  ;;  %v12272_v11 = vcombine.high %v12252_v40, %v12268_v10 }
0x124a   :  { %v16566_v2 = vsub.f32 %v26915_v27, %v16565_v4 }
0x124b   :  { %v26924_v3 = vand.u32 4294901760, %v12269_v23  ;;  %v26926_v31 = vand.u32 4294901760, %v12270_v0  ;;  %v26981_v34 = vand.u32 4294901760, %v12271_v59  ;;  %v26983_v63 = vand.u32 4294901760, %v12272_v11 }
0x124c   :  { %v26928_v6 = vpop.eup %25012  ;;  %v16567_v51 = vand.u32 4294901760, %v16566_v2 }
0x124d   :  { %23560 = vmatpush3.msra.mxu0 %v26924_v3  ;;  %v16126_v43 = vsub.f32 %v12269_v23, %v26924_v3  ;;  %23590 = vmatpush3.msra.mxu1 %v26926_v31  ;;  %v16575_v5 = vsub.f32 %v12270_v0, %v26926_v31  ;;  %v16023_v55 = vsel %vm1523_vm2, %v26928_v6, 0.0  ;;  %v17024_v60 = vsub.f32 %v12271_v59, %v26981_v34 }
0x124e   :  { %23562 = vmatmul.mubr.f32.vlgmr.msra.gmra.mrb[26].mxu0 %v16118_v33  ;;  %23592 = vmatmul.mubr.f32.vlgmr.msra.gmra.mrb[34].mxu1 %v16567_v51  ;;  %v25015_v8 = vpop.eup %25014 }
0x124f   :  { %16024 = vadd.xlane.f32.xlu0 %v16023_v55  ;;  %23564 = vmatprep.subr.mxu0 %v25097_v48  ;;  %v16127_v25 = vand.u32 4294901760, %v16126_v43  ;;  %v16576_v49 = vand.u32 4294901760, %v16575_v5  ;;  %v16034_v50 = vmul.f32 %v25015_v8, %v26850_v61  ;;  %v17025_v7 = vand.u32 4294901760, %v17024_v60 }
0x1250   :  { %23594 = vmatprep.subr.mxu1 %v25097_v48  ;;  %23566 = vmatprep.mubr.msk.f32.mxu0 %vm25098_vm1, %v25097_v48 }
0x1251   :  { %v16128_v17 = vsub.f32 %v16126_v43, %v16127_v25  ;;  %v16577_v1 = vsub.f32 %v16575_v5, %v16576_v49  ;;  %23596 = vmatprep.mubr.msk.f32.mxu1 %vm25098_vm1, %v25097_v48  ;;  %v16944_v45 = vsel %vm1523_vm2, %v16034_v50, 0 }
0x1252   :  { %v26977_v14 = vand.u32 4294901760, %v16944_v45 }
0x1253   :  { %v16129_v57 = vand.u32 4294901760, %v16128_v17  ;;  %v16578_v19 = vand.u32 4294901760, %v16577_v1 }
0x1254   :  { %v26987_v13 = vsub.f32 %v16944_v45, %v26977_v14 }
0x1255   :  { %23565 = vmatpush3.msra.mxu0 %v16129_v57  ;;  %23595 = vmatpush3.msra.mxu1 %v16578_v19 }
0x1256   :  { %23567 = vmatmul.mubr.f32.vlgmr.msra.gmra.mrb[26].mxu0 %v26883_v16  ;;  %23569 = vmatprep.subr.mxu0 %v25097_v48 }
0x1257   :  { %23597 = vmatmul.mubr.f32.vlgmr.msra.gmra.mrb[34].mxu1 %v26908_v32  ;;  %23599 = vmatprep.subr.mxu1 %v25097_v48 }
0x1258   :  { %23570 = vmatpush3.msra.mxu0 %v16126_v43  ;;  %23600 = vmatpush3.msra.mxu1 %v16575_v5 }
0x1259   :  { %23571 = vmatprep.mubr.msk.f32.mxu0 %vm25098_vm1, %v25097_v48  ;;  %23574 = vmatprep.subr.mxu0 %v25097_v48 }
0x125a   :  { %23601 = vmatprep.mubr.msk.f32.mxu1 %vm25098_vm1, %v25097_v48  ;;  %23604 = vmatprep.subr.mxu1 %v25097_v48 }
0x125e   :  { %23572 = vmatmul.mubr.f32.vlgmr.msra.gmra.mrb[26].mxu0 %v26892_v62 }
0x125f   :  { %23575 = vmatpush3.msra.mxu0 %v26924_v3  ;;  %23602 = vmatmul.mubr.f32.vlgmr.msra.gmra.mrb[34].mxu1 %v26915_v27 }
0x1260   :  { %23605 = vmatpush3.msra.mxu1 %v26926_v31  ;;  %v16016_v22 = vpop.xlane.xlu0 %16015  ;;  %23576 = vmatprep.mubr.msk.f32.mxu0 %vm25098_vm1, %v25097_v48 }
0x1261   :  { %25016 = vrcp.f32 %v16016_v22  ;;  %23579 = vmatprep.subr.mxu0 %v25097_v48  ;;  %23606 = vmatprep.mubr.msk.f32.mxu1 %vm25098_vm1, %v25097_v48 }
0x1262   :  { %23609 = vmatprep.subr.mxu1 %v25097_v48 }
0x1266   :  { %23577 = vmatmul.mubr.f32.vlgmr.msra.gmra.mrb[26].mxu0 %v16116_v24 }
0x1267   :  { %23580 = vmatpush3.msra.mxu0 %v16127_v25  ;;  %23607 = vmatmul.mubr.f32.vlgmr.msra.gmra.mrb[34].mxu1 %v16565_v4  ;;  %v17026_v4 = vsub.f32 %v17024_v60, %v17025_v7 }
0x1268   :  { %23610 = vmatpush3.msra.mxu1 %v16576_v49  ;;  %23581 = vmatprep.mubr.msk.f32.mxu0 %vm25098_vm1, %v25097_v48 }
0x1269   :  { %v15980_v61 = vpop.xlane.xlu1 %15979  ;;  %23584 = vmatprep.subr.mxu0 %v25097_v48  ;;  %23611 = vmatprep.mubr.msk.f32.mxu1 %vm25098_vm1, %v25097_v48 }
0x126a   :  { %v15988_v62 = vsub.f32 %v26840_v21, %v15980_v61  ;;  %23614 = vmatprep.subr.mxu1 %v25097_v48  ;;  %v17473_v21 = vsub.f32 %v12272_v11, %v26983_v63 }
0x126b   :  { %v25017_v41 = vpop.eup %25016 }
0x126c   :  { %v16036_v18 = vmul.f32 %v25017_v41, %v26856_v46  ;;  %v16003_v56 = vmul.f32 1.442695, %v15988_v62  ;;  %v17014_v46 = vand.u32 4294901760, %v26987_v13  ;;  %v17474_v27 = vand.u32 4294901760, %v17473_v21 }
0x126d   :  { %v11780_v51 = vpop.permute.xlu1 %11779 }
0x126e   :  { %25018 = vpow2.f32 %v16003_v56  ;;  %23582 = vmatmul.mubr.f32.vlgmr.msra.gmra.mrb[26].mxu0 %v26883_v16  ;;  %v17393_v15 = vsel %vm1523_vm2, %v16036_v18, 0  ;;  %v17015_v38 = vsub.f32 %v26987_v13, %v17014_v46  ;;  %v17475_v23 = vsub.f32 %v17473_v21, %v17474_v27 }
0x126f   :  { %23585 = vmatpush3.msra.mxu0 %v26924_v3  ;;  %23612 = vmatmul.mubr.f32.vlgmr.msra.gmra.mrb[34].mxu1 %v26908_v32  ;;  %v26995_v24 = vand.u32 4294901760, %v17393_v15 }
0x1270   :  { %23615 = vmatpush3.msra.mxu1 %v26926_v31  ;;  %23586 = vmatprep.mubr.msk.f32.mxu0 %vm25098_vm1, %v25097_v48  ;;  %v17016_v3 = vand.u32 4294901760, %v17015_v38  ;;  %v17476_v31 = vand.u32 4294901760, %v17475_v23 }
0x1271   :  { %23616 = vmatprep.mubr.msk.f32.mxu1 %vm25098_vm1, %v25097_v48  ;;  %23619 = vmatprep.subr.mxu0 %v25097_v48  ;;  %v17462_v54 = vsub.f32 %v17393_v15, %v26995_v24  ;;  %v11784_v43 = vpop.permute.xlu1 %11783 }
0x1272   :  { %23649 = vmatprep.subr.mxu1 %v25097_v48 }
0x1273   :  { %v17463_v26 = vand.u32 4294901760, %v17462_v54 }
0x1275   :  { %v17464_v58 = vsub.f32 %v17462_v54, %v17463_v26 }
0x1276   :  { %23587 = vmatmul.mubr.f32.vlgmr.msra.gmra.mrb[26].mxu0 %v26883_v16 }
0x1277   :  { %23617 = vmatmul.mubr.f32.vlgmr.msra.gmra.mrb[34].mxu1 %v26908_v32  ;;  %23620 = vmatpush3.msra.mxu0 %v26981_v34  ;;  %v17465_v0 = vand.u32 4294901760, %v17464_v58  ;;  %v17027_v32 = vand.u32 4294901760, %v17026_v4 }
0x1278   :  { %v27010_v2 = vpop.eup %25018  ;;  %23650 = vmatpush3.msra.mxu1 %v26983_v63  ;;  %23621 = vmatprep.mubr.msk.f32.mxu0 %vm25098_vm1, %v25097_v48 }
0x1279   :  { %23624 = vmatprep.subr.mxu0 %v25097_v48  ;;  %23651 = vmatprep.mubr.msk.f32.mxu1 %vm25098_vm1, %v25097_v48  ;;  %v16026_v16 = vsel %vm1523_vm2, %v27010_v2, 0.0 }
0x127a   :  { %23654 = vmatprep.subr.mxu1 %v25097_v48  ;;  %16027 = vadd.xlane.f32.xlu1 %v16026_v16 }
0x127b   :  { %23622 = vmatmul.mubr.f32.vlgmr.msra.gmra.mrb[28].mxu0 %v17016_v3  ;;  %23652 = vmatmul.mubr.f32.vlgmr.msra.gmra.mrb[36].mxu1 %v17465_v0 }
0x127c   :  { %23625 = vmatpush3.msra.mxu0 %v17027_v32  ;;  %23655 = vmatpush3.msra.mxu1 %v17476_v31 }
0x127d   :  { %23626 = vmatprep.mubr.msk.f32.mxu0 %vm25098_vm1, %v25097_v48  ;;  %23629 = vmatprep.subr.mxu0 %v25097_v48 }
0x127e   :  { %23656 = vmatprep.mubr.msk.f32.mxu1 %vm25098_vm1, %v25097_v48  ;;  %23659 = vmatprep.subr.mxu1 %v25097_v48 }
0x1280   :  { %v16019_v33 = vpop.xlane.xlu0 %16018 }
0x1281   :  { %25020 = vrcp.f32 %v16019_v33 }
0x1283   :  { %23627 = vmatmul.mubr.f32.vlgmr.msra.gmra.mrb[28].mxu0 %v26977_v14  ;;  %23657 = vmatmul.mubr.f32.vlgmr.msra.gmra.mrb[36].mxu1 %v26995_v24 }
0x1284   :  { %23630 = vmatpush3.msra.mxu0 %v17024_v60  ;;  %23660 = vmatpush3.msra.mxu1 %v17473_v21  ;;  %v11776_v55 = vpop.permute.xlu0 %11775 }
0x1285   :  { %23631 = vmatprep.mubr.msk.f32.mxu0 %vm25098_vm1, %v25097_v48  ;;  %23634 = vmatprep.subr.mxu0 %v25097_v48  ;;  %v11865_v17 = vcombine.low %v11776_v55, %v11784_v43  ;;  %v11866_v1 = vcombine.high %v11776_v55, %v11784_v43 }
0x1286   :  { %23661 = vmatprep.mubr.msk.f32.mxu1 %vm25098_vm1, %v25097_v48  ;;  %23664 = vmatprep.subr.mxu1 %v25097_v48 }
0x1287   :  { %v11880_v9 = vrot.slane %v11866_v1, %v25222_v29 }
0x128b   :  { %23632 = vmatmul.mubr.f32.vlgmr.msra.gmra.mrb[28].mxu0 %v26987_v13  ;;  %23662 = vmatmul.mubr.f32.vlgmr.msra.gmra.mrb[36].mxu1 %v17462_v54  ;;  %v25021_v5 = vpop.eup %25020 }
0x128c   :  { %23635 = vmatpush3.msra.mxu0 %v26981_v34  ;;  %23665 = vmatpush3.msra.mxu1 %v26983_v63  ;;  %v16038_v49 = vmul.f32 %v25021_v5, %v26864_v20  ;;  %v11873_v20 = vrot.slane %v11865_v17, %v25222_v29 }
0x128d   :  { %23636 = vmatprep.mubr.msk.f32.mxu0 %vm25098_vm1, %v25097_v48  ;;  %23639 = vmatprep.subr.mxu0 %v25097_v48 }
0x128e   :  { %23666 = vmatprep.mubr.msk.f32.mxu1 %vm25098_vm1, %v25097_v48  ;;  %23669 = vmatprep.subr.mxu1 %v25097_v48  ;;  %v17842_v30 = vsel %vm1523_vm2, %v16038_v49, 0 }
0x128f   :  { %v27072_v50 = vand.u32 4294901760, %v17842_v30 }
0x1291   :  { %v17911_v41 = vsub.f32 %v17842_v30, %v27072_v50 }
0x1293   :  { %23637 = vmatmul.mubr.f32.vlgmr.msra.gmra.mrb[28].mxu0 %v17014_v46  ;;  %23667 = vmatmul.mubr.f32.vlgmr.msra.gmra.mrb[36].mxu1 %v17463_v26 }
0x1294   :  { %23640 = vmatpush3.msra.mxu0 %v17025_v7  ;;  %23670 = vmatpush3.msra.mxu1 %v17474_v27 }
0x1295   :  { %23641 = vmatprep.mubr.msk.f32.mxu0 %vm25098_vm1, %v25097_v48  ;;  %23644 = vmatprep.subr.mxu0 %v25097_v48 }
0x1296   :  { %23671 = vmatprep.mubr.msk.f32.mxu1 %vm25098_vm1, %v25097_v48  ;;  %23674 = vmatprep.subr.mxu1 %v25097_v48 }
0x129b   :  { %23642 = vmatmul.mubr.f32.vlgmr.msra.gmra.mrb[28].mxu0 %v26977_v14  ;;  %23672 = vmatmul.mubr.f32.vlgmr.msra.gmra.mrb[36].mxu1 %v26995_v24 }
0x129c   :  { %23645 = vmatpush3.msra.mxu0 %v26981_v34  ;;  %23675 = vmatpush3.msra.mxu1 %v26983_v63 }
0x129d   :  { %23646 = vmatprep.mubr.msk.f32.mxu0 %vm25098_vm1, %v25097_v48  ;;  %23676 = vmatprep.mubr.msk.f32.mxu1 %vm25098_vm1, %v25097_v48 }
0x129e   :  { %23679 = vmatprep.subr.mxu0 %v25097_v48  ;;  %23709 = vmatprep.subr.mxu1 %v25097_v48 }
0x12a2   :  { %v16022_v25 = vpop.xlane.xlu1 %16021 }
0x12a3   :  { %25022 = vrcp.f32 %v16022_v25  ;;  %23647 = vmatmul.mubr.f32.vlgmr.msra.gmra.mrb[28].mxu0 %v26977_v14  ;;  %23677 = vmatmul.mubr.f32.vlgmr.msra.gmra.mrb[36].mxu1 %v26995_v24 }
0x12a4   :  { %23681 = vmatprep.mubr.msk.f32.mxu0 %vm25098_vm1, %v25097_v48  ;;  %23711 = vmatprep.mubr.msk.f32.mxu1 %vm25098_vm1, %v25097_v48 }
0x12a6   :  { %v11788_v47 = vpop.permute.xlu1 %11787 }
0x12a7   :  { %v11881_v57 = vcombine.low %v11780_v51, %v11788_v47  ;;  %v11882_v19 = vcombine.high %v11780_v51, %v11788_v47 }
0x12a9   :  { %v11889_v8 = vrot.slane %v11881_v57, %v25222_v29  ;;  %v11896_v22 = vrot.slane %v11882_v19, %v25222_v29 }
0x12ab   :  { %v11897_v40 = vcombine.low %v11873_v20, %v11889_v8  ;;  %v11898_v10 = vcombine.high %v11873_v20, %v11889_v8  ;;  %v11913_v59 = vcombine.low %v11880_v9, %v11896_v22  ;;  %v11914_v11 = vcombine.high %v11880_v9, %v11896_v22 }
0x12ad   :  { %v25023_v45 = vpop.eup %25022  ;;  %v11905_v61 = vrot.slane %v11897_v40, %v25239_v35  ;;  %v11912_v14 = vrot.slane %v11898_v10, %v25239_v35  ;;  %v11921_v62 = vrot.slane %v11913_v59, %v25239_v35  ;;  %v11928_v34 = vrot.slane %v11914_v11, %v25239_v35 }
0x12ae   :  { %v16040_v63 = vmul.f32 %v25023_v45, %v26872_v53  ;;  %v17912_v53 = vand.u32 4294901760, %v17911_v41 }
0x12af   :  { %v12273_v18 = vcombine.low %v11905_v61, %v11912_v14  ;;  %v21735_v56 = vcombine.high %v11905_v61, %v11912_v14  ;;  %v12289_v13 = vcombine.low %v11921_v62, %v11928_v34  ;;  %v21736_v60 = vcombine.high %v11921_v62, %v11928_v34 }
0x12b0   :  { %v18291_v21 = vsel %vm1523_vm2, %v16040_v63, 0  ;;  %v17913_v23 = vsub.f32 %v17911_v41, %v17912_v53 }
0x12b1   :  { %v27082_v15 = vrot.slane %v12273_v18, %v25222_v29  ;;  %v27085_v24 = vrot.slane %v21735_v56, %v25222_v29  ;;  %v27088_v46 = vrot.slane %v12289_v13, %v25222_v29  ;;  %v27091_v54 = vrot.slane %v21736_v60, %v25222_v29 }
0x12b2   :  { %v27093_v7 = vand.u32 4294901760, %v18291_v21  ;;  %v17914_v51 = vand.u32 4294901760, %v17913_v23 }
0x12b3   :  { %v12305_v27 = vcombine.low %v27082_v15, %v27085_v24  ;;  %v12321_v26 = vcombine.low %v27088_v46, %v27091_v54  ;;  %v12306_v19 = vcombine.high %v27082_v15, %v27085_v24  ;;  %v12322_v30 = vcombine.high %v27088_v46, %v27091_v54 }
0x12b4   :  { %v18360_v38 = vsub.f32 %v18291_v21, %v27093_v7 }
0x12b5   :  { %v12313_v58 = vrot.slane %v12305_v27, %v25239_v35  ;;  %v12329_v4 = vrot.slane %v12321_v26, %v25239_v35  ;;  %v12320_v20 = vrot.slane %v12306_v19, %v25239_v35  ;;  %v12336_v9 = vrot.slane %v12322_v30, %v25239_v35 }
0x12b6   :  { %v18361_v0 = vand.u32 4294901760, %v18360_v38 }
0x12b7   :  { %v12337_v16 = vcombine.low %v12313_v58, %v12329_v4  ;;  %v12338_v3 = vcombine.high %v12313_v58, %v12329_v4  ;;  %v12339_v22 = vcombine.low %v12320_v20, %v12336_v9  ;;  %v12340_v40 = vcombine.high %v12320_v20, %v12336_v9 }
0x12b8   :  { %v18362_v32 = vsub.f32 %v18360_v38, %v18361_v0 }
0x12b9   :  { %v17845_v31 = vand.u32 4294901760, %v12337_v16  ;;  %v18294_v33 = vand.u32 4294901760, %v12338_v3  ;;  %v18743_v10 = vand.u32 4294901760, %v12339_v22  ;;  %v27145_v59 = vand.u32 4294901760, %v12340_v40 }
0x12ba   :  { %v18363_v43 = vand.u32 4294901760, %v18362_v32 }
0x12bb   :  { %23680 = vmatpush3.msra.mxu0 %v17845_v31  ;;  %v17922_v5 = vsub.f32 %v12337_v16, %v17845_v31  ;;  %23710 = vmatpush3.msra.mxu1 %v18294_v33  ;;  %v18371_v55 = vsub.f32 %v12338_v3, %v18294_v33  ;;  %v18820_v61 = vsub.f32 %v12339_v22, %v18743_v10 }
0x12bc   :  { %23682 = vmatmul.mubr.f32.vlgmr.msra.gmra.mrb[30].mxu0 %v17914_v51  ;;  %23712 = vmatmul.mubr.f32.vlgmr.msra.gmra.mrb[38].mxu1 %v18363_v43  ;;  %v19269_v21 = vsub.f32 %v12340_v40, %v27145_v59 }
0x12bd   :  { %23684 = vmatprep.subr.mxu0 %v25097_v48  ;;  %23714 = vmatprep.subr.mxu1 %v25097_v48  ;;  %v17923_v25 = vand.u32 4294901760, %v17922_v5  ;;  %v18372_v49 = vand.u32 4294901760, %v18371_v55  ;;  %v18821_v62 = vand.u32 4294901760, %v18820_v61 }
0x12be   :  { %23686 = vmatprep.mubr.msk.f32.mxu0 %vm25098_vm1, %v25097_v48  ;;  %23716 = vmatprep.mubr.msk.f32.mxu1 %vm25098_vm1, %v25097_v48  ;;  %v19270_v54 = vand.u32 4294901760, %v19269_v21 }
0x12bf   :  { %v17924_v17 = vsub.f32 %v17922_v5, %v17923_v25  ;;  %v18373_v1 = vsub.f32 %v18371_v55, %v18372_v49 }
0x12c0   :  { %v19271_v27 = vsub.f32 %v19269_v21, %v19270_v54 }
0x12c1   :  { %v17925_v47 = vand.u32 4294901760, %v17924_v17  ;;  %v18374_v57 = vand.u32 4294901760, %v18373_v1 }
0x12c2   :  { %v19272_v58 = vand.u32 4294901760, %v19271_v27 }
0x12c3   :  { %23685 = vmatpush3.msra.mxu0 %v17925_v47  ;;  %23715 = vmatpush3.msra.mxu1 %v18374_v57 }
0x12c4   :  { %23687 = vmatmul.mubr.f32.vlgmr.msra.gmra.mrb[30].mxu0 %v27072_v50  ;;  %23689 = vmatprep.subr.mxu0 %v25097_v48 }
0x12c5   :  { %23717 = vmatmul.mubr.f32.vlgmr.msra.gmra.mrb[38].mxu1 %v27093_v7  ;;  %23719 = vmatprep.subr.mxu1 %v25097_v48 }
0x12c6   :  { %23690 = vmatpush3.msra.mxu0 %v17922_v5  ;;  %23720 = vmatpush3.msra.mxu1 %v18371_v55 }
0x12c7   :  { %23691 = vmatprep.mubr.msk.f32.mxu0 %vm25098_vm1, %v25097_v48  ;;  %23694 = vmatprep.subr.mxu0 %v25097_v48 }
0x12c8   :  { %23721 = vmatprep.mubr.msk.f32.mxu1 %vm25098_vm1, %v25097_v48  ;;  %23724 = vmatprep.subr.mxu1 %v25097_v48 }
0x12cc   :  { %23692 = vmatmul.mubr.f32.vlgmr.msra.gmra.mrb[30].mxu0 %v17911_v41  ;;  %v18822_v41 = vsub.f32 %v18820_v61, %v18821_v62 }
0x12cd   :  { %23695 = vmatpush3.msra.mxu0 %v17845_v31  ;;  %23722 = vmatmul.mubr.f32.vlgmr.msra.gmra.mrb[38].mxu1 %v18360_v38 }
0x12ce   :  { %23725 = vmatpush3.msra.mxu1 %v18294_v33  ;;  %23696 = vmatprep.mubr.msk.f32.mxu0 %vm25098_vm1, %v25097_v48  ;;  %v18823_v13 = vand.u32 4294901760, %v18822_v41 }
0x12cf   :  { %23699 = vmatprep.subr.mxu0 %v25097_v48  ;;  %23726 = vmatprep.mubr.msk.f32.mxu1 %vm25098_vm1, %v25097_v48 }
0x12d0   :  { %23729 = vmatprep.subr.mxu1 %v25097_v48 }
0x12d4   :  { %23697 = vmatmul.mubr.f32.vlgmr.msra.gmra.mrb[30].mxu0 %v17912_v53 }
0x12d5   :  { %23700 = vmatpush3.msra.mxu0 %v17923_v25  ;;  %23727 = vmatmul.mubr.f32.vlgmr.msra.gmra.mrb[38].mxu1 %v18361_v0 }
0x12d6   :  { %23730 = vmatpush3.msra.mxu1 %v18372_v49  ;;  %23701 = vmatprep.mubr.msk.f32.mxu0 %vm25098_vm1, %v25097_v48 }
0x12d7   :  { %23704 = vmatprep.subr.mxu0 %v25097_v48  ;;  %23731 = vmatprep.mubr.msk.f32.mxu1 %vm25098_vm1, %v25097_v48 }
0x12d8   :  { %23734 = vmatprep.subr.mxu1 %v25097_v48 }
0x12dc   :  { %v16025_v8 = vpop.xlane.xlu0 %16024  ;;  %23702 = vmatmul.mubr.f32.vlgmr.msra.gmra.mrb[30].mxu0 %v27072_v50 }
0x12dd   :  { %25024 = vrcp.f32 %v16025_v8  ;;  %23705 = vmatpush3.msra.mxu0 %v17845_v31  ;;  %23732 = vmatmul.mubr.f32.vlgmr.msra.gmra.mrb[38].mxu1 %v27093_v7 }
0x12de   :  { %23735 = vmatpush3.msra.mxu1 %v18294_v33  ;;  %23706 = vmatprep.mubr.msk.f32.mxu0 %vm25098_vm1, %v25097_v48 }
0x12df   :  { %23736 = vmatprep.mubr.msk.f32.mxu1 %vm25098_vm1, %v25097_v48  ;;  %23739 = vmatprep.subr.mxu0 %v25097_v48 }
0x12e0   :  { %23769 = vmatprep.subr.mxu1 %v25097_v48 }
0x12e4   :  { %23707 = vmatmul.mubr.f32.vlgmr.msra.gmra.mrb[30].mxu0 %v27072_v50 }
0x12e5   :  { %23737 = vmatmul.mubr.f32.vlgmr.msra.gmra.mrb[38].mxu1 %v27093_v7  ;;  %23740 = vmatpush3.msra.mxu0 %v18743_v10 }
0x12e6   :  { %23770 = vmatpush3.msra.mxu1 %v27145_v59  ;;  %23741 = vmatprep.mubr.msk.f32.mxu0 %vm25098_vm1, %v25097_v48 }
0x12e7   :  { %v25025_v11 = vpop.eup %25024  ;;  %23744 = vmatprep.subr.mxu0 %v25097_v48  ;;  %23771 = vmatprep.mubr.msk.f32.mxu1 %vm25098_vm1, %v25097_v48 }
0x12e8   :  { %v16042_v45 = vmul.f32 %v25025_v11, %v26928_v6  ;;  %23774 = vmatprep.subr.mxu1 %v25097_v48 }
0x12ea   :  { %v18740_v50 = vsel %vm1523_vm2, %v16042_v45, 0 }
0x12eb   :  { %v18808_v14 = vand.u32 4294901760, %v18740_v50 }
0x12ed   :  { %v18809_v34 = vsub.f32 %v18740_v50, %v18808_v14 }
0x12ef   :  { %v18810_v63 = vand.u32 4294901760, %v18809_v34 }
0x12f1   :  { %v18811_v18 = vsub.f32 %v18809_v34, %v18810_v63 }
0x12f3   :  { %v18812_v56 = vand.u32 4294901760, %v18811_v18 }
0x12f5   :  { %23742 = vmatmul.mubr.f32.vlgmr.msra.gmra.mrb[32].mxu0 %v18812_v56 }
0x12f6   :  { %23745 = vmatpush3.msra.mxu0 %v18823_v13  ;;  %23746 = vmatprep.mubr.msk.f32.mxu0 %vm25098_vm1, %v25097_v48 }
0x12f7   :  { %23749 = vmatprep.subr.mxu0 %v25097_v48 }
0x12fd   :  { %23747 = vmatmul.mubr.f32.vlgmr.msra.gmra.mrb[32].mxu0 %v18808_v14 }
0x12fe   :  { %23750 = vmatpush3.msra.mxu0 %v18820_v61  ;;  %23751 = vmatprep.mubr.msk.f32.mxu0 %vm25098_vm1, %v25097_v48 }
0x12ff   :  { %23754 = vmatprep.subr.mxu0 %v25097_v48 }
0x1305   :  { %23752 = vmatmul.mubr.f32.vlgmr.msra.gmra.mrb[32].mxu0 %v18809_v34 }
0x1306   :  { %23755 = vmatpush3.msra.mxu0 %v18743_v10  ;;  %23756 = vmatprep.mubr.msk.f32.mxu0 %vm25098_vm1, %v25097_v48 }
0x1307   :  { %v16028_v6 = vpop.xlane.xlu1 %16027  ;;  %23759 = vmatprep.subr.mxu0 %v25097_v48 }
0x1308   :  { %25026 = vrcp.f32 %v16028_v6 }
0x130d   :  { %23757 = vmatmul.mubr.f32.vlgmr.msra.gmra.mrb[32].mxu0 %v18810_v63 }
0x130e   :  { %23760 = vmatpush3.msra.mxu0 %v18821_v62  ;;  %23761 = vmatprep.mubr.msk.f32.mxu0 %vm25098_vm1, %v25097_v48 }
0x130f   :  { %23764 = vmatprep.subr.mxu0 %v25097_v48 }
0x1312   :  { %v25027_v60 = vpop.eup %25026 }
0x1313   :  { %v16044_v15 = vmul.f32 %v25027_v60, %v27010_v2 }
0x1315   :  { %23762 = vmatmul.mubr.f32.vlgmr.msra.gmra.mrb[32].mxu0 %v18808_v14  ;;  %v19189_v24 = vsel %vm1523_vm2, %v16044_v15, 0 }
0x1316   :  { %23765 = vmatpush3.msra.mxu0 %v18743_v10  ;;  %23766 = vmatprep.mubr.msk.f32.mxu0 %vm25098_vm1, %v25097_v48  ;;  %v19257_v46 = vand.u32 4294901760, %v19189_v24 }
0x1318   :  { %v19258_v53 = vsub.f32 %v19189_v24, %v19257_v46 }
0x131a   :  { %v19259_v7 = vand.u32 4294901760, %v19258_v53 }
0x131c   :  { %v19260_v26 = vsub.f32 %v19258_v53, %v19259_v7 }
0x131d   :  { %23767 = vmatmul.mubr.f32.vlgmr.msra.gmra.mrb[32].mxu0 %v18808_v14 }
0x131e   :  { %v19261_v38 = vand.u32 4294901760, %v19260_v26 }
0x1320   :  { %23772 = vmatmul.mubr.f32.vlgmr.msra.gmra.mrb[40].mxu1 %v19261_v38 }
0x1321   :  { %23775 = vmatpush3.msra.mxu1 %v19272_v58  ;;  %23776 = vmatprep.mubr.msk.f32.mxu1 %vm25098_vm1, %v25097_v48 }
0x1322   :  { %23779 = vmatprep.subr.mxu1 %v25097_v48 }
0x1328   :  { %23777 = vmatmul.mubr.f32.vlgmr.msra.gmra.mrb[40].mxu1 %v19257_v46 }
0x1329   :  { %23780 = vmatpush3.msra.mxu1 %v19269_v21  ;;  %23781 = vmatprep.mubr.msk.f32.mxu1 %vm25098_vm1, %v25097_v48 }
0x132a   :  { %23784 = vmatprep.subr.mxu1 %v25097_v48 }
0x1330   :  { %23782 = vmatmul.mubr.f32.vlgmr.msra.gmra.mrb[40].mxu1 %v19258_v53 }
0x1331   :  { %23785 = vmatpush3.msra.mxu1 %v27145_v59  ;;  %23786 = vmatprep.mubr.msk.f32.mxu1 %vm25098_vm1, %v25097_v48 }
0x1332   :  { %23789 = vmatprep.subr.mxu1 %v25097_v48 }
0x1338   :  { %23787 = vmatmul.mubr.f32.vlgmr.msra.gmra.mrb[40].mxu1 %v19259_v7 }
0x1339   :  { %23790 = vmatpush3.msra.mxu1 %v19270_v54  ;;  %23791 = vmatprep.mubr.msk.f32.mxu1 %vm25098_vm1, %v25097_v48 }
0x133a   :  { %23794 = vmatprep.subr.mxu1 %v25097_v48 }
0x1340   :  { %23792 = vmatmul.mubr.f32.vlgmr.msra.gmra.mrb[40].mxu1 %v19257_v46 }
0x1341   :  { %23795 = vmatpush3.msra.mxu1 %v27145_v59  ;;  %23796 = vmatprep.mubr.msk.f32.mxu1 %vm25098_vm1, %v25097_v48 }
0x1348   :  { %23797 = vmatmul.mubr.f32.vlgmr.msra.gmra.mrb[40].mxu1 %v19257_v46 }
0x1349   :  { %v16490_v2 = vpop.f32.mrb[26].mxu0 }
0x134a   :  { %v16939_v4 = vpop.f32.mrb[34].mxu1  ;;  %v23588_v23 = vpop.f32.mrb[27].mxu0 }
0x134b   :  { %v23618_v0 = vpop.f32.mrb[35].mxu1 }
0x1376   :  { %v17388_v16 = vpop.f32.mrb[28].mxu0  ;;  %v17837_v3 = vpop.f32.mrb[36].mxu1 }
0x1377   :  { %v19637_v32 = vcombine.low %v16490_v2, %v17388_v16  ;;  %v19638_v31 = vcombine.high %v16490_v2, %v17388_v16  ;;  %v19653_v33 = vcombine.low %v16939_v4, %v17837_v3  ;;  %v19654_v51 = vcombine.high %v16939_v4, %v17837_v3  ;;  %v23648_v43 = vpop.f32.mrb[29].mxu0  ;;  %v23678_v5 = vpop.f32.mrb[37].mxu1 }
0x1379   :  { %v19645_v55 = vrot.slane %v19637_v32, %v25222_v29  ;;  %v19652_v25 = vrot.slane %v19638_v31, %v25222_v29  ;;  %v19661_v49 = vrot.slane %v19653_v33, %v25222_v29  ;;  %v19668_v48 = vrot.slane %v19654_v51, %v25222_v29 }
0x137b   :  { %v19669_v17 = vcombine.low %v19645_v55, %v19661_v49  ;;  %v19670_v1 = vcombine.high %v19645_v55, %v19661_v49  ;;  %v19685_v47 = vcombine.low %v19652_v25, %v19668_v48  ;;  %v19686_v57 = vcombine.high %v19652_v25, %v19668_v48 }
0x137d   :  { %v19677_v19 = vrot.slane %v19669_v17, %v25239_v35  ;;  %v19684_v30 = vrot.slane %v19670_v1, %v25239_v35  ;;  %v19693_v20 = vrot.slane %v19685_v47, %v25239_v35  ;;  %v19700_v9 = vrot.slane %v19686_v57, %v25239_v35 }
0x137f   :  { %v19773_v8 = vcombine.low %v19677_v19, %v19684_v30  ;;  %v21737_v22 = vcombine.high %v19677_v19, %v19684_v30  ;;  %v19789_v40 = vcombine.low %v19693_v20, %v19700_v9  ;;  %v21738_v10 = vcombine.high %v19693_v20, %v19700_v9 }
0x1381   :  { %v19780_v59 = vrot.slane %v19773_v8, %v25222_v29  ;;  %v19788_v11 = vrot.slane %v21737_v22, %v25222_v29  ;;  %v19796_v45 = vrot.slane %v19789_v40, %v25222_v29  ;;  %v19804_v61 = vrot.slane %v21738_v10, %v25222_v29 }
0x1383   :  { %v19805_v50 = vcombine.low %v19780_v59, %v19788_v11  ;;  %v19821_v14 = vcombine.low %v19796_v45, %v19804_v61  ;;  %v19806_v62 = vcombine.high %v19780_v59, %v19788_v11  ;;  %v19822_v34 = vcombine.high %v19796_v45, %v19804_v61 }
0x1385   :  { %v19813_v63 = vrot.slane %v19805_v50, %v25239_v35  ;;  %v19829_v41 = vrot.slane %v19821_v14, %v25239_v35  ;;  %v19820_v18 = vrot.slane %v19806_v62, %v25239_v35  ;;  %v19836_v56 = vrot.slane %v19822_v34, %v25239_v35 }
0x1387   :  { %v19838_v13 = vcombine.high %v19813_v63, %v19829_v41  ;;  %v19837_v6 = vcombine.low %v19813_v63, %v19829_v41  ;;  %v19839_v60 = vcombine.low %v19820_v18, %v19836_v56  ;;  %v19840_v21 = vcombine.high %v19820_v18, %v19836_v56 }
0x1389   :  { %19911 = vrot.lane.b32.xlu0 %v19838_v13, %s25090_s8 }
0x138d   :  { %19919 = vrot.lane.b32.xlu0 %v19839_v60, %s25100_s25 }
0x1391   :  { %19927 = vrot.lane.b32.xlu0 %v19840_v21, %s25101_s26 }
0x13b7   :  { %v18286_v15 = vpop.f32.mrb[30].mxu0 }
0x13b8   :  { %v18735_v24 = vpop.f32.mrb[38].mxu1  ;;  %v23708_v46 = vpop.f32.mrb[31].mxu0 }
0x13b9   :  { %v23738_v54 = vpop.f32.mrb[39].mxu1  ;;  %v21709_v46 = vld [vmem:[%s27446_s2 + $0x28] sm:$0xff] }
0x13f0   :  { %v19184_v53 = vpop.f32.mrb[32].mxu0 }
0x13f1   :  { %v19705_v7 = vcombine.low %v18286_v15, %v19184_v53  ;;  %v19706_v27 = vcombine.high %v18286_v15, %v19184_v53  ;;  %v23768_v26 = vpop.f32.mrb[33].mxu0  ;;  %v19949_v53 = vand.u32 4294901760, %v21709_v46 }
0x13f3   :  { %v19713_v49 = vrot.slane %v19705_v7, %v25222_v29  ;;  %v19720_v48 = vrot.slane %v19706_v27, %v25222_v29  ;;  %v21711_v7 = vld [vmem:[%s27446_s2 + $0x38] sm:$0xff] }
0x13fb   :  { %v19912_v38 = vpop.permute.xlu0 %19911 }
0x13fc   :  { %v19933_v2 = vsel %vm1523_vm2, %v19837_v6, %v19912_v38  ;;  %v19955_v38 = vand.u32 4294901760, %v21711_v7 }
0x13ff   :  { %v19920_v58 = vpop.permute.xlu0 %19919 }
0x1400   :  { %v19935_v4 = vsel %vm9118_vm3, %v19933_v2, %v19920_v58  ;;  %v20043_v2 = vsub.f32 %v21709_v46, %v19949_v53 }
0x1403   :  { %v19928_v23 = vpop.permute.xlu0 %19927 }
0x1404   :  { %v19937_v0 = vsel %vm9121_vm4, %v19935_v4, %v19928_v23 }
0x1405   :  { %v19940_v16 = vsel %vm61_vm0, %v19937_v0, 0  ;;  %v20044_v0 = vand.u32 4294901760, %v20043_v2 }
0x1406   :  { %v27213_v3 = vand.u32 4294901760, %v19940_v16 }
0x1408   :  { %v27216_v32 = vsub.f32 %v19940_v16, %v27213_v3 }
0x140a   :  { %v20016_v31 = vand.u32 4294901760, %v27216_v32 }
0x140c   :  { %v20017_v33 = vsub.f32 %v27216_v32, %v20016_v31 }
0x140e   :  { %v20018_v51 = vand.u32 4294901760, %v20017_v33 }
0x1410   :  { %23807 = vmatprep.mubr.f32.mxu0 %v20018_v51  ;;  %v20057_v51 = vsub.f32 %v21711_v7, %v19955_v38  ;;  %v21712_v7 = vld [vmem:[%s27447_s3 + $0x20] sm:$0xff] }
0x141b   :  { %v19633_v43 = vpop.f32.mrb[40].mxu1 }
0x141c   :  { %v19721_v5 = vcombine.low %v18735_v24, %v19633_v43  ;;  %v19722_v55 = vcombine.high %v18735_v24, %v19633_v43  ;;  %v23798_v25 = vpop.f32.mrb[41].mxu1  ;;  %v20045_v43 = vsub.f32 %v20043_v2, %v20044_v0 }
0x141d   :  { %v20058_v25 = vand.u32 4294901760, %v20057_v51 }
0x141e   :  { %v19729_v17 = vrot.slane %v19721_v5, %v25222_v29  ;;  %v19736_v1 = vrot.slane %v19722_v55, %v25222_v29 }
0x1420   :  { %v19737_v47 = vcombine.low %v19713_v49, %v19729_v17  ;;  %v19738_v57 = vcombine.high %v19713_v49, %v19729_v17  ;;  %v19753_v19 = vcombine.low %v19720_v48, %v19736_v1  ;;  %v19754_v30 = vcombine.high %v19720_v48, %v19736_v1 }
0x1421   :  { %v20046_v49 = vand.u32 4294901760, %v20045_v43  ;;  %v20059_v17 = vsub.f32 %v20057_v51, %v20058_v25 }
0x1422   :  { %v19745_v20 = vrot.slane %v19737_v47, %v25239_v35  ;;  %v19752_v9 = vrot.slane %v19738_v57, %v25239_v35  ;;  %v19761_v8 = vrot.slane %v19753_v19, %v25239_v35  ;;  %v19768_v22 = vrot.slane %v19754_v30, %v25239_v35 }
0x1423   :  { %v20060_v57 = vand.u32 4294901760, %v20059_v17 }
0x1424   :  { %v19841_v40 = vcombine.low %v19745_v20, %v19752_v9  ;;  %v21739_v10 = vcombine.high %v19745_v20, %v19752_v9  ;;  %v19857_v59 = vcombine.low %v19761_v8, %v19768_v22  ;;  %v21740_v11 = vcombine.high %v19761_v8, %v19768_v22 }
0x1426   :  { %v19848_v45 = vrot.slane %v19841_v40, %v25222_v29  ;;  %v19856_v61 = vrot.slane %v21739_v10, %v25222_v29  ;;  %v19864_v50 = vrot.slane %v19857_v59, %v25222_v29  ;;  %v19872_v14 = vrot.slane %v21740_v11, %v25222_v29  ;;  %v21708_v29 = vld [vmem:[%s27446_s2 + $0x20] sm:$0xff] }
0x1427   :  { %v19946_v54 = vand.u32 4294901760, %v21708_v29 }
0x1428   :  { %v19873_v62 = vcombine.low %v19848_v45, %v19856_v61  ;;  %v19874_v34 = vcombine.high %v19848_v45, %v19856_v61  ;;  %v19889_v63 = vcombine.low %v19864_v50, %v19872_v14  ;;  %v19890_v41 = vcombine.high %v19864_v50, %v19872_v14 }
0x1429   :  { %v27251_v27 = vpack.c.bf16 %v19949_v53, %v19946_v54  ;;  %v20036_v58 = vsub.f32 %v21708_v29, %v19946_v54 }
0x142a   :  { %v19881_v18 = vrot.slane %v19873_v62, %v25239_v35  ;;  %v19897_v56 = vrot.slane %v19889_v63, %v25239_v35  ;;  %v19888_v13 = vrot.slane %v19874_v34, %v25239_v35  ;;  %v19904_v6 = vrot.slane %v19890_v41, %v25239_v35  ;;  %v21710_v35 = vld [vmem:[%s27446_s2 + $0x30] sm:$0xff] }
0x142b   :  { %v19952_v26 = vand.u32 4294901760, %v21710_v35  ;;  %24334 = vmatprep.subr.bf16.mxu0 %v27251_v27  ;;  %v20037_v23 = vand.u32 4294901760, %v20036_v58  ;;  %v24349_v30 = vpack.c.bf16 %v20043_v2, %v20036_v58  ;;  %v21715_v2 = vld [vmem:[%s27447_s3 + $0x38] sm:$0xff] }
0x142c   :  { %v19906_v60 = vcombine.high %v19881_v18, %v19897_v56  ;;  %v19905_v21 = vcombine.low %v19881_v18, %v19897_v56  ;;  %v19907_v15 = vcombine.low %v19888_v13, %v19904_v6  ;;  %v19908_v24 = vcombine.high %v19888_v13, %v19904_v6  ;;  %24336 = vmatpush3.bf16.msra.mxu0 %v27251_v27 }
0x142d   :  { %v27255_v4 = vpack.c.bf16 %v19955_v38, %v19952_v26  ;;  %v20038_v16 = vsub.f32 %v20036_v58, %v20037_v23  ;;  %v20050_v33 = vsub.f32 %v21710_v35, %v19952_v26  ;;  %v24365_v9 = vpack.c.bf16 %v20044_v0, %v20037_v23  ;;  %v21714_v26 = vld [vmem:[%s27447_s3 + $0x30] sm:$0xff] }
0x142e   :  { %19913 = vrot.lane.b32.xlu1 %v19906_v60, %s25090_s8  ;;  %v20530_v38 = vand.u32 4294901760, %v21712_v7  ;;  %v20539_v23 = vand.u32 4294901760, %v21715_v2 }
0x142f   :  { %24338 = vmatprep.subr.bf16.mxu0 %v27255_v4  ;;  %v20039_v5 = vand.u32 4294901760, %v20038_v16  ;;  %v20051_v55 = vand.u32 4294901760, %v20050_v33  ;;  %v24353_v20 = vpack.c.bf16 %v20057_v51, %v20050_v33 }
0x1430   :  { %24340 = vmatpush3.bf16.msra.mxu0 %v27255_v4 }
0x1431   :  { %v20052_v48 = vsub.f32 %v20050_v33, %v20051_v55  ;;  %v24341_v1 = vpack.c.bf16 %v20046_v49, %v20039_v5  ;;  %v24369_v8 = vpack.c.bf16 %v20058_v25, %v20051_v55  ;;  %v20620_v33 = vsub.f32 %v21712_v7, %v20530_v38 }
0x1432   :  { %19921 = vrot.lane.b32.xlu1 %v19907_v15, %s25100_s25 }
0x1433   :  { %v20053_v47 = vand.u32 4294901760, %v20052_v48  ;;  %24342 = vmatprep.subr.bf16.mxu0 %v24341_v1  ;;  %v20621_v43 = vand.u32 4294901760, %v20620_v33  ;;  %v20641_v48 = vsub.f32 %v21715_v2, %v20539_v23 }
0x1435   :  { %v24345_v19 = vpack.c.bf16 %v20060_v57, %v20053_v47  ;;  %v20622_v55 = vsub.f32 %v20620_v33, %v20621_v43  ;;  %v20642_v57 = vand.u32 4294901760, %v20641_v48 }
0x1436   :  { %19929 = vrot.lane.b32.xlu1 %v19908_v24, %s25101_s26 }
0x1437   :  { %v20623_v17 = vand.u32 4294901760, %v20622_v55 }
0x14a0   :  { %v19914_v22 = vpop.permute.xlu1 %19913 }
0x14a1   :  { %v19934_v10 = vsel %vm1523_vm2, %v19905_v21, %v19914_v22 }
0x14a4   :  { %v19922_v40 = vpop.permute.xlu1 %19921 }
0x14a5   :  { %v19936_v59 = vsel %vm9118_vm3, %v19934_v10, %v19922_v40 }
0x14a8   :  { %v19930_v11 = vpop.permute.xlu1 %19929 }
0x14a9   :  { %v19938_v45 = vsel %vm9121_vm4, %v19936_v59, %v19930_v11 }
0x14aa   :  { %v19943_v61 = vsel %vm61_vm0, %v19938_v45, 0 }
0x14ab   :  { %v20024_v50 = vand.u32 4294901760, %v19943_v61 }
0x14ad   :  { %v20025_v14 = vsub.f32 %v19943_v61, %v20024_v50 }
0x14af   :  { %v20026_v62 = vand.u32 4294901760, %v20025_v14 }
0x14b1   :  { %v20027_v34 = vsub.f32 %v20025_v14, %v20026_v62 }
0x14b3   :  { %v20028_v63 = vand.u32 4294901760, %v20027_v34 }
0x14b5   :  { %23808 = vmatmul.mubr.f32.vlgmr.msra.gmra.mrb[34].mxu0 %v20028_v63 }
0x14b6   :  { %24344 = vmatpush3.bf16.msra.mxu0 %v24341_v1  ;;  %23818 = vmatprep.mubr.f32.mxu0 %v27213_v3 }
0x14b7   :  { %24346 = vmatprep.subr.bf16.mxu0 %v24345_v19 }
0x14ba   :  { %24348 = vmatpush3.bf16.msra.mxu0 %v24345_v19 }
0x14bb   :  { %24350 = vmatprep.subr.bf16.mxu0 %v24349_v30 }
0x14bd   :  { %23819 = vmatmul.mubr.f32.vlgmr.msra.gmra.mrb[34].mxu0 %v20024_v50 }
0x14be   :  { %24352 = vmatpush3.bf16.msra.mxu0 %v24349_v30  ;;  %23829 = vmatprep.mubr.f32.mxu0 %v27216_v32  ;;  %v27282_v32 = vld [vmem:[%s27449_s5 + $0x8] sm:$0xff] }
0x14bf   :  { %24354 = vmatprep.subr.bf16.mxu0 %v24353_v20  ;;  %v20510_v63 = vrot.slane %v27282_v32, %v9694_v42 }
0x14c2   :  { %24356 = vmatpush3.bf16.msra.mxu0 %v24353_v20  ;;  %v20643_v20 = vsub.f32 %v20641_v48, %v20642_v57 }
0x14c3   :  { %24358 = vmatprep.subr.bf16.mxu0 %v27251_v27 }
0x14c5   :  { %23830 = vmatmul.mubr.f32.vlgmr.msra.gmra.mrb[34].mxu0 %v20025_v14 }
0x14c6   :  { %24360 = vmatpush3.bf16.msra.mxu0 %v27251_v27  ;;  %23840 = vmatprep.mubr.f32.mxu0 %v20016_v31  ;;  %v20478_v31 = vrot.slane %v27282_v32, %v9662_v39 }
0x14c7   :  { %24362 = vmatprep.subr.bf16.mxu0 %v27255_v4 }
0x14ca   :  { %24364 = vmatpush3.bf16.msra.mxu0 %v27255_v4 }
0x14cb   :  { %24366 = vmatprep.subr.bf16.mxu0 %v24365_v9 }
0x14cd   :  { %23841 = vmatmul.mubr.f32.vlgmr.msra.gmra.mrb[34].mxu0 %v20026_v62 }
0x14ce   :  { %24368 = vmatpush3.bf16.msra.mxu0 %v24365_v9  ;;  %23851 = vmatprep.mubr.f32.mxu0 %v27213_v3 }
0x14cf   :  { %24370 = vmatprep.subr.bf16.mxu0 %v24369_v8 }
0x14d2   :  { %24372 = vmatpush3.bf16.msra.mxu0 %v24369_v8  ;;  %v20644_v8 = vand.u32 4294901760, %v20643_v20 }
0x14d3   :  { %24374 = vmatprep.subr.bf16.mxu0 %v27251_v27 }
0x14d5   :  { %23852 = vmatmul.mubr.f32.vlgmr.msra.gmra.mrb[34].mxu0 %v20024_v50 }
0x14d6   :  { %24376 = vmatpush3.bf16.msra.mxu0 %v27251_v27  ;;  %23862 = vmatprep.mubr.f32.mxu0 %v27213_v3  ;;  %v21713_v27 = vld [vmem:[%s27447_s3 + $0x28] sm:$0xff] }
0x14d7   :  { %24378 = vmatprep.subr.bf16.mxu0 %v27255_v4  ;;  %v20533_v58 = vand.u32 4294901760, %v21713_v27 }
0x14d9   :  { %v27313_v0 = vpack.c.bf16 %v20533_v58, %v20530_v38  ;;  %v20627_v51 = vsub.f32 %v21713_v27, %v20533_v58  ;;  %v21717_v38 = vld [vmem:[%s27448_s4 + $0x48] sm:$0xff] }
0x14da   :  { %24380 = vmatpush3.bf16.msra.mxu0 %v27255_v4  ;;  %v20536_v4 = vand.u32 4294901760, %v21714_v26  ;;  %v21085_v2 = vand.u32 4294901760, %v21717_v38 }
0x14db   :  { %24382 = vmatprep.subr.bf16.mxu1 %v27313_v0  ;;  %v20628_v5 = vand.u32 4294901760, %v20627_v51  ;;  %v24397_v40 = vpack.c.bf16 %v20627_v51, %v20620_v33 }
0x14dc   :  { %v27315_v16 = vpack.c.bf16 %v20539_v23, %v20536_v4  ;;  %24384 = vmatpush3.bf16.msra.mxu1 %v27313_v0  ;;  %v20634_v49 = vsub.f32 %v21714_v26, %v20536_v4  ;;  %v21718_v4 = vld [vmem:[%s27448_s4 + $0x50] sm:$0xff]  ;;  %v21719_v23 = vld [vmem:[%s27448_s4 + $0x58] sm:$0xff] }
0x14dd   :  { %23863 = vmatmul.mubr.f32.vlgmr.msra.gmra.mrb[34].mxu0 %v20024_v50  ;;  %v20629_v25 = vsub.f32 %v20627_v51, %v20628_v5  ;;  %v24413_v59 = vpack.c.bf16 %v20628_v5, %v20621_v43  ;;  %v21088_v33 = vand.u32 4294901760, %v21718_v4  ;;  %v21091_v51 = vand.u32 4294901760, %v21719_v23  ;;  %v21721_v43 = vld [vmem:[%s27448_s4 + $0x68] sm:$0xff] }
0x14de   :  { %24386 = vmatprep.subr.bf16.mxu1 %v27315_v16  ;;  %v20635_v47 = vand.u32 4294901760, %v20634_v49  ;;  %v24401_v10 = vpack.c.bf16 %v20641_v48, %v20634_v49  ;;  %v21097_v55 = vand.u32 4294901760, %v21721_v43 }
0x14df   :  { %v20630_v1 = vand.u32 4294901760, %v20629_v25  ;;  %v21722_v25 = vld [vmem:[%s27448_s4 + $0x70] sm:$0xff]  ;;  %v27364_v48 = vpack.c.bf16 %v21091_v51, %v21088_v33 }
0x14e0   :  { %24388 = vmatpush3.bf16.msra.mxu1 %v27315_v16  ;;  %v20636_v30 = vsub.f32 %v20634_v49, %v20635_v47  ;;  %v24417_v11 = vpack.c.bf16 %v20642_v57, %v20635_v47  ;;  %v21723_v49 = vld [vmem:[%s27448_s4 + $0x78] sm:$0xff] }
0x14e1   :  { %v24389_v19 = vpack.c.bf16 %v20630_v1, %v20623_v17  ;;  %v21100_v1 = vand.u32 4294901760, %v21722_v25  ;;  %v21103_v47 = vand.u32 4294901760, %v21723_v49 }
0x14e2   :  { %v20637_v9 = vand.u32 4294901760, %v20636_v30  ;;  %v21183_v30 = vsub.f32 %v21717_v38, %v21085_v2 }
0x14e3   :  { %24390 = vmatprep.subr.bf16.mxu1 %v24389_v19  ;;  %v27372_v57 = vpack.c.bf16 %v21103_v47, %v21100_v1 }
0x14e4   :  { %v24393_v22 = vpack.c.bf16 %v20644_v8, %v20637_v9  ;;  %v21184_v9 = vand.u32 4294901760, %v21183_v30 }
0x15b0   :  { %v23864_v41 = vpop.f32.mrb[34].mxu0 }
0x15b1   :  { %v20474_v18 = vadd.f32 %v23864_v41, %v26308_v44  ;;  %v20463_v56 = vpop.f32.mrb[35].mxu0 }
0x15b2   :  { %v20473_v3 = vadd.f32 %v20463_v56, %v26310_v12 }
0x15b3   :  { %v27289_v13 = vadd.f32 %v20478_v31, %v20474_v18  ;;  %v20516_v18 = vrot.slane %v27282_v32, %v9700_v28 }
0x15b4   :  { %v27291_v6 = vadd.f32 %v20478_v31, %v20473_v3 }
0x15b5   :  { %v20484_v60 = vsel %vm61_vm0, %v27289_v13, 0.0 }
0x15b6   :  { %20485 = vadd.xlane.f32.xlu1 %v20484_v60  ;;  %v20481_v21 = vsel %vm61_vm0, %v27291_v6, 0.0 }
0x15b7   :  { %20482 = vadd.xlane.f32.xlu0 %v20481_v21 }
0x1643   :  { %v20486_v15 = vpop.xlane.xlu1 %20485 }
0x1644   :  { %v20488_v39 = vmul.f32 0.03125, %v20486_v15  ;;  %v20483_v24 = vpop.xlane.xlu0 %20482 }
0x1645   :  { %v20487_v29 = vmul.f32 0.03125, %v20483_v24 }
0x1646   :  { %v20490_v44 = vsub.f32 %v27289_v13, %v20488_v39 }
0x1647   :  { %v20489_v12 = vsub.f32 %v27291_v6, %v20487_v29 }
0x1648   :  { %v20492_v53 = vmul.f32 %v20490_v44, %v20490_v44 }
0x1649   :  { %v20491_v46 = vmul.f32 %v20489_v12, %v20489_v12 }
0x164a   :  { %v20496_v35 = vsel %vm61_vm0, %v20492_v53, 0.0 }
0x164b   :  { %v20493_v54 = vsel %vm61_vm0, %v20491_v46, 0.0 }
0x164c   :  { %20494 = vadd.xlane.f32.xlu0 %v20493_v54 }
0x1650   :  { %20497 = vadd.xlane.f32.xlu0 %v20496_v35 }
0x16d9   :  { %v20495_v45 = vpop.xlane.xlu0 %20494 }
0x16da   :  { %v20499_v61 = vmul.f32 0.03125, %v20495_v45 }
0x16dc   :  { %v20501_v50 = vadd.f32 1e-05, %v20499_v61 }
0x16dd   :  { %v20498_v14 = vpop.xlane.xlu0 %20497 }
0x16de   :  { %25028 = vrsqrt.f32 %v20501_v50  ;;  %v20500_v62 = vmul.f32 0.03125, %v20498_v14 }
0x16e0   :  { %v20502_v34 = vadd.f32 1e-05, %v20500_v62 }
0x16e2   :  { %25030 = vrsqrt.f32 %v20502_v34 }
0x16e8   :  { %v25029_v31 = vpop.eup %25028 }
0x16e9   :  { %v20505_v41 = vmul.f32 %v25029_v31, %v20489_v12 }
0x16eb   :  { %v20511_v56 = vmul.f32 %v20510_v63, %v20505_v41 }
0x16ec   :  { %v25031_v3 = vpop.eup %25030 }
0x16ed   :  { %v20506_v60 = vmul.f32 %v25031_v3, %v20490_v44  ;;  %v20517_v21 = vadd.f32 %v20516_v18, %v20511_v56  ;;  %v21716_v44 = vld [vmem:[%s27448_s4 + $0x40] sm:$0xff] }
0x16ee   :  { %v21082_v58 = vand.u32 4294901760, %v21716_v44 }
0x16ef   :  { %v20512_v15 = vmul.f32 %v20510_v63, %v20506_v60  ;;  %v20524_v39 = vsel %vm61_vm0, %v20517_v21, 0  ;;  %v21211_v63 = vsub.f32 %v21721_v43, %v21097_v55  ;;  %v21218_v21 = vsub.f32 %v21722_v25, %v21100_v1 }
0x16f0   :  { %v20598_v24 = vand.u32 4294901760, %v20524_v39 }
0x16f1   :  { %v20518_v29 = vadd.f32 %v20516_v18, %v20512_v15  ;;  %v21212_v56 = vand.u32 4294901760, %v21211_v63  ;;  %v21225_v15 = vsub.f32 %v21723_v49, %v21103_v47 }
0x16f2   :  { %v20599_v46 = vsub.f32 %v20524_v39, %v20598_v24 }
0x16f3   :  { %v20527_v54 = vsel %vm61_vm0, %v20518_v29, 0  ;;  %v21213_v39 = vsub.f32 %v21211_v63, %v21212_v56  ;;  %v21219_v29 = vand.u32 4294901760, %v21218_v21  ;;  %v24473_v38 = vpack.c.bf16 %v21225_v15, %v21218_v21 }
0x16f4   :  { %v20600_v53 = vand.u32 4294901760, %v20599_v46  ;;  %v20608_v42 = vand.u32 4294901760, %v20527_v54 }
0x16f6   :  { %v20601_v35 = vsub.f32 %v20599_v46, %v20600_v53  ;;  %v20609_v12 = vsub.f32 %v20527_v54, %v20608_v42  ;;  %v21214_v54 = vand.u32 4294901760, %v21213_v39 }
0x16f8   :  { %v20602_v7 = vand.u32 4294901760, %v20601_v35  ;;  %v20610_v27 = vand.u32 4294901760, %v20609_v12 }
0x16fa   :  { %23873 = vmatprep.mubr.f32.mxu1 %v20602_v7  ;;  %v20611_v28 = vsub.f32 %v20609_v12, %v20610_v27 }
0x16fc   :  { %v20612_v26 = vand.u32 4294901760, %v20611_v28 }
0x16fe   :  { %23874 = vmatmul.mubr.f32.vlgmr.msra.gmra.mrb[42].mxu1 %v20612_v26 }
0x16ff   :  { %24392 = vmatpush3.bf16.msra.mxu1 %v24389_v19  ;;  %23884 = vmatprep.mubr.f32.mxu1 %v20598_v24  ;;  %v21176_v19 = vsub.f32 %v21716_v44, %v21082_v58 }
0x1700   :  { %24394 = vmatprep.subr.bf16.mxu1 %v24393_v22 }
0x1701   :  { %v21177_v20 = vand.u32 4294901760, %v21176_v19  ;;  %v24461_v28 = vpack.c.bf16 %v21183_v30, %v21176_v19 }
0x1703   :  { %24396 = vmatpush3.bf16.msra.mxu1 %v24393_v22  ;;  %v21178_v8 = vsub.f32 %v21176_v19, %v21177_v20  ;;  %v21185_v22 = vsub.f32 %v21183_v30, %v21184_v9 }
0x1704   :  { %24398 = vmatprep.subr.bf16.mxu1 %v24397_v40 }
0x1706   :  { %23885 = vmatmul.mubr.f32.vlgmr.msra.gmra.mrb[42].mxu1 %v20608_v42 }
0x1707   :  { %24400 = vmatpush3.bf16.msra.mxu1 %v24397_v40  ;;  %23895 = vmatprep.mubr.f32.mxu1 %v20599_v46  ;;  %v21190_v40 = vsub.f32 %v21718_v4, %v21088_v33  ;;  %v21226_v46 = vand.u32 4294901760, %v21225_v15 }
0x1708   :  { %24402 = vmatprep.subr.bf16.mxu1 %v24401_v10 }
0x1709   :  { %v21191_v45 = vand.u32 4294901760, %v21190_v40 }
0x170b   :  { %24404 = vmatpush3.bf16.msra.mxu1 %v24401_v10  ;;  %v21197_v10 = vsub.f32 %v21719_v23, %v21091_v51  ;;  %v21192_v14 = vsub.f32 %v21190_v40, %v21191_v45  ;;  %v27388_v23 = vpack.c.bf16 %v21226_v46, %v21219_v29 }
0x170c   :  { %24406 = vmatprep.subr.bf16.mxu1 %v27313_v0 }
0x170d   :  { %v21198_v61 = vand.u32 4294901760, %v21197_v10  ;;  %v21193_v31 = vand.u32 4294901760, %v21192_v14  ;;  %v24465_v26 = vpack.c.bf16 %v21197_v10, %v21190_v40 }
0x170e   :  { %23896 = vmatmul.mubr.f32.vlgmr.msra.gmra.mrb[42].mxu1 %v20609_v12 }
0x170f   :  { %24408 = vmatpush3.bf16.msra.mxu1 %v27313_v0  ;;  %23906 = vmatprep.mubr.f32.mxu1 %v20600_v53  ;;  %v21199_v62 = vsub.f32 %v21197_v10, %v21198_v61  ;;  %v21220_v53 = vsub.f32 %v21218_v21, %v21219_v29 }
0x1710   :  { %24410 = vmatprep.subr.bf16.mxu1 %v27315_v16 }
0x1711   :  { %v21200_v41 = vand.u32 4294901760, %v21199_v62  ;;  %v21221_v12 = vand.u32 4294901760, %v21220_v53 }
0x1713   :  { %24412 = vmatpush3.bf16.msra.mxu1 %v27315_v16  ;;  %v27380_v3 = vpack.c.bf16 %v21200_v41, %v21193_v31 }
0x1714   :  { %24414 = vmatprep.subr.bf16.mxu1 %v24413_v59 }
0x1716   :  { %23907 = vmatmul.mubr.f32.vlgmr.msra.gmra.mrb[42].mxu1 %v20610_v27 }
0x1717   :  { %24416 = vmatpush3.bf16.msra.mxu1 %v24413_v59  ;;  %23917 = vmatprep.mubr.f32.mxu1 %v20598_v24  ;;  %v21179_v59 = vand.u32 4294901760, %v21178_v8 }
0x1718   :  { %24418 = vmatprep.subr.bf16.mxu1 %v24417_v11 }
0x171b   :  { %24420 = vmatpush3.bf16.msra.mxu1 %v24417_v11  ;;  %v21186_v11 = vand.u32 4294901760, %v21185_v22 }
0x171c   :  { %24422 = vmatprep.subr.bf16.mxu1 %v27313_v0 }
0x171d   :  { %v27377_v50 = vpack.c.bf16 %v21186_v11, %v21179_v59 }
0x171e   :  { %23918 = vmatmul.mubr.f32.vlgmr.msra.gmra.mrb[42].mxu1 %v20608_v42 }
0x171f   :  { %24424 = vmatpush3.bf16.msra.mxu1 %v27313_v0  ;;  %23928 = vmatprep.mubr.f32.mxu1 %v20598_v24  ;;  %v21720_v0 = vld [vmem:[%s27448_s4 + $0x60] sm:$0xff]  ;;  %s25102_s4 = smov [#allocation5]  }
0x1720   :  { %24426 = vmatprep.subr.bf16.mxu1 %v27315_v16  ;;  %v21094_v5 = vand.u32 4294901760, %v21720_v0  ;;  %s21676_s17 = sshll.u32 %s25102_s4, 4  ;;  %s21677_s17 = int_to_ptr.vmem [resolvable:$true] %s21676_s17 }
0x1721   :  { %s25062_s2 = scalar_lea.vmem %s21677_s17, 256  ;;  %p25067_p9 = scmp.lt.s32.totalorder %s21677_s17, %s21677_s17 }
0x1722   :  { %v27368_v17 = vpack.c.bf16 %v21097_v55, %v21094_v5  ;;  %v21204_v34 = vsub.f32 %v21720_v0, %v21094_v5  ;;  %v20522_v0 = vrot.slane %v27282_v32, %v9706_v36  ;;  %p25063_p8 = scmp.ne.s32.totalorder %s21677_s17, %s25062_s2  ;;  %p25068_p10 = scmp.lt.s32.totalorder %s25062_s2, %s25062_s2 }
0x1723   :  { %24428 = vmatpush3.bf16.msra.mxu1 %v27315_v16  ;;  %v27352_v16 = vpack.c.bf16 %v21085_v2, %v21082_v58  ;;  %v27382_v58 = vpack.c.bf16 %v21184_v9, %v21177_v20  ;;  %v27384_v2 = vpack.c.bf16 %v21198_v61, %v21191_v45 }
0x1724   :  { %v21205_v18 = vand.u32 4294901760, %v21204_v34  ;;  %v24469_v44 = vpack.c.bf16 %v21211_v63, %v21204_v34  ;;  %p25069_p11 = por %p25068_p10, %p25067_p9 }
0x1725   :  { %24430 = vmatprep.subr.bf16.mxu0 %v27352_v16 }
0x1726   :  { %23929 = vmatmul.mubr.f32.vlgmr.msra.gmra.mrb[42].mxu1 %v20608_v42  ;;  %24432 = vmatpush3.bf16.msra.mxu0 %v27352_v16  ;;  %v21206_v60 = vsub.f32 %v21204_v34, %v21205_v18  ;;  %v21227_v42 = vsub.f32 %v21225_v15, %v21226_v46  ;;  %v27386_v4 = vpack.c.bf16 %v21212_v56, %v21205_v18  ;;  %p25070_p12 = pnand %p25069_p11, %p25063_p8 }
0x1727   :  { %24434 = vmatprep.subr.bf16.mxu0 %v27364_v48 }
0x1728   :  { %v21207_v24 = vand.u32 4294901760, %v21206_v60  ;;  %v21228_v7 = vand.u32 4294901760, %v21227_v42 }
0x172a   :  { %24436 = vmatpush3.bf16.msra.mxu0 %v27364_v48  ;;  %v24453_v35 = vpack.c.bf16 %v21214_v54, %v21207_v24  ;;  %v24457_v27 = vpack.c.bf16 %v21228_v7, %v21221_v12 }
0x172b   :  { %24438 = vmatprep.subr.bf16.mxu0 %v27368_v17 }
0x172e   :  { %24440 = vmatpush3.bf16.msra.mxu0 %v27368_v17 }
0x172f   :  { %24442 = vmatprep.subr.bf16.mxu0 %v27372_v57 }
0x1732   :  { %24444 = vmatpush3.bf16.msra.mxu0 %v27372_v57 }
0x1733   :  { %24446 = vmatprep.subr.bf16.mxu0 %v27377_v50 }
0x17f9   :  { %v23930_v33 = vpop.f32.mrb[42].mxu1 }
0x17fa   :  { %v24533_v51 = vadd.f32 %v23930_v33, %v20522_v0  ;;  %v21047_v43 = vpop.f32.mrb[43].mxu1 }
0x17fb   :  { %v24534_v5 = vadd.f32 %v21047_v43, %v20522_v0 }
0x17fc   :  { %v21060_v55 = vmul.f32 0.044715, %v24533_v51  ;;  %v21058_v10 = vmul.f32 0.5, %v24533_v51 }
0x17fd   :  { %v21059_v25 = vmul.f32 0.044715, %v24534_v5  ;;  %v21057_v59 = vmul.f32 0.5, %v24534_v5 }
0x17fe   :  { %v21062_v49 = vmul.f32 %v24533_v51, %v21060_v55 }
0x17ff   :  { %v21061_v1 = vmul.f32 %v24534_v5, %v21059_v25 }
0x1800   :  { %v21064_v47 = vmul.f32 %v24533_v51, %v21062_v49 }
0x1801   :  { %v21063_v19 = vmul.f32 %v24534_v5, %v21061_v1 }
0x1802   :  { %v21066_v30 = vadd.f32 %v24533_v51, %v21064_v47 }
0x1803   :  { %v21065_v20 = vadd.f32 %v24534_v5, %v21063_v19 }
0x1804   :  { %v21068_v9 = vmul.f32 0.7978846, %v21066_v30 }
0x1805   :  { %v21067_v8 = vmul.f32 0.7978846, %v21065_v20 }
0x1806   :  { %25032 = vtanh.f32 %v21068_v9 }
0x1807   :  { %25034 = vtanh.f32 %v21067_v8 }
0x1810   :  { %v25033_v22 = vpop.eup %25032 }
0x1811   :  { %v25035_v40 = vpop.eup %25034  ;;  %v21072_v36 = vadd.f32 1.0, %v25033_v22 }
0x1812   :  { %v21071_v11 = vadd.f32 1.0, %v25035_v40 }
0x1813   :  { %v21074_v45 = vmul.f32 %v21072_v36, %v21058_v10 }
0x1814   :  { %v21073_v61 = vmul.f32 %v21071_v11, %v21057_v59 }
0x1815   :  { %v21079_v14 = vsel %vm10260_vm5, %v21074_v45, 0 }
0x1816   :  { %v21076_v62 = vsel %vm10260_vm5, %v21073_v61, 0  ;;  %v21164_v34 = vand.u32 4294901760, %v21079_v14 }
0x1817   :  { %v21154_v63 = vand.u32 4294901760, %v21076_v62 }
0x1818   :  { %v21165_v31 = vsub.f32 %v21079_v14, %v21164_v34 }
0x1819   :  { %v21155_v41 = vsub.f32 %v21076_v62, %v21154_v63 }
0x181a   :  { %v21166_v18 = vand.u32 4294901760, %v21165_v31 }
0x181b   :  { %v21156_v56 = vand.u32 4294901760, %v21155_v41 }
0x181c   :  { %v21167_v60 = vsub.f32 %v21165_v31, %v21166_v18 }
0x181d   :  { %v21157_v21 = vsub.f32 %v21155_v41, %v21156_v56 }
0x181e   :  { %v21168_v39 = vand.u32 4294901760, %v21167_v60 }
0x181f   :  { %v21158_v15 = vand.u32 4294901760, %v21157_v21 }
0x1821   :  { %23947 = vmatprep.mubr.f32.mxu0 %v21158_v15 }
0x1822   :  { %23948 = vmatmul.mubr.f32.vlgmr.msra.gmra.mrb[36].mxu0 %v21168_v39 }
0x1823   :  { %24448 = vmatpush3.bf16.msra.mxu0 %v27377_v50  ;;  %23966 = vmatprep.mubr.f32.mxu0 %v21154_v63  ;;  %v21666_v50 = vrot.slane %v27282_v32, %v10851_v37 }
0x1824   :  { %24450 = vmatprep.subr.bf16.mxu0 %v27380_v3 }
0x1827   :  { %24452 = vmatpush3.bf16.msra.mxu0 %v27380_v3 }
0x1828   :  { %24454 = vmatprep.subr.bf16.mxu0 %v24453_v35 }
0x182b   :  { %24456 = vmatpush3.bf16.msra.mxu0 %v24453_v35 }
0x182c   :  { %24458 = vmatprep.subr.bf16.mxu0 %v24457_v27 }
0x182f   :  { %24460 = vmatpush3.bf16.msra.mxu0 %v24457_v27 }
0x1830   :  { %24462 = vmatprep.subr.bf16.mxu0 %v24461_v28 }
0x1832   :  { %23967 = vmatmul.mubr.f32.vlgmr.msra.gmra.mrb[36].mxu0 %v21164_v34 }
0x1833   :  { %24464 = vmatpush3.bf16.msra.mxu0 %v24461_v28  ;;  %23985 = vmatprep.mubr.f32.mxu0 %v21155_v41 }
0x1834   :  { %24466 = vmatprep.subr.bf16.mxu0 %v24465_v26 }
0x1837   :  { %24468 = vmatpush3.bf16.msra.mxu0 %v24465_v26 }
0x1838   :  { %24470 = vmatprep.subr.bf16.mxu0 %v24469_v44 }
0x183b   :  { %24472 = vmatpush3.bf16.msra.mxu0 %v24469_v44 }
0x183c   :  { %24474 = vmatprep.subr.bf16.mxu0 %v24473_v38 }
0x183f   :  { %24476 = vmatpush3.bf16.msra.mxu0 %v24473_v38 }
0x1840   :  { %24478 = vmatprep.subr.bf16.mxu0 %v27352_v16 }
0x1842   :  { %23986 = vmatmul.mubr.f32.vlgmr.msra.gmra.mrb[36].mxu0 %v21165_v31 }
0x1843   :  { %24480 = vmatpush3.bf16.msra.mxu0 %v27352_v16  ;;  %24004 = vmatprep.mubr.f32.mxu0 %v21156_v56 }
0x1844   :  { %24482 = vmatprep.subr.bf16.mxu0 %v27364_v48 }
0x1847   :  { %24484 = vmatpush3.bf16.msra.mxu0 %v27364_v48 }
0x1848   :  { %24486 = vmatprep.subr.bf16.mxu0 %v27368_v17 }
0x184b   :  { %24488 = vmatpush3.bf16.msra.mxu0 %v27368_v17 }
0x184c   :  { %24490 = vmatprep.subr.bf16.mxu0 %v27372_v57 }
0x184f   :  { %24492 = vmatpush3.bf16.msra.mxu0 %v27372_v57 }
0x1850   :  { %24494 = vmatprep.subr.bf16.mxu0 %v27382_v58 }
0x1852   :  { %24005 = vmatmul.mubr.f32.vlgmr.msra.gmra.mrb[36].mxu0 %v21166_v18 }
0x1853   :  { %24496 = vmatpush3.bf16.msra.mxu0 %v27382_v58  ;;  %24023 = vmatprep.mubr.f32.mxu0 %v21154_v63 }
0x1854   :  { %24498 = vmatprep.subr.bf16.mxu0 %v27384_v2 }
0x1857   :  { %24500 = vmatpush3.bf16.msra.mxu0 %v27384_v2 }
0x1858   :  { %24502 = vmatprep.subr.bf16.mxu0 %v27386_v4 }
0x185b   :  { %24504 = vmatpush3.bf16.msra.mxu0 %v27386_v4 }
0x185c   :  { %24506 = vmatprep.subr.bf16.mxu0 %v27388_v23 }
0x185f   :  { %24508 = vmatpush3.bf16.msra.mxu0 %v27388_v23 }
0x1860   :  { %24510 = vmatprep.subr.bf16.mxu0 %v27352_v16 }
0x1862   :  { %24024 = vmatmul.mubr.f32.vlgmr.msra.gmra.mrb[36].mxu0 %v21164_v34 }
0x1863   :  { %24512 = vmatpush3.bf16.msra.mxu0 %v27352_v16  ;;  %24042 = vmatprep.mubr.f32.mxu0 %v21154_v63 }
0x1864   :  { %24514 = vmatprep.subr.bf16.mxu0 %v27364_v48 }
0x1867   :  { %24516 = vmatpush3.bf16.msra.mxu0 %v27364_v48 }
0x1868   :  { %24518 = vmatprep.subr.bf16.mxu0 %v27368_v17 }
0x186b   :  { %24520 = vmatpush3.bf16.msra.mxu0 %v27368_v17 }
0x186c   :  { %24522 = vmatprep.subr.bf16.mxu0 %v27372_v57 }
0x186f   :  { %24524 = vmatpush3.bf16.msra.mxu0 %v27372_v57 }
0x1872   :  { %24043 = vmatmul.mubr.f32.vlgmr.msra.gmra.mrb[36].mxu0 %v21164_v34 }
0x1945   :  { %v24044_v3 = vpop.f32.mrb[36].mxu0 }
0x1946   :  { %v21662_v16 = vadd.f32 %v24044_v3, %v27289_v13  ;;  %v21651_v24 = vpop.f32.mrb[37].mxu0 }
0x1947   :  { %v21661_v48 = vadd.f32 %v21651_v24, %v27291_v6 }
0x1948   :  { %v21668_v29 = vadd.f32 %v21666_v50, %v21662_v16 }
0x1949   :  { %v21667_v46 = vadd.f32 %v21666_v50, %v21661_v48 }
0x194a   :  { %21670 = vst.msk [vmem:[#allocation5 + $0x8] sm:$0xff] %vm61_vm0, %v21668_v29 }
0x194b   :  { %21669 = vst.msk [vmem:[#allocation5] sm:$0xff] %vm61_vm0, %v21667_v46 }
0x194c   :  { %25073 = shalt.err (!%p25070_p12)
}
0x194d   :  { %s25074_s26 = scalar_lea.hbm %s27450_s6, 256 }
0x194e   :  { %p25075_p13 = scmp.ne.s32.totalorder %s27450_s6, %s25074_s26  ;;  %p25078_p0 = scmp.lt.u32.totalorder %s25074_s26, %s27450_s6 }
0x1950   :  { %p25080_p1 = pnand %p25078_p0, %p25075_p13 }
0x1952   :  { %25083 = shalt.err (!%p25080_p1)
}
0x1953   :  { %21682 = dma.vmem_to_hbm [thread:$0]  %s21677_s17, 256, %s27450_s6, [#allocation4], %s25089_s7, %s25089_s7, %s25090_s8  }
0x1954   :  { %25086 = dma.done.wait [#allocation4], 256  }
0x1955   :  { %25087 = vsyncadd [#allocation4], 4294967040 }
0x1956   :  { %21686 = vsyncpa [#allocation3], 1 }
0x1957   :  { %21687 = vsyncpa [#allocation4], 1 }

</bundles_post_ra>
